<compile_context>
chip_gen: v6e
topology: v6e:2x2x1
jax: 0.10.0
libtpu: 0.0.40
codegen_flags: <defaults>
</compile_context>

<pallas_src>
import functools

import numpy as np
import jax
import jax.numpy as jnp
from jax.experimental import pallas as pl
from jax.experimental.pallas import tpu as pltpu


# ---------------------------------------------------------------------------
# Synthetic Darknet cfg (tiny YOLO-v3-like: 2 detection heads, route, shortcut,
# upsample).  Input: 4 channels, 16x16.
# ---------------------------------------------------------------------------
CFG = """
[net]
height=16
width=16
channels=4

[convolutional]
batch_normalize=1
filters=8
size=3
stride=1
pad=1
activation=leaky

[convolutional]
batch_normalize=1
filters=8
size=3
stride=1
pad=1
activation=leaky

[convolutional]
batch_normalize=1
filters=16
size=3
stride=2
pad=1
activation=leaky

[convolutional]
batch_normalize=1
filters=16
size=3
stride=1
pad=1
activation=leaky

[shortcut]
from=-2
activation=linear

[convolutional]
batch_normalize=0
filters=18
size=1
stride=1
pad=1
activation=linear

[yolo]
mask=3,4,5
anchors=2,3, 4,5, 6,8, 8,10, 10,13, 13,15
classes=1
num=6

[route]
layers=-3

[convolutional]
batch_normalize=1
filters=8
size=1
stride=1
pad=1
activation=leaky

[upsample]
stride=2

[route]
layers=-1,1

[convolutional]
batch_normalize=0
filters=18
size=3
stride=1
pad=1
activation=linear

[yolo]
mask=0,1,2
anchors=2,3, 4,5, 6,8, 8,10, 10,13, 13,15
classes=1
num=6
"""


def parse_cfg_str(cfg):
    """Same semantics as parse_cfg, but over an in-memory string."""
    block = {}
    blocks = []
    for line in cfg.splitlines():
        line = line.strip()
        if len(line) <= 0 or line[0] == '#':
            continue
        if line[0] == '[':
            if len(block) > 0:
                blocks.append(block)
                block = {}
            block['type'] = line[1:-1].strip()
        else:
            key, value = line.split('=')
            block[key.rstrip()] = value.lstrip()
    blocks.append(block)
    return blocks


def _round_up(x, m):
    return ((x + m - 1) // m) * m


# ---------------------------------------------------------------------------
# Fused conv matmul kernel:
#   y = leaky(A @ B * scale + bias)  [+ residual]  [-> YOLO transform]
# Refs: a, b, scale, bias, [residual], [msk, off, scl], out
# ---------------------------------------------------------------------------
def _conv_matmul_kernel(*refs, leaky, has_residual, has_yolo):
    a_ref, b_ref, s_ref, c_ref = refs[:4]
    o_ref = refs[-1]
    extra = refs[4:-1]

    y = jnp.dot(a_ref[...], b_ref[...], preferred_element_type=jnp.float32)
    y = y * s_ref[...] + c_ref[...]
    if leaky:
        y = jnp.where(y > 0, y, 0.1 * y)

    i = 0
    if has_residual:
        y = y + extra[i][...].astype(jnp.float32)
        i += 1
    if has_yolo:
        msk = extra[i][...]          # (1, tn): 1.0 on exp (w,h) channels
        off = extra[i + 1][...]      # (tm, tn): grid x/y offsets
        scl = extra[i + 2][...]      # (1, tn): stride / anchor scales
        is_exp = msk > 0.0
        # Single exp per element: sigmoid(x) = 1 / (1 + exp(-x)), exp-rows use exp(x).
        e = jnp.exp(jnp.where(is_exp, y, -y))
        y = jnp.where(is_exp, e, 1.0 / (1.0 + e))
        y = (y + off) * scl

    o_ref[...] = y.astype(o_ref.dtype)


def fused_conv_matmul(a, b_p, s_p, c_p, leaky, residual=None, yolo=None,
                      out_dtype=jnp.bfloat16):
    """a: [M, K] activations (any float dtype; true K, no padding).
    b_p: [K, Np] bf16 weights (pre-padded on N only).  s_p/c_p: [1, Np] f32.
    residual: optional [M, Np] (added post-activation).  yolo: optional planes.
    Returns padded [Mp, Np] array of out_dtype (caller slices rows/cols)."""
    M, K = a.shape
    Kb, Np = b_p.shape
    assert Kb == K, (Kb, K)

    Mp = _round_up(M, 8)
    # Split big M blocks so v7x's two TensorCores both run; cheap elsewhere.
    tm = 256 if (Mp > 256 and Mp % 256 == 0) else Mp
    TN_CAP = 256
    tn = Np if Np <= TN_CAP else max(
        t for t in range(128, TN_CAP + 1, 128) if Np % t == 0)

    a_p = a.astype(jnp.bfloat16)
    if Mp != M:
        a_p = jnp.pad(a_p, ((0, Mp - M), (0, 0)))

    operands = [a_p, b_p, s_p, c_p]
    in_specs = [
        pl.BlockSpec((tm, K), lambda i, j: (i, 0)),
        pl.BlockSpec((K, tn), lambda i, j: (0, j)),
        pl.BlockSpec((1, tn), lambda i, j: (0, j)),
        pl.BlockSpec((1, tn), lambda i, j: (0, j)),
    ]
    if residual is not None:
        r = residual
        if r.shape[0] != Mp:
            r = jnp.pad(r, ((0, Mp - r.shape[0]), (0, 0)))
        operands.append(r)
        in_specs.append(pl.BlockSpec((tm, tn), lambda i, j: (i, j)))
    if yolo is not None:
        off = yolo['off']
        if off.shape[0] != Mp:
            off = jnp.pad(off, ((0, Mp - off.shape[0]), (0, 0)))
        operands += [yolo['msk'], off, yolo['scl']]
        in_specs += [pl.BlockSpec((1, tn), lambda i, j: (0, j)),
                     pl.BlockSpec((tm, tn), lambda i, j: (i, j)),
                     pl.BlockSpec((1, tn), lambda i, j: (0, j))]

    grid = (Mp // tm, Np // tn)
    out = pl.pallas_call(
        functools.partial(_conv_matmul_kernel, leaky=leaky,
                          has_residual=residual is not None,
                          has_yolo=yolo is not None),
        out_shape=jax.ShapeDtypeStruct((Mp, Np), out_dtype),
        grid=grid,
        in_specs=in_specs,
        out_specs=pl.BlockSpec((tm, tn), lambda i, j: (i, j)),
        compiler_params=pltpu.CompilerParams(
            dimension_semantics=("parallel", "parallel")),
        cost_estimate=pl.CostEstimate(
            flops=2 * Mp * Np * K,
            transcendentals=Mp * Np if yolo is not None else 0,
            bytes_accessed=(Mp * K * 2 + K * Np * 2 +
                            Mp * Np * jnp.dtype(out_dtype).itemsize)),
    )(*operands)
    return out


# ---------------------------------------------------------------------------
# Shortcut fallback: lane-dense elementwise add (unused when the add is fused
# into the preceding conv epilogue, as in this cfg).
# ---------------------------------------------------------------------------
def _add_kernel(a_ref, b_ref, o_ref):
    o_ref[...] = a_ref[...] + b_ref[...]


def shortcut_add(a, b):
    shape = a.shape
    n = int(np.prod(shape))
    npad = _round_up(n, 128)
    rows = npad // 128
    a2 = jnp.pad(a.astype(jnp.float32).reshape(-1), (0, npad - n)).reshape(rows, 128)
    b2 = jnp.pad(b.astype(jnp.float32).reshape(-1), (0, npad - n)).reshape(rows, 128)
    out = pl.pallas_call(
        _add_kernel,
        out_shape=jax.ShapeDtypeStruct((rows, 128), jnp.float32),
        grid=(1,),
        in_specs=[pl.BlockSpec((rows, 128), lambda i: (0, 0)),
                  pl.BlockSpec((rows, 128), lambda i: (0, 0))],
        out_specs=pl.BlockSpec((rows, 128), lambda i: (0, 0)),
    )(a2, b2)
    return out.reshape(-1)[:n].reshape(shape)


# ---------------------------------------------------------------------------
# Bilinear 2x upsample (align_corners=False), single kernel, 2-tap lerp on the
# VPU; emits the four (H-even/odd x W-even/odd) phases, interleaved outside.
# ---------------------------------------------------------------------------
def _upsample_kernel(x_ref, ee_ref, eo_ref, oe_ref, oo_ref):
    x = x_ref[...].astype(jnp.float32)                        # (B, H, W, C)
    # H direction (axis 1), clamped neighbors
    xhp = jnp.concatenate([x[:, :1], x[:, :-1]], axis=1)
    xhn = jnp.concatenate([x[:, 1:], x[:, -1:]], axis=1)
    he = 0.25 * xhp + 0.75 * x                                # output rows 2i
    ho = 0.75 * x + 0.25 * xhn                                # output rows 2i+1

    def wphase(t):                                            # W direction (axis 2)
        twp = jnp.concatenate([t[:, :, :1], t[:, :, :-1]], axis=2)
        twn = jnp.concatenate([t[:, :, 1:], t[:, :, -1:]], axis=2)
        return 0.25 * twp + 0.75 * t, 0.75 * t + 0.25 * twn

    ee, eo = wphase(he)
    oe, oo = wphase(ho)
    ee_ref[...] = ee.astype(ee_ref.dtype)
    eo_ref[...] = eo.astype(eo_ref.dtype)
    oe_ref[...] = oe.astype(oe_ref.dtype)
    oo_ref[...] = oo.astype(oo_ref.dtype)


def upsample_bilinear2x(x):
    """x: NHWC [B, H, W, C] -> [B, 2H, 2W, C] (same dtype as input)."""
    B, H, W, C = x.shape
    spec = pl.BlockSpec((B, H, W, C), lambda i: (0, 0, 0, 0))
    shp = jax.ShapeDtypeStruct((B, H, W, C), x.dtype)
    ee, eo, oe, oo = pl.pallas_call(
        _upsample_kernel,
        out_shape=(shp, shp, shp, shp),
        grid=(1,),
        in_specs=[spec],
        out_specs=(spec, spec, spec, spec),
    )(x)
    top = jnp.stack([ee, eo], axis=3)          # (B, H, W, 2, C)  -> rows 2i
    bot = jnp.stack([oe, oo], axis=3)          # (B, H, W, 2, C)  -> rows 2i+1
    full = jnp.stack([top, bot], axis=2)       # (B, H, 2, W, 2, C)
    return full.reshape(B, 2 * H, 2 * W, C)


# ---------------------------------------------------------------------------
# YOLO transform planes in the conv-output (M=B*G*G rows, Np cols) layout.
# ---------------------------------------------------------------------------
def make_yolo_planes(block, net_info, B, G, filters):
    mask = [int(m) for m in block['mask'].split(',')]
    avals = [int(v) for v in block['anchors'].split(',')]
    anchors_all = [(avals[i], avals[i + 1]) for i in range(0, len(avals), 2)]
    anchors = [anchors_all[i] for i in mask]
    inp_dim = int(net_info['height'])
    num_classes = int(block['classes'])
    attrs = 5 + num_classes
    A = len(anchors)
    assert filters == A * attrs, (filters, A, attrs)
    stride = inp_dim // G
    GG = G * G
    M = B * GG
    Np = _round_up(filters, 128)

    cell = np.arange(GG)
    gx = np.tile((cell % G).astype(np.float32), B)    # rows: b-major then cell
    gy = np.tile((cell // G).astype(np.float32), B)

    off = np.zeros((M, Np), np.float32)
    scl = np.ones((1, Np), np.float32)
    msk = np.zeros((1, Np), np.float32)
    for ai, (aw, ah) in enumerate(anchors):
        base = ai * attrs
        off[:, base + 0] = gx
        off[:, base + 1] = gy
        scl[0, base + 0] = float(stride)
        scl[0, base + 1] = float(stride)
        scl[0, base + 2] = float(aw)                   # exp(tw) * anchor_w
        scl[0, base + 3] = float(ah)                   # exp(th) * anchor_h
        msk[0, base + 2] = 1.0
        msk[0, base + 3] = 1.0
    return dict(off=jnp.asarray(off), scl=jnp.asarray(scl), msk=jnp.asarray(msk),
                A=A, attrs=attrs)


# ---------------------------------------------------------------------------
# Convolution wrapper (NHWC, XLA-level im2col + fused matmul epilogue)
# ---------------------------------------------------------------------------
def conv_apply(x, p, residual_mat=None, yolo_planes=None):
    """x: NHWC [B,H,W,Cin].  Returns (activation_or_detections, padded_mat)."""
    k, s, pad, filters = p['ksize'], p['stride'], p['pad'], p['filters']
    B, H, W, C = x.shape
    Ho = (H + 2 * pad - k) // s + 1
    Wo = (W + 2 * pad - k) // s + 1
    xp = jnp.pad(x, ((0, 0), (pad, pad), (pad, pad), (0, 0))) if pad else x
    cols = [xp[:, dh:dh + s * Ho:s, dw:dw + s * Wo:s, :]
            for dh in range(k) for dw in range(k)]
    pat = cols[0] if len(cols) == 1 else jnp.concatenate(cols, axis=-1)
    a = pat.reshape(B * Ho * Wo, k * k * C)        # columns ordered (kh, kw, cin)

    out_dtype = jnp.float32 if yolo_planes is not None else jnp.bfloat16
    mat = fused_conv_matmul(a, p['wmat'], p['scale'], p['bias'], p['leaky'],
                            residual=residual_mat, yolo=yolo_planes,
                            out_dtype=out_dtype)
    M = B * Ho * Wo
    if yolo_planes is not None:
        # Detection layout: rows (b, cell), cols (anchor, attrs) -> (B, GG*A, attrs)
        det = mat[:M, :filters].reshape(B, Ho * Wo * yolo_planes['A'],
                                        yolo_planes['attrs'])
        return det, None
    nhwc = mat[:M, :filters].reshape(B, Ho, Wo, filters)
    return nhwc, mat[:M]


# ---------------------------------------------------------------------------
# Parameter construction (mirrors create_modules bookkeeping).
# Weight matrices (padded on N only) / folded BN scale-bias built ONCE here.
# ---------------------------------------------------------------------------
def build_params(blocks, key):
    net_info = blocks[0]
    prev_filters = int(net_info.get('channels', 3))
    output_filters = []
    params = {}
    for idx, block in enumerate(blocks[1:]):
        t = block['type']
        if t == 'convolutional':
            bn = int(block.get('batch_normalize', 0))
            filters = int(block['filters'])
            k = int(block['size'])
            s = int(block['stride'])
            # NOTE: matches the reference module exactly (pad from activation truthiness)
            pad = (k - 1) // 2 if block['activation'] else 0
            key, k1, k2, k3, k4, k5 = jax.random.split(key, 6)
            w = jax.random.normal(k1, (filters, prev_filters, k, k), jnp.float32) * 0.1
            if bn:
                gamma = 1.0 + 0.1 * jax.random.normal(k2, (filters,), jnp.float32)
                beta = 0.1 * jax.random.normal(k3, (filters,), jnp.float32)
                rmean = 0.1 * jax.random.normal(k4, (filters,), jnp.float32)
                rvar = 1.0 + 0.1 * jnp.abs(jax.random.normal(k5, (filters,), jnp.float32))
                scale = gamma / jnp.sqrt(rvar + 1e-5)
                bias = beta - rmean * scale
            else:
                scale = jnp.ones((filters,), jnp.float32)
                bias = 0.1 * jax.random.normal(k2, (filters,), jnp.float32)

            K = k * k * prev_filters
            Np = _round_up(filters, 128)
            wmat = jnp.transpose(w, (2, 3, 1, 0)).reshape(K, filters)   # (kh,kw,cin) x cout
            wmat_p = jnp.zeros((K, Np), jnp.bfloat16).at[:, :filters].set(
                wmat.astype(jnp.bfloat16))
            s_p = jnp.zeros((1, Np), jnp.float32).at[0, :filters].set(scale)
            c_p = jnp.zeros((1, Np), jnp.float32).at[0, :filters].set(bias)

            params[idx] = dict(wmat=wmat_p, scale=s_p, bias=c_p, ksize=k,
                               stride=s, pad=pad, filters=filters,
                               leaky=(block['activation'] == 'leaky'))
            prev_filters = filters
        elif t == 'route':
            route_idx = block['layers'].split(',')
            start = int(route_idx[0])
            end = int(route_idx[1]) if len(route_idx) > 1 else 0
            if start < 0:
                start += idx
            if end < 0:
                end += idx
            if end > 0:
                prev_filters = output_filters[start] + output_filters[end]
            else:
                prev_filters = output_filters[start]
            block['start'] = start
            block['end'] = end
        # shortcut / upsample / yolo: filters unchanged (as in create_modules)
        output_filters.append(prev_filters)
    return params


# ---------------------------------------------------------------------------
# Darknet forward (mirrors Darknet.forward); activations NHWC internally,
# shortcut add and YOLO transform fused into the preceding conv epilogues.
# ---------------------------------------------------------------------------
def darknet_forward(blocks, params, x_nchw):
    net_info = blocks[0]
    layers = blocks[1:]
    x = jnp.transpose(x_nchw, (0, 2, 3, 1))        # NCHW -> NHWC once
    outputs = {}
    mats = {}                                      # padded (M, Np) conv outputs
    fused = set()                                  # layer idxs fused into prev conv
    detections = None
    for idx, block in enumerate(layers):
        t = block['type']
        if t == 'convolutional':
            p = params[idx]
            B, H, W, _ = x.shape
            Ho = (H + 2 * p['pad'] - p['ksize']) // p['stride'] + 1
            Wo = (W + 2 * p['pad'] - p['ksize']) // p['stride'] + 1
            nxt = layers[idx + 1] if idx + 1 < len(layers) else None
            residual_mat = None
            yolo_planes = None
            if nxt is not None and nxt['type'] == 'shortcut':
                src = (idx + 1) + int(nxt['from'])
                cand = mats.get(src)
                Np = _round_up(p['filters'], 128)
                if (cand is not None and src in params and
                        params[src]['filters'] == p['filters'] and
                        cand.shape == (B * Ho * Wo, Np)):
                    residual_mat = cand
                    fused.add(idx + 1)
            elif nxt is not None and nxt['type'] == 'yolo':
                yolo_planes = make_yolo_planes(nxt, net_info, B, Ho, p['filters'])
                fused.add(idx + 1)
            x, mat = conv_apply(x, p, residual_mat=residual_mat,
                                yolo_planes=yolo_planes)
            if mat is not None:
                mats[idx] = mat
        elif t == 'upsample':
            x = upsample_bilinear2x(x)
        elif t == 'route':
            if block['end'] == 0:
                x = outputs[block['start']]
            else:
                x = jnp.concatenate([outputs[block['start']],
                                     outputs[block['end']]], axis=-1)
        elif t == 'shortcut':
            if idx not in fused:
                from_ = int(block['from'])
                x = shortcut_add(outputs[idx - 1], outputs[idx + from_])
            # else: x already carries conv + residual from the fused epilogue
        elif t == 'yolo':
            if idx not in fused:
                # TODO(synk): standalone (non-conv-fused) yolo head not implemented;
                # in Darknet cfgs a yolo block always directly follows its conv.
                raise NotImplementedError('yolo block must follow a convolutional block')
            detections = x if detections is None else jnp.concatenate(
                [detections, x], axis=1)
        outputs[idx] = x
    return detections


if __name__ == "__main__":
    blocks = parse_cfg_str(CFG)
    params = build_params(blocks, jax.random.PRNGKey(1))

    key = jax.random.PRNGKey(0)
    x = jax.random.normal(key, (2, 4, 16, 16), jnp.float32)  # NCHW, like PyTorch

    forward = jax.jit(functools.partial(darknet_forward, blocks, params))
    det = jax.block_until_ready(forward(x))

    expected = (2, 8 * 8 * 3 + 16 * 16 * 3, 5 + 1)  # (B, 960, 6)
    assert det.shape == expected, det.shape
    assert bool(jnp.all(jnp.isfinite(det)))
    print("KERNEL_OK")
</pallas_src>

<mosaic_0001>
module attributes {stable_mosaic.version = 11 : i64} {
  func.func @_conv_matmul_kernel(%arg0: i32, %arg1: i32, %arg2: memref<256x36xbf16, #tpu.memory_space<vmem>>, %arg3: memref<36x128xbf16, #tpu.memory_space<vmem>>, %arg4: memref<1x128xf32, #tpu.memory_space<vmem>>, %arg5: memref<1x128xf32, #tpu.memory_space<vmem>>, %arg6: memref<256x128xbf16, #tpu.memory_space<vmem>>) attributes {dimension_semantics = [#tpu.dimension_semantics<parallel>, #tpu.dimension_semantics<parallel>], iteration_bounds = array<i64: 2, 1>, scalar_prefetch = 0 : i64, scratch_operands = 0 : i64, tpu.core_type = #tpu.core_type<tc>, window_params = [{transform_indices = @transform_0, window_bounds = array<i64: 256, 36>}, {transform_indices = @transform_1, window_bounds = array<i64: 36, 128>}, {transform_indices = @transform_2, window_bounds = array<i64: 1, 128>}, {transform_indices = @transform_3, window_bounds = array<i64: 1, 128>}, {transform_indices = @transform_4, window_bounds = array<i64: 256, 128>}]} {
    %c0 = arith.constant 0 : index
    %c0_0 = arith.constant 0 : index
    %0 = vector.load %arg2[%c0, %c0_0] : memref<256x36xbf16, #tpu.memory_space<vmem>>, vector<256x36xbf16>
    %c0_1 = arith.constant 0 : index
    %c0_2 = arith.constant 0 : index
    %1 = vector.load %arg3[%c0_1, %c0_2] : memref<36x128xbf16, #tpu.memory_space<vmem>>, vector<36x128xbf16>
    %cst = arith.constant dense<0.000000e+00> : vector<256x128xf32>
    %2 = tpu.matmul %0, %1, %cst {dimension_numbers = #tpu.dot_dimension_numbers<[1], [0], [0], [1], [0, 0, 1, 1], [], []>} : vector<256x36xbf16>, vector<36x128xbf16>, vector<256x128xf32> -> vector<256x128xf32>
    %c0_3 = arith.constant 0 : index
    %c0_4 = arith.constant 0 : index
    %3 = vector.load %arg4[%c0_3, %c0_4] : memref<1x128xf32, #tpu.memory_space<vmem>>, vector<1x128xf32>
    %4 = vector.broadcast %3 : vector<1x128xf32> to vector<256x128xf32>
    %5 = arith.mulf %2, %4 : vector<256x128xf32>
    %c0_5 = arith.constant 0 : index
    %c0_6 = arith.constant 0 : index
    %6 = vector.load %arg5[%c0_5, %c0_6] : memref<1x128xf32, #tpu.memory_space<vmem>>, vector<1x128xf32>
    %7 = vector.broadcast %6 : vector<1x128xf32> to vector<256x128xf32>
    %8 = arith.addf %5, %7 : vector<256x128xf32>
    %cst_7 = arith.constant 0.000000e+00 : f32
    %9 = vector.broadcast %cst_7 : f32 to vector<256x128xf32>
    %10 = arith.cmpf ogt, %8, %9 : vector<256x128xf32>
    %cst_8 = arith.constant 1.000000e-01 : f32
    %11 = vector.broadcast %cst_8 : f32 to vector<256x128xf32>
    %12 = arith.mulf %11, %8 : vector<256x128xf32>
    %13 = arith.select %10, %8, %12 : vector<256x128xi1>, vector<256x128xf32>
    %14 = arith.truncf %13 : vector<256x128xf32> to vector<256x128xbf16>
    %c0_9 = arith.constant 0 : index
    %c0_10 = arith.constant 0 : index
    %15 = vector.load %arg6[%c0_9, %c0_10] : memref<256x128xbf16, #tpu.memory_space<vmem>>, vector<256x128xbf16>
    tpu.vector_store %arg6[%c0_9, %c0_10], %14 {strides = array<i32>} : memref<256x128xbf16, #tpu.memory_space<vmem>>, vector<256x128xbf16>,
    return
  }
  func.func @transform_0(%arg0: i32, %arg1: i32) -> (i32, i32) {
    %c0_i32 = arith.constant 0 : i32
    %c0_i32_0 = arith.constant 0 : i32
    return %arg0, %c0_i32 : i32, i32
  }
  func.func @transform_1(%arg0: i32, %arg1: i32) -> (i32, i32) {
    %c0_i32 = arith.constant 0 : i32
    %c0_i32_0 = arith.constant 0 : i32
    return %c0_i32, %arg1 : i32, i32
  }
  func.func @transform_2(%arg0: i32, %arg1: i32) -> (i32, i32) {
    %c0_i32 = arith.constant 0 : i32
    %c0_i32_0 = arith.constant 0 : i32
    return %c0_i32, %arg1 : i32, i32
  }
  func.func @transform_3(%arg0: i32, %arg1: i32) -> (i32, i32) {
    %c0_i32 = arith.constant 0 : i32
    %c0_i32_0 = arith.constant 0 : i32
    return %c0_i32, %arg1 : i32, i32
  }
  func.func @transform_4(%arg0: i32, %arg1: i32) -> (i32, i32) {
    %c0_i32 = arith.constant 0 : i32
    return %arg0, %arg1 : i32, i32
  }
}

module attributes {stable_mosaic.version = 11 : i64} {
  func.func @_conv_matmul_kernel(%arg0: i32, %arg1: i32, %arg2: memref<256x72xbf16, #tpu.memory_space<vmem>>, %arg3: memref<72x128xbf16, #tpu.memory_space<vmem>>, %arg4: memref<1x128xf32, #tpu.memory_space<vmem>>, %arg5: memref<1x128xf32, #tpu.memory_space<vmem>>, %arg6: memref<256x128xbf16, #tpu.memory_space<vmem>>) attributes {dimension_semantics = [#tpu.dimension_semantics<parallel>, #tpu.dimension_semantics<parallel>], iteration_bounds = array<i64: 2, 1>, scalar_prefetch = 0 : i64, scratch_operands = 0 : i64, tpu.core_type = #tpu.core_type<tc>, window_params = [{transform_indices = @transform_0, window_bounds = array<i64: 256, 72>}, {transform_indices = @transform_1, window_bounds = array<i64: 72, 128>}, {transform_indices = @transform_2, window_bounds = array<i64: 1, 128>}, {transform_indices = @transform_3, window_bounds = array<i64: 1, 128>}, {transform_indices = @transform_4, window_bounds = array<i64: 256, 128>}]} {
    %c0 = arith.constant 0 : index
    %c0_0 = arith.constant 0 : index
    %0 = vector.load %arg2[%c0, %c0_0] : memref<256x72xbf16, #tpu.memory_space<vmem>>, vector<256x72xbf16>
    %c0_1 = arith.constant 0 : index
    %c0_2 = arith.constant 0 : index
    %1 = vector.load %arg3[%c0_1, %c0_2] : memref<72x128xbf16, #tpu.memory_space<vmem>>, vector<72x128xbf16>
    %cst = arith.constant dense<0.000000e+00> : vector<256x128xf32>
    %2 = tpu.matmul %0, %1, %cst {dimension_numbers = #tpu.dot_dimension_numbers<[1], [0], [0], [1], [0, 0, 1, 1], [], []>} : vector<256x72xbf16>, vector<72x128xbf16>, vector<256x128xf32> -> vector<256x128xf32>
    %c0_3 = arith.constant 0 : index
    %c0_4 = arith.constant 0 : index
    %3 = vector.load %arg4[%c0_3, %c0_4] : memref<1x128xf32, #tpu.memory_space<vmem>>, vector<1x128xf32>
    %4 = vector.broadcast %3 : vector<1x128xf32> to vector<256x128xf32>
    %5 = arith.mulf %2, %4 : vector<256x128xf32>
    %c0_5 = arith.constant 0 : index
    %c0_6 = arith.constant 0 : index
    %6 = vector.load %arg5[%c0_5, %c0_6] : memref<1x128xf32, #tpu.memory_space<vmem>>, vector<1x128xf32>
    %7 = vector.broadcast %6 : vector<1x128xf32> to vector<256x128xf32>
    %8 = arith.addf %5, %7 : vector<256x128xf32>
    %cst_7 = arith.constant 0.000000e+00 : f32
    %9 = vector.broadcast %cst_7 : f32 to vector<256x128xf32>
    %10 = arith.cmpf ogt, %8, %9 : vector<256x128xf32>
    %cst_8 = arith.constant 1.000000e-01 : f32
    %11 = vector.broadcast %cst_8 : f32 to vector<256x128xf32>
    %12 = arith.mulf %11, %8 : vector<256x128xf32>
    %13 = arith.select %10, %8, %12 : vector<256x128xi1>, vector<256x128xf32>
    %14 = arith.truncf %13 : vector<256x128xf32> to vector<256x128xbf16>
    %c0_9 = arith.constant 0 : index
    %c0_10 = arith.constant 0 : index
    %15 = vector.load %arg6[%c0_9, %c0_10] : memref<256x128xbf16, #tpu.memory_space<vmem>>, vector<256x128xbf16>
    tpu.vector_store %arg6[%c0_9, %c0_10], %14 {strides = array<i32>} : memref<256x128xbf16, #tpu.memory_space<vmem>>, vector<256x128xbf16>,
    return
  }
  func.func @transform_0(%arg0: i32, %arg1: i32) -> (i32, i32) {
    %c0_i32 = arith.constant 0 : i32
    %c0_i32_0 = arith.constant 0 : i32
    return %arg0, %c0_i32 : i32, i32
  }
  func.func @transform_1(%arg0: i32, %arg1: i32) -> (i32, i32) {
    %c0_i32 = arith.constant 0 : i32
    %c0_i32_0 = arith.constant 0 : i32
    return %c0_i32, %arg1 : i32, i32
  }
  func.func @transform_2(%arg0: i32, %arg1: i32) -> (i32, i32) {
    %c0_i32 = arith.constant 0 : i32
    %c0_i32_0 = arith.constant 0 : i32
    return %c0_i32, %arg1 : i32, i32
  }
  func.func @transform_3(%arg0: i32, %arg1: i32) -> (i32, i32) {
    %c0_i32 = arith.constant 0 : i32
    %c0_i32_0 = arith.constant 0 : i32
    return %c0_i32, %arg1 : i32, i32
  }
  func.func @transform_4(%arg0: i32, %arg1: i32) -> (i32, i32) {
    %c0_i32 = arith.constant 0 : i32
    return %arg0, %arg1 : i32, i32
  }
}

module attributes {stable_mosaic.version = 11 : i64} {
  func.func @_conv_matmul_kernel(%arg0: i32, %arg1: i32, %arg2: memref<128x72xbf16, #tpu.memory_space<vmem>>, %arg3: memref<72x128xbf16, #tpu.memory_space<vmem>>, %arg4: memref<1x128xf32, #tpu.memory_space<vmem>>, %arg5: memref<1x128xf32, #tpu.memory_space<vmem>>, %arg6: memref<128x128xbf16, #tpu.memory_space<vmem>>) attributes {dimension_semantics = [#tpu.dimension_semantics<parallel>, #tpu.dimension_semantics<parallel>], iteration_bounds = array<i64: 1, 1>, scalar_prefetch = 0 : i64, scratch_operands = 0 : i64, tpu.core_type = #tpu.core_type<tc>, window_params = [{transform_indices = @transform_0, window_bounds = array<i64: 128, 72>}, {transform_indices = @transform_1, window_bounds = array<i64: 72, 128>}, {transform_indices = @transform_2, window_bounds = array<i64: 1, 128>}, {transform_indices = @transform_3, window_bounds = array<i64: 1, 128>}, {transform_indices = @transform_4, window_bounds = array<i64: 128, 128>}]} {
    %c0 = arith.constant 0 : index
    %c0_0 = arith.constant 0 : index
    %0 = vector.load %arg2[%c0, %c0_0] : memref<128x72xbf16, #tpu.memory_space<vmem>>, vector<128x72xbf16>
    %c0_1 = arith.constant 0 : index
    %c0_2 = arith.constant 0 : index
    %1 = vector.load %arg3[%c0_1, %c0_2] : memref<72x128xbf16, #tpu.memory_space<vmem>>, vector<72x128xbf16>
    %cst = arith.constant dense<0.000000e+00> : vector<128x128xf32>
    %2 = tpu.matmul %0, %1, %cst {dimension_numbers = #tpu.dot_dimension_numbers<[1], [0], [0], [1], [0, 0, 1, 1], [], []>} : vector<128x72xbf16>, vector<72x128xbf16>, vector<128x128xf32> -> vector<128x128xf32>
    %c0_3 = arith.constant 0 : index
    %c0_4 = arith.constant 0 : index
    %3 = vector.load %arg4[%c0_3, %c0_4] : memref<1x128xf32, #tpu.memory_space<vmem>>, vector<1x128xf32>
    %4 = vector.broadcast %3 : vector<1x128xf32> to vector<128x128xf32>
    %5 = arith.mulf %2, %4 : vector<128x128xf32>
    %c0_5 = arith.constant 0 : index
    %c0_6 = arith.constant 0 : index
    %6 = vector.load %arg5[%c0_5, %c0_6] : memref<1x128xf32, #tpu.memory_space<vmem>>, vector<1x128xf32>
    %7 = vector.broadcast %6 : vector<1x128xf32> to vector<128x128xf32>
    %8 = arith.addf %5, %7 : vector<128x128xf32>
    %cst_7 = arith.constant 0.000000e+00 : f32
    %9 = vector.broadcast %cst_7 : f32 to vector<128x128xf32>
    %10 = arith.cmpf ogt, %8, %9 : vector<128x128xf32>
    %cst_8 = arith.constant 1.000000e-01 : f32
    %11 = vector.broadcast %cst_8 : f32 to vector<128x128xf32>
    %12 = arith.mulf %11, %8 : vector<128x128xf32>
    %13 = arith.select %10, %8, %12 : vector<128x128xi1>, vector<128x128xf32>
    %14 = arith.truncf %13 : vector<128x128xf32> to vector<128x128xbf16>
    %c0_9 = arith.constant 0 : index
    %c0_10 = arith.constant 0 : index
    %15 = vector.load %arg6[%c0_9, %c0_10] : memref<128x128xbf16, #tpu.memory_space<vmem>>, vector<128x128xbf16>
    tpu.vector_store %arg6[%c0_9, %c0_10], %14 {strides = array<i32>} : memref<128x128xbf16, #tpu.memory_space<vmem>>, vector<128x128xbf16>,
    return
  }
  func.func @transform_0(%arg0: i32, %arg1: i32) -> (i32, i32) {
    %c0_i32 = arith.constant 0 : i32
    %c0_i32_0 = arith.constant 0 : i32
    return %arg0, %c0_i32 : i32, i32
  }
  func.func @transform_1(%arg0: i32, %arg1: i32) -> (i32, i32) {
    %c0_i32 = arith.constant 0 : i32
    %c0_i32_0 = arith.constant 0 : i32
    return %c0_i32, %arg1 : i32, i32
  }
  func.func @transform_2(%arg0: i32, %arg1: i32) -> (i32, i32) {
    %c0_i32 = arith.constant 0 : i32
    %c0_i32_0 = arith.constant 0 : i32
    return %c0_i32, %arg1 : i32, i32
  }
  func.func @transform_3(%arg0: i32, %arg1: i32) -> (i32, i32) {
    %c0_i32 = arith.constant 0 : i32
    %c0_i32_0 = arith.constant 0 : i32
    return %c0_i32, %arg1 : i32, i32
  }
  func.func @transform_4(%arg0: i32, %arg1: i32) -> (i32, i32) {
    %c0_i32 = arith.constant 0 : i32
    return %arg0, %arg1 : i32, i32
  }
}

module attributes {stable_mosaic.version = 11 : i64} {
  func.func @_conv_matmul_kernel(%arg0: i32, %arg1: i32, %arg2: memref<128x144xbf16, #tpu.memory_space<vmem>>, %arg3: memref<144x128xbf16, #tpu.memory_space<vmem>>, %arg4: memref<1x128xf32, #tpu.memory_space<vmem>>, %arg5: memref<1x128xf32, #tpu.memory_space<vmem>>, %arg6: memref<128x128xbf16, #tpu.memory_space<vmem>>, %arg7: memref<128x128xbf16, #tpu.memory_space<vmem>>) attributes {dimension_semantics = [#tpu.dimension_semantics<parallel>, #tpu.dimension_semantics<parallel>], iteration_bounds = array<i64: 1, 1>, scalar_prefetch = 0 : i64, scratch_operands = 0 : i64, tpu.core_type = #tpu.core_type<tc>, window_params = [{transform_indices = @transform_0, window_bounds = array<i64: 128, 144>}, {transform_indices = @transform_1, window_bounds = array<i64: 144, 128>}, {transform_indices = @transform_2, window_bounds = array<i64: 1, 128>}, {transform_indices = @transform_3, window_bounds = array<i64: 1, 128>}, {transform_indices = @transform_4, window_bounds = array<i64: 128, 128>}, {transform_indices = @transform_5, window_bounds = array<i64: 128, 128>}]} {
    %c0 = arith.constant 0 : index
    %c0_0 = arith.constant 0 : index
    %0 = vector.load %arg2[%c0, %c0_0] : memref<128x144xbf16, #tpu.memory_space<vmem>>, vector<128x144xbf16>
    %c0_1 = arith.constant 0 : index
    %c0_2 = arith.constant 0 : index
    %1 = vector.load %arg3[%c0_1, %c0_2] : memref<144x128xbf16, #tpu.memory_space<vmem>>, vector<144x128xbf16>
    %cst = arith.constant dense<0.000000e+00> : vector<128x128xf32>
    %2 = tpu.matmul %0, %1, %cst {dimension_numbers = #tpu.dot_dimension_numbers<[1], [0], [0], [1], [0, 0, 1, 1], [], []>} : vector<128x144xbf16>, vector<144x128xbf16>, vector<128x128xf32> -> vector<128x128xf32>
    %c0_3 = arith.constant 0 : index
    %c0_4 = arith.constant 0 : index
    %3 = vector.load %arg4[%c0_3, %c0_4] : memref<1x128xf32, #tpu.memory_space<vmem>>, vector<1x128xf32>
    %4 = vector.broadcast %3 : vector<1x128xf32> to vector<128x128xf32>
    %5 = arith.mulf %2, %4 : vector<128x128xf32>
    %c0_5 = arith.constant 0 : index
    %c0_6 = arith.constant 0 : index
    %6 = vector.load %arg5[%c0_5, %c0_6] : memref<1x128xf32, #tpu.memory_space<vmem>>, vector<1x128xf32>
    %7 = vector.broadcast %6 : vector<1x128xf32> to vector<128x128xf32>
    %8 = arith.addf %5, %7 : vector<128x128xf32>
    %cst_7 = arith.constant 0.000000e+00 : f32
    %9 = vector.broadcast %cst_7 : f32 to vector<128x128xf32>
    %10 = arith.cmpf ogt, %8, %9 : vector<128x128xf32>
    %cst_8 = arith.constant 1.000000e-01 : f32
    %11 = vector.broadcast %cst_8 : f32 to vector<128x128xf32>
    %12 = arith.mulf %11, %8 : vector<128x128xf32>
    %13 = arith.select %10, %8, %12 : vector<128x128xi1>, vector<128x128xf32>
    %c0_9 = arith.constant 0 : index
    %c0_10 = arith.constant 0 : index
    %14 = vector.load %arg6[%c0_9, %c0_10] : memref<128x128xbf16, #tpu.memory_space<vmem>>, vector<128x128xbf16>
    %15 = arith.extf %14 : vector<128x128xbf16> to vector<128x128xf32>
    %16 = arith.addf %13, %15 : vector<128x128xf32>
    %17 = arith.truncf %16 : vector<128x128xf32> to vector<128x128xbf16>
    %c0_11 = arith.constant 0 : index
    %c0_12 = arith.constant 0 : index
    %18 = vector.load %arg7[%c0_11, %c0_12] : memref<128x128xbf16, #tpu.memory_space<vmem>>, vector<128x128xbf16>
    tpu.vector_store %arg7[%c0_11, %c0_12], %17 {strides = array<i32>} : memref<128x128xbf16, #tpu.memory_space<vmem>>, vector<128x128xbf16>,
    return
  }
  func.func @transform_0(%arg0: i32, %arg1: i32) -> (i32, i32) {
    %c0_i32 = arith.constant 0 : i32
    %c0_i32_0 = arith.constant 0 : i32
    return %arg0, %c0_i32 : i32, i32
  }
  func.func @transform_1(%arg0: i32, %arg1: i32) -> (i32, i32) {
    %c0_i32 = arith.constant 0 : i32
    %c0_i32_0 = arith.constant 0 : i32
    return %c0_i32, %arg1 : i32, i32
  }
  func.func @transform_2(%arg0: i32, %arg1: i32) -> (i32, i32) {
    %c0_i32 = arith.constant 0 : i32
    %c0_i32_0 = arith.constant 0 : i32
    return %c0_i32, %arg1 : i32, i32
  }
  func.func @transform_3(%arg0: i32, %arg1: i32) -> (i32, i32) {
    %c0_i32 = arith.constant 0 : i32
    %c0_i32_0 = arith.constant 0 : i32
    return %c0_i32, %arg1 : i32, i32
  }
  func.func @transform_4(%arg0: i32, %arg1: i32) -> (i32, i32) {
    %c0_i32 = arith.constant 0 : i32
    return %arg0, %arg1 : i32, i32
  }
  func.func @transform_5(%arg0: i32, %arg1: i32) -> (i32, i32) {
    %c0_i32 = arith.constant 0 : i32
    return %arg0, %arg1 : i32, i32
  }
}

module attributes {stable_mosaic.version = 11 : i64} {
  func.func @_conv_matmul_kernel(%arg0: i32, %arg1: i32, %arg2: memref<128x16xbf16, #tpu.memory_space<vmem>>, %arg3: memref<16x128xbf16, #tpu.memory_space<vmem>>, %arg4: memref<1x128xf32, #tpu.memory_space<vmem>>, %arg5: memref<1x128xf32, #tpu.memory_space<vmem>>, %arg6: memref<128x128xbf16, #tpu.memory_space<vmem>>) attributes {dimension_semantics = [#tpu.dimension_semantics<parallel>, #tpu.dimension_semantics<parallel>], iteration_bounds = array<i64: 1, 1>, scalar_prefetch = 0 : i64, scratch_operands = 0 : i64, tpu.core_type = #tpu.core_type<tc>, window_params = [{transform_indices = @transform_0, window_bounds = array<i64: 128, 16>}, {transform_indices = @transform_1, window_bounds = array<i64: 16, 128>}, {transform_indices = @transform_2, window_bounds = array<i64: 1, 128>}, {transform_indices = @transform_3, window_bounds = array<i64: 1, 128>}, {transform_indices = @transform_4, window_bounds = array<i64: 128, 128>}]} {
    %c0 = arith.constant 0 : index
    %c0_0 = arith.constant 0 : index
    %0 = vector.load %arg2[%c0, %c0_0] : memref<128x16xbf16, #tpu.memory_space<vmem>>, vector<128x16xbf16>
    %c0_1 = arith.constant 0 : index
    %c0_2 = arith.constant 0 : index
    %1 = vector.load %arg3[%c0_1, %c0_2] : memref<16x128xbf16, #tpu.memory_space<vmem>>, vector<16x128xbf16>
    %cst = arith.constant dense<0.000000e+00> : vector<128x128xf32>
    %2 = tpu.matmul %0, %1, %cst {dimension_numbers = #tpu.dot_dimension_numbers<[1], [0], [0], [1], [0, 0, 1, 1], [], []>} : vector<128x16xbf16>, vector<16x128xbf16>, vector<128x128xf32> -> vector<128x128xf32>
    %c0_3 = arith.constant 0 : index
    %c0_4 = arith.constant 0 : index
    %3 = vector.load %arg4[%c0_3, %c0_4] : memref<1x128xf32, #tpu.memory_space<vmem>>, vector<1x128xf32>
    %4 = vector.broadcast %3 : vector<1x128xf32> to vector<128x128xf32>
    %5 = arith.mulf %2, %4 : vector<128x128xf32>
    %c0_5 = arith.constant 0 : index
    %c0_6 = arith.constant 0 : index
    %6 = vector.load %arg5[%c0_5, %c0_6] : memref<1x128xf32, #tpu.memory_space<vmem>>, vector<1x128xf32>
    %7 = vector.broadcast %6 : vector<1x128xf32> to vector<128x128xf32>
    %8 = arith.addf %5, %7 : vector<128x128xf32>
    %cst_7 = arith.constant 0.000000e+00 : f32
    %9 = vector.broadcast %cst_7 : f32 to vector<128x128xf32>
    %10 = arith.cmpf ogt, %8, %9 : vector<128x128xf32>
    %cst_8 = arith.constant 1.000000e-01 : f32
    %11 = vector.broadcast %cst_8 : f32 to vector<128x128xf32>
    %12 = arith.mulf %11, %8 : vector<128x128xf32>
    %13 = arith.select %10, %8, %12 : vector<128x128xi1>, vector<128x128xf32>
    %14 = arith.truncf %13 : vector<128x128xf32> to vector<128x128xbf16>
    %c0_9 = arith.constant 0 : index
    %c0_10 = arith.constant 0 : index
    %15 = vector.load %arg6[%c0_9, %c0_10] : memref<128x128xbf16, #tpu.memory_space<vmem>>, vector<128x128xbf16>
    tpu.vector_store %arg6[%c0_9, %c0_10], %14 {strides = array<i32>} : memref<128x128xbf16, #tpu.memory_space<vmem>>, vector<128x128xbf16>,
    return
  }
  func.func @transform_0(%arg0: i32, %arg1: i32) -> (i32, i32) {
    %c0_i32 = arith.constant 0 : i32
    %c0_i32_0 = arith.constant 0 : i32
    return %arg0, %c0_i32 : i32, i32
  }
  func.func @transform_1(%arg0: i32, %arg1: i32) -> (i32, i32) {
    %c0_i32 = arith.constant 0 : i32
    %c0_i32_0 = arith.constant 0 : i32
    return %c0_i32, %arg1 : i32, i32
  }
  func.func @transform_2(%arg0: i32, %arg1: i32) -> (i32, i32) {
    %c0_i32 = arith.constant 0 : i32
    %c0_i32_0 = arith.constant 0 : i32
    return %c0_i32, %arg1 : i32, i32
  }
  func.func @transform_3(%arg0: i32, %arg1: i32) -> (i32, i32) {
    %c0_i32 = arith.constant 0 : i32
    %c0_i32_0 = arith.constant 0 : i32
    return %c0_i32, %arg1 : i32, i32
  }
  func.func @transform_4(%arg0: i32, %arg1: i32) -> (i32, i32) {
    %c0_i32 = arith.constant 0 : i32
    return %arg0, %arg1 : i32, i32
  }
}

module attributes {stable_mosaic.version = 11 : i64} {
  func.func @_upsample_kernel(%arg0: i32, %arg1: memref<2x8x8x8xbf16, #tpu.memory_space<vmem>>, %arg2: memref<2x8x8x8xbf16, #tpu.memory_space<vmem>>, %arg3: memref<2x8x8x8xbf16, #tpu.memory_space<vmem>>, %arg4: memref<2x8x8x8xbf16, #tpu.memory_space<vmem>>, %arg5: memref<2x8x8x8xbf16, #tpu.memory_space<vmem>>) attributes {dimension_semantics = [#tpu.dimension_semantics<arbitrary>], iteration_bounds = array<i64: 1>, scalar_prefetch = 0 : i64, scratch_operands = 0 : i64, tpu.core_type = #tpu.core_type<tc>, window_params = [{pipeline_mode = #tpu.pipeline_mode<synchronous>, transform_indices = @transform_0, window_bounds = array<i64: 2, 8, 8, 8>}, {pipeline_mode = #tpu.pipeline_mode<synchronous>, transform_indices = @transform_1, window_bounds = array<i64: 2, 8, 8, 8>}, {pipeline_mode = #tpu.pipeline_mode<synchronous>, transform_indices = @transform_2, window_bounds = array<i64: 2, 8, 8, 8>}, {pipeline_mode = #tpu.pipeline_mode<synchronous>, transform_indices = @transform_3, window_bounds = array<i64: 2, 8, 8, 8>}, {pipeline_mode = #tpu.pipeline_mode<synchronous>, transform_indices = @transform_4, window_bounds = array<i64: 2, 8, 8, 8>}]} {
    %c0 = arith.constant 0 : index
    %c0_0 = arith.constant 0 : index
    %c0_1 = arith.constant 0 : index
    %c0_2 = arith.constant 0 : index
    %0 = vector.load %arg1[%c0, %c0_0, %c0_1, %c0_2] : memref<2x8x8x8xbf16, #tpu.memory_space<vmem>>, vector<2x8x8x8xbf16>
    %1 = arith.extf %0 : vector<2x8x8x8xbf16> to vector<2x8x8x8xf32>
    %2 = vector.extract_strided_slice %1 {offsets = [0, 0, 0, 0], sizes = [2, 1, 8, 8], strides = [1, 1, 1, 1]} : vector<2x8x8x8xf32> to vector<2x1x8x8xf32>
    %3 = vector.extract_strided_slice %1 {offsets = [0, 0, 0, 0], sizes = [2, 7, 8, 8], strides = [1, 1, 1, 1]} : vector<2x8x8x8xf32> to vector<2x7x8x8xf32>
    %4 = tpu.concatenate %2, %3 in 1 : vector<2x1x8x8xf32>, vector<2x7x8x8xf32> -> vector<2x8x8x8xf32>
    %5 = vector.extract_strided_slice %1 {offsets = [0, 1, 0, 0], sizes = [2, 7, 8, 8], strides = [1, 1, 1, 1]} : vector<2x8x8x8xf32> to vector<2x7x8x8xf32>
    %6 = vector.extract_strided_slice %1 {offsets = [0, 7, 0, 0], sizes = [2, 1, 8, 8], strides = [1, 1, 1, 1]} : vector<2x8x8x8xf32> to vector<2x1x8x8xf32>
    %7 = tpu.concatenate %5, %6 in 1 : vector<2x7x8x8xf32>, vector<2x1x8x8xf32> -> vector<2x8x8x8xf32>
    %cst = arith.constant 2.500000e-01 : f32
    %8 = vector.broadcast %cst : f32 to vector<2x8x8x8xf32>
    %9 = arith.mulf %8, %4 : vector<2x8x8x8xf32>
    %cst_3 = arith.constant 7.500000e-01 : f32
    %10 = vector.broadcast %cst_3 : f32 to vector<2x8x8x8xf32>
    %11 = arith.mulf %10, %1 : vector<2x8x8x8xf32>
    %12 = arith.addf %9, %11 : vector<2x8x8x8xf32>
    %cst_4 = arith.constant 7.500000e-01 : f32
    %13 = vector.broadcast %cst_4 : f32 to vector<2x8x8x8xf32>
    %14 = arith.mulf %13, %1 : vector<2x8x8x8xf32>
    %cst_5 = arith.constant 2.500000e-01 : f32
    %15 = vector.broadcast %cst_5 : f32 to vector<2x8x8x8xf32>
    %16 = arith.mulf %15, %7 : vector<2x8x8x8xf32>
    %17 = arith.addf %14, %16 : vector<2x8x8x8xf32>
    %18 = vector.extract_strided_slice %12 {offsets = [0, 0, 0, 0], sizes = [2, 8, 1, 8], strides = [1, 1, 1, 1]} : vector<2x8x8x8xf32> to vector<2x8x1x8xf32>
    %19 = vector.extract_strided_slice %12 {offsets = [0, 0, 0, 0], sizes = [2, 8, 7, 8], strides = [1, 1, 1, 1]} : vector<2x8x8x8xf32> to vector<2x8x7x8xf32>
    %20 = tpu.concatenate %18, %19 in 2 : vector<2x8x1x8xf32>, vector<2x8x7x8xf32> -> vector<2x8x8x8xf32>
    %21 = vector.extract_strided_slice %12 {offsets = [0, 0, 1, 0], sizes = [2, 8, 7, 8], strides = [1, 1, 1, 1]} : vector<2x8x8x8xf32> to vector<2x8x7x8xf32>
    %22 = vector.extract_strided_slice %12 {offsets = [0, 0, 7, 0], sizes = [2, 8, 1, 8], strides = [1, 1, 1, 1]} : vector<2x8x8x8xf32> to vector<2x8x1x8xf32>
    %23 = tpu.concatenate %21, %22 in 2 : vector<2x8x7x8xf32>, vector<2x8x1x8xf32> -> vector<2x8x8x8xf32>
    %cst_6 = arith.constant 2.500000e-01 : f32
    %24 = vector.broadcast %cst_6 : f32 to vector<2x8x8x8xf32>
    %25 = arith.mulf %24, %20 : vector<2x8x8x8xf32>
    %cst_7 = arith.constant 7.500000e-01 : f32
    %26 = vector.broadcast %cst_7 : f32 to vector<2x8x8x8xf32>
    %27 = arith.mulf %26, %12 : vector<2x8x8x8xf32>
    %28 = arith.addf %25, %27 : vector<2x8x8x8xf32>
    %cst_8 = arith.constant 7.500000e-01 : f32
    %29 = vector.broadcast %cst_8 : f32 to vector<2x8x8x8xf32>
    %30 = arith.mulf %29, %12 : vector<2x8x8x8xf32>
    %cst_9 = arith.constant 2.500000e-01 : f32
    %31 = vector.broadcast %cst_9 : f32 to vector<2x8x8x8xf32>
    %32 = arith.mulf %31, %23 : vector<2x8x8x8xf32>
    %33 = arith.addf %30, %32 : vector<2x8x8x8xf32>
    %34 = vector.extract_strided_slice %17 {offsets = [0, 0, 0, 0], sizes = [2, 8, 1, 8], strides = [1, 1, 1, 1]} : vector<2x8x8x8xf32> to vector<2x8x1x8xf32>
    %35 = vector.extract_strided_slice %17 {offsets = [0, 0, 0, 0], sizes = [2, 8, 7, 8], strides = [1, 1, 1, 1]} : vector<2x8x8x8xf32> to vector<2x8x7x8xf32>
    %36 = tpu.concatenate %34, %35 in 2 : vector<2x8x1x8xf32>, vector<2x8x7x8xf32> -> vector<2x8x8x8xf32>
    %37 = vector.extract_strided_slice %17 {offsets = [0, 0, 1, 0], sizes = [2, 8, 7, 8], strides = [1, 1, 1, 1]} : vector<2x8x8x8xf32> to vector<2x8x7x8xf32>
    %38 = vector.extract_strided_slice %17 {offsets = [0, 0, 7, 0], sizes = [2, 8, 1, 8], strides = [1, 1, 1, 1]} : vector<2x8x8x8xf32> to vector<2x8x1x8xf32>
    %39 = tpu.concatenate %37, %38 in 2 : vector<2x8x7x8xf32>, vector<2x8x1x8xf32> -> vector<2x8x8x8xf32>
    %cst_10 = arith.constant 2.500000e-01 : f32
    %40 = vector.broadcast %cst_10 : f32 to vector<2x8x8x8xf32>
    %41 = arith.mulf %40, %36 : vector<2x8x8x8xf32>
    %cst_11 = arith.constant 7.500000e-01 : f32
    %42 = vector.broadcast %cst_11 : f32 to vector<2x8x8x8xf32>
    %43 = arith.mulf %42, %17 : vector<2x8x8x8xf32>
    %44 = arith.addf %41, %43 : vector<2x8x8x8xf32>
    %cst_12 = arith.constant 7.500000e-01 : f32
    %45 = vector.broadcast %cst_12 : f32 to vector<2x8x8x8xf32>
    %46 = arith.mulf %45, %17 : vector<2x8x8x8xf32>
    %cst_13 = arith.constant 2.500000e-01 : f32
    %47 = vector.broadcast %cst_13 : f32 to vector<2x8x8x8xf32>
    %48 = arith.mulf %47, %39 : vector<2x8x8x8xf32>
    %49 = arith.addf %46, %48 : vector<2x8x8x8xf32>
    %50 = arith.truncf %28 : vector<2x8x8x8xf32> to vector<2x8x8x8xbf16>
    %c0_14 = arith.constant 0 : index
    %c0_15 = arith.constant 0 : index
    %c0_16 = arith.constant 0 : index
    %c0_17 = arith.constant 0 : index
    %51 = vector.load %arg2[%c0_14, %c0_15, %c0_16, %c0_17] : memref<2x8x8x8xbf16, #tpu.memory_space<vmem>>, vector<2x8x8x8xbf16>
    tpu.vector_store %arg2[%c0_14, %c0_15, %c0_16, %c0_17], %50 {strides = array<i32>} : memref<2x8x8x8xbf16, #tpu.memory_space<vmem>>, vector<2x8x8x8xbf16>,
    %52 = arith.truncf %33 : vector<2x8x8x8xf32> to vector<2x8x8x8xbf16>
    %c0_18 = arith.constant 0 : index
    %c0_19 = arith.constant 0 : index
    %c0_20 = arith.constant 0 : index
    %c0_21 = arith.constant 0 : index
    %53 = vector.load %arg3[%c0_18, %c0_19, %c0_20, %c0_21] : memref<2x8x8x8xbf16, #tpu.memory_space<vmem>>, vector<2x8x8x8xbf16>
    tpu.vector_store %arg3[%c0_18, %c0_19, %c0_20, %c0_21], %52 {strides = array<i32>} : memref<2x8x8x8xbf16, #tpu.memory_space<vmem>>, vector<2x8x8x8xbf16>,
    %54 = arith.truncf %44 : vector<2x8x8x8xf32> to vector<2x8x8x8xbf16>
    %c0_22 = arith.constant 0 : index
    %c0_23 = arith.constant 0 : index
    %c0_24 = arith.constant 0 : index
    %c0_25 = arith.constant 0 : index
    %55 = vector.load %arg4[%c0_22, %c0_23, %c0_24, %c0_25] : memref<2x8x8x8xbf16, #tpu.memory_space<vmem>>, vector<2x8x8x8xbf16>
    tpu.vector_store %arg4[%c0_22, %c0_23, %c0_24, %c0_25], %54 {strides = array<i32>} : memref<2x8x8x8xbf16, #tpu.memory_space<vmem>>, vector<2x8x8x8xbf16>,
    %56 = arith.truncf %49 : vector<2x8x8x8xf32> to vector<2x8x8x8xbf16>
    %c0_26 = arith.constant 0 : index
    %c0_27 = arith.constant 0 : index
    %c0_28 = arith.constant 0 : index
    %c0_29 = arith.constant 0 : index
    %57 = vector.load %arg5[%c0_26, %c0_27, %c0_28, %c0_29] : memref<2x8x8x8xbf16, #tpu.memory_space<vmem>>, vector<2x8x8x8xbf16>
    tpu.vector_store %arg5[%c0_26, %c0_27, %c0_28, %c0_29], %56 {strides = array<i32>} : memref<2x8x8x8xbf16, #tpu.memory_space<vmem>>, vector<2x8x8x8xbf16>,
    return
  }
  func.func @transform_0(%arg0: i32) -> (i32, i32, i32, i32) {
    %c0_i32 = arith.constant 0 : i32
    %c0_i32_0 = arith.constant 0 : i32
    %c0_i32_1 = arith.constant 0 : i32
    %c0_i32_2 = arith.constant 0 : i32
    %c0_i32_3 = arith.constant 0 : i32
    return %c0_i32, %c0_i32_0, %c0_i32_1, %c0_i32_2 : i32, i32, i32, i32
  }
  func.func @transform_1(%arg0: i32) -> (i32, i32, i32, i32) {
    %c0_i32 = arith.constant 0 : i32
    %c0_i32_0 = arith.constant 0 : i32
    %c0_i32_1 = arith.constant 0 : i32
    %c0_i32_2 = arith.constant 0 : i32
    %c0_i32_3 = arith.constant 0 : i32
    return %c0_i32, %c0_i32_0, %c0_i32_1, %c0_i32_2 : i32, i32, i32, i32
  }
  func.func @transform_2(%arg0: i32) -> (i32, i32, i32, i32) {
    %c0_i32 = arith.constant 0 : i32
    %c0_i32_0 = arith.constant 0 : i32
    %c0_i32_1 = arith.constant 0 : i32
    %c0_i32_2 = arith.constant 0 : i32
    %c0_i32_3 = arith.constant 0 : i32
    return %c0_i32, %c0_i32_0, %c0_i32_1, %c0_i32_2 : i32, i32, i32, i32
  }
  func.func @transform_3(%arg0: i32) -> (i32, i32, i32, i32) {
    %c0_i32 = arith.constant 0 : i32
    %c0_i32_0 = arith.constant 0 : i32
    %c0_i32_1 = arith.constant 0 : i32
    %c0_i32_2 = arith.constant 0 : i32
    %c0_i32_3 = arith.constant 0 : i32
    return %c0_i32, %c0_i32_0, %c0_i32_1, %c0_i32_2 : i32, i32, i32, i32
  }
  func.func @transform_4(%arg0: i32) -> (i32, i32, i32, i32) {
    %c0_i32 = arith.constant 0 : i32
    %c0_i32_0 = arith.constant 0 : i32
    %c0_i32_1 = arith.constant 0 : i32
    %c0_i32_2 = arith.constant 0 : i32
    %c0_i32_3 = arith.constant 0 : i32
    return %c0_i32, %c0_i32_0, %c0_i32_1, %c0_i32_2 : i32, i32, i32, i32
  }
}

module attributes {stable_mosaic.version = 11 : i64} {
  func.func @_conv_matmul_kernel(%arg0: i32, %arg1: i32, %arg2: memref<128x16xbf16, #tpu.memory_space<vmem>>, %arg3: memref<16x128xbf16, #tpu.memory_space<vmem>>, %arg4: memref<1x128xf32, #tpu.memory_space<vmem>>, %arg5: memref<1x128xf32, #tpu.memory_space<vmem>>, %arg6: memref<1x128xf32, #tpu.memory_space<vmem>>, %arg7: memref<128x128xf32, #tpu.memory_space<vmem>>, %arg8: memref<1x128xf32, #tpu.memory_space<vmem>>, %arg9: memref<128x128xf32, #tpu.memory_space<vmem>>) attributes {dimension_semantics = [#tpu.dimension_semantics<parallel>, #tpu.dimension_semantics<parallel>], iteration_bounds = array<i64: 1, 1>, scalar_prefetch = 0 : i64, scratch_operands = 0 : i64, tpu.core_type = #tpu.core_type<tc>, window_params = [{transform_indices = @transform_0, window_bounds = array<i64: 128, 16>}, {transform_indices = @transform_1, window_bounds = array<i64: 16, 128>}, {transform_indices = @transform_2, window_bounds = array<i64: 1, 128>}, {transform_indices = @transform_3, window_bounds = array<i64: 1, 128>}, {transform_indices = @transform_4, window_bounds = array<i64: 1, 128>}, {transform_indices = @transform_5, window_bounds = array<i64: 128, 128>}, {transform_indices = @transform_6, window_bounds = array<i64: 1, 128>}, {transform_indices = @transform_7, window_bounds = array<i64: 128, 128>}]} {
    %c0 = arith.constant 0 : index
    %c0_0 = arith.constant 0 : index
    %0 = vector.load %arg2[%c0, %c0_0] : memref<128x16xbf16, #tpu.memory_space<vmem>>, vector<128x16xbf16>
    %c0_1 = arith.constant 0 : index
    %c0_2 = arith.constant 0 : index
    %1 = vector.load %arg3[%c0_1, %c0_2] : memref<16x128xbf16, #tpu.memory_space<vmem>>, vector<16x128xbf16>
    %cst = arith.constant dense<0.000000e+00> : vector<128x128xf32>
    %2 = tpu.matmul %0, %1, %cst {dimension_numbers = #tpu.dot_dimension_numbers<[1], [0], [0], [1], [0, 0, 1, 1], [], []>} : vector<128x16xbf16>, vector<16x128xbf16>, vector<128x128xf32> -> vector<128x128xf32>
    %c0_3 = arith.constant 0 : index
    %c0_4 = arith.constant 0 : index
    %3 = vector.load %arg4[%c0_3, %c0_4] : memref<1x128xf32, #tpu.memory_space<vmem>>, vector<1x128xf32>
    %4 = vector.broadcast %3 : vector<1x128xf32> to vector<128x128xf32>
    %5 = arith.mulf %2, %4 : vector<128x128xf32>
    %c0_5 = arith.constant 0 : index
    %c0_6 = arith.constant 0 : index
    %6 = vector.load %arg5[%c0_5, %c0_6] : memref<1x128xf32, #tpu.memory_space<vmem>>, vector<1x128xf32>
    %7 = vector.broadcast %6 : vector<1x128xf32> to vector<128x128xf32>
    %8 = arith.addf %5, %7 : vector<128x128xf32>
    %c0_7 = arith.constant 0 : index
    %c0_8 = arith.constant 0 : index
    %9 = vector.load %arg6[%c0_7, %c0_8] : memref<1x128xf32, #tpu.memory_space<vmem>>, vector<1x128xf32>
    %c0_9 = arith.constant 0 : index
    %c0_10 = arith.constant 0 : index
    %10 = vector.load %arg7[%c0_9, %c0_10] : memref<128x128xf32, #tpu.memory_space<vmem>>, vector<128x128xf32>
    %c0_11 = arith.constant 0 : index
    %c0_12 = arith.constant 0 : index
    %11 = vector.load %arg8[%c0_11, %c0_12] : memref<1x128xf32, #tpu.memory_space<vmem>>, vector<1x128xf32>
    %cst_13 = arith.constant 0.000000e+00 : f32
    %12 = vector.broadcast %cst_13 : f32 to vector<1x128xf32>
    %13 = arith.cmpf ogt, %9, %12 : vector<1x128xf32>
    %cst_14 = arith.constant 0.000000e+00 : f32
    %14 = vector.broadcast %cst_14 : f32 to vector<128x128xf32>
    %15 = arith.subf %14, %8 : vector<128x128xf32>
    %16 = vector.shape_cast %13 : vector<1x128xi1> to vector<1x128xi1>
    %17 = vector.broadcast %16 : vector<1x128xi1> to vector<128x128xi1>
    %18 = arith.select %17, %8, %15 : vector<128x128xi1>, vector<128x128xf32>
    %19 = math.exp %18 : vector<128x128xf32>
    %cst_15 = arith.constant 1.000000e+00 : f32
    %20 = vector.broadcast %cst_15 : f32 to vector<128x128xf32>
    %21 = arith.addf %20, %19 : vector<128x128xf32>
    %cst_16 = arith.constant 1.000000e+00 : f32
    %22 = vector.broadcast %cst_16 : f32 to vector<128x128xf32>
    %23 = arith.divf %22, %21 : vector<128x128xf32>
    %24 = vector.shape_cast %13 : vector<1x128xi1> to vector<1x128xi1>
    %25 = vector.broadcast %24 : vector<1x128xi1> to vector<128x128xi1>
    %26 = arith.select %25, %19, %23 : vector<128x128xi1>, vector<128x128xf32>
    %27 = arith.addf %26, %10 : vector<128x128xf32>
    %28 = vector.broadcast %11 : vector<1x128xf32> to vector<128x128xf32>
    %29 = arith.mulf %27, %28 : vector<128x128xf32>
    %c0_17 = arith.constant 0 : index
    %c0_18 = arith.constant 0 : index
    %30 = vector.load %arg9[%c0_17, %c0_18] : memref<128x128xf32, #tpu.memory_space<vmem>>, vector<128x128xf32>
    tpu.vector_store %arg9[%c0_17, %c0_18], %29 {strides = array<i32>} : memref<128x128xf32, #tpu.memory_space<vmem>>, vector<128x128xf32>,
    return
  }
  func.func @transform_0(%arg0: i32, %arg1: i32) -> (i32, i32) {
    %c0_i32 = arith.constant 0 : i32
    %c0_i32_0 = arith.constant 0 : i32
    return %arg0, %c0_i32 : i32, i32
  }
  func.func @transform_1(%arg0: i32, %arg1: i32) -> (i32, i32) {
    %c0_i32 = arith.constant 0 : i32
    %c0_i32_0 = arith.constant 0 : i32
    return %c0_i32, %arg1 : i32, i32
  }
  func.func @transform_2(%arg0: i32, %arg1: i32) -> (i32, i32) {
    %c0_i32 = arith.constant 0 : i32
    %c0_i32_0 = arith.constant 0 : i32
    return %c0_i32, %arg1 : i32, i32
  }
  func.func @transform_3(%arg0: i32, %arg1: i32) -> (i32, i32) {
    %c0_i32 = arith.constant 0 : i32
    %c0_i32_0 = arith.constant 0 : i32
    return %c0_i32, %arg1 : i32, i32
  }
  func.func @transform_4(%arg0: i32, %arg1: i32) -> (i32, i32) {
    %c0_i32 = arith.constant 0 : i32
    %c0_i32_0 = arith.constant 0 : i32
    return %c0_i32, %arg1 : i32, i32
  }
  func.func @transform_5(%arg0: i32, %arg1: i32) -> (i32, i32) {
    %c0_i32 = arith.constant 0 : i32
    return %arg0, %arg1 : i32, i32
  }
  func.func @transform_6(%arg0: i32, %arg1: i32) -> (i32, i32) {
    %c0_i32 = arith.constant 0 : i32
    %c0_i32_0 = arith.constant 0 : i32
    return %c0_i32, %arg1 : i32, i32
  }
  func.func @transform_7(%arg0: i32, %arg1: i32) -> (i32, i32) {
    %c0_i32 = arith.constant 0 : i32
    return %arg0, %arg1 : i32, i32
  }
}

module attributes {stable_mosaic.version = 11 : i64} {
  func.func @_conv_matmul_kernel(%arg0: i32, %arg1: i32, %arg2: memref<256x144xbf16, #tpu.memory_space<vmem>>, %arg3: memref<144x128xbf16, #tpu.memory_space<vmem>>, %arg4: memref<1x128xf32, #tpu.memory_space<vmem>>, %arg5: memref<1x128xf32, #tpu.memory_space<vmem>>, %arg6: memref<1x128xf32, #tpu.memory_space<vmem>>, %arg7: memref<256x128xf32, #tpu.memory_space<vmem>>, %arg8: memref<1x128xf32, #tpu.memory_space<vmem>>, %arg9: memref<256x128xf32, #tpu.memory_space<vmem>>) attributes {dimension_semantics = [#tpu.dimension_semantics<parallel>, #tpu.dimension_semantics<parallel>], iteration_bounds = array<i64: 2, 1>, scalar_prefetch = 0 : i64, scratch_operands = 0 : i64, tpu.core_type = #tpu.core_type<tc>, window_params = [{transform_indices = @transform_0, window_bounds = array<i64: 256, 144>}, {transform_indices = @transform_1, window_bounds = array<i64: 144, 128>}, {transform_indices = @transform_2, window_bounds = array<i64: 1, 128>}, {transform_indices = @transform_3, window_bounds = array<i64: 1, 128>}, {transform_indices = @transform_4, window_bounds = array<i64: 1, 128>}, {transform_indices = @transform_5, window_bounds = array<i64: 256, 128>}, {transform_indices = @transform_6, window_bounds = array<i64: 1, 128>}, {transform_indices = @transform_7, window_bounds = array<i64: 256, 128>}]} {
    %c0 = arith.constant 0 : index
    %c0_0 = arith.constant 0 : index
    %0 = vector.load %arg2[%c0, %c0_0] : memref<256x144xbf16, #tpu.memory_space<vmem>>, vector<256x144xbf16>
    %c0_1 = arith.constant 0 : index
    %c0_2 = arith.constant 0 : index
    %1 = vector.load %arg3[%c0_1, %c0_2] : memref<144x128xbf16, #tpu.memory_space<vmem>>, vector<144x128xbf16>
    %cst = arith.constant dense<0.000000e+00> : vector<256x128xf32>
    %2 = tpu.matmul %0, %1, %cst {dimension_numbers = #tpu.dot_dimension_numbers<[1], [0], [0], [1], [0, 0, 1, 1], [], []>} : vector<256x144xbf16>, vector<144x128xbf16>, vector<256x128xf32> -> vector<256x128xf32>
    %c0_3 = arith.constant 0 : index
    %c0_4 = arith.constant 0 : index
    %3 = vector.load %arg4[%c0_3, %c0_4] : memref<1x128xf32, #tpu.memory_space<vmem>>, vector<1x128xf32>
    %4 = vector.broadcast %3 : vector<1x128xf32> to vector<256x128xf32>
    %5 = arith.mulf %2, %4 : vector<256x128xf32>
    %c0_5 = arith.constant 0 : index
    %c0_6 = arith.constant 0 : index
    %6 = vector.load %arg5[%c0_5, %c0_6] : memref<1x128xf32, #tpu.memory_space<vmem>>, vector<1x128xf32>
    %7 = vector.broadcast %6 : vector<1x128xf32> to vector<256x128xf32>
    %8 = arith.addf %5, %7 : vector<256x128xf32>
    %c0_7 = arith.constant 0 : index
    %c0_8 = arith.constant 0 : index
    %9 = vector.load %arg6[%c0_7, %c0_8] : memref<1x128xf32, #tpu.memory_space<vmem>>, vector<1x128xf32>
    %c0_9 = arith.constant 0 : index
    %c0_10 = arith.constant 0 : index
    %10 = vector.load %arg7[%c0_9, %c0_10] : memref<256x128xf32, #tpu.memory_space<vmem>>, vector<256x128xf32>
    %c0_11 = arith.constant 0 : index
    %c0_12 = arith.constant 0 : index
    %11 = vector.load %arg8[%c0_11, %c0_12] : memref<1x128xf32, #tpu.memory_space<vmem>>, vector<1x128xf32>
    %cst_13 = arith.constant 0.000000e+00 : f32
    %12 = vector.broadcast %cst_13 : f32 to vector<1x128xf32>
    %13 = arith.cmpf ogt, %9, %12 : vector<1x128xf32>
    %cst_14 = arith.constant 0.000000e+00 : f32
    %14 = vector.broadcast %cst_14 : f32 to vector<256x128xf32>
    %15 = arith.subf %14, %8 : vector<256x128xf32>
    %16 = vector.shape_cast %13 : vector<1x128xi1> to vector<1x128xi1>
    %17 = vector.broadcast %16 : vector<1x128xi1> to vector<256x128xi1>
    %18 = arith.select %17, %8, %15 : vector<256x128xi1>, vector<256x128xf32>
    %19 = math.exp %18 : vector<256x128xf32>
    %cst_15 = arith.constant 1.000000e+00 : f32
    %20 = vector.broadcast %cst_15 : f32 to vector<256x128xf32>
    %21 = arith.addf %20, %19 : vector<256x128xf32>
    %cst_16 = arith.constant 1.000000e+00 : f32
    %22 = vector.broadcast %cst_16 : f32 to vector<256x128xf32>
    %23 = arith.divf %22, %21 : vector<256x128xf32>
    %24 = vector.shape_cast %13 : vector<1x128xi1> to vector<1x128xi1>
    %25 = vector.broadcast %24 : vector<1x128xi1> to vector<256x128xi1>
    %26 = arith.select %25, %19, %23 : vector<256x128xi1>, vector<256x128xf32>
    %27 = arith.addf %26, %10 : vector<256x128xf32>
    %28 = vector.broadcast %11 : vector<1x128xf32> to vector<256x128xf32>
    %29 = arith.mulf %27, %28 : vector<256x128xf32>
    %c0_17 = arith.constant 0 : index
    %c0_18 = arith.constant 0 : index
    %30 = vector.load %arg9[%c0_17, %c0_18] : memref<256x128xf32, #tpu.memory_space<vmem>>, vector<256x128xf32>
    tpu.vector_store %arg9[%c0_17, %c0_18], %29 {strides = array<i32>} : memref<256x128xf32, #tpu.memory_space<vmem>>, vector<256x128xf32>,
    return
  }
  func.func @transform_0(%arg0: i32, %arg1: i32) -> (i32, i32) {
    %c0_i32 = arith.constant 0 : i32
    %c0_i32_0 = arith.constant 0 : i32
    return %arg0, %c0_i32 : i32, i32
  }
  func.func @transform_1(%arg0: i32, %arg1: i32) -> (i32, i32) {
    %c0_i32 = arith.constant 0 : i32
    %c0_i32_0 = arith.constant 0 : i32
    return %c0_i32, %arg1 : i32, i32
  }
  func.func @transform_2(%arg0: i32, %arg1: i32) -> (i32, i32) {
    %c0_i32 = arith.constant 0 : i32
    %c0_i32_0 = arith.constant 0 : i32
    return %c0_i32, %arg1 : i32, i32
  }
  func.func @transform_3(%arg0: i32, %arg1: i32) -> (i32, i32) {
    %c0_i32 = arith.constant 0 : i32
    %c0_i32_0 = arith.constant 0 : i32
    return %c0_i32, %arg1 : i32, i32
  }
  func.func @transform_4(%arg0: i32, %arg1: i32) -> (i32, i32) {
    %c0_i32 = arith.constant 0 : i32
    %c0_i32_0 = arith.constant 0 : i32
    return %c0_i32, %arg1 : i32, i32
  }
  func.func @transform_5(%arg0: i32, %arg1: i32) -> (i32, i32) {
    %c0_i32 = arith.constant 0 : i32
    return %arg0, %arg1 : i32, i32
  }
  func.func @transform_6(%arg0: i32, %arg1: i32) -> (i32, i32) {
    %c0_i32 = arith.constant 0 : i32
    %c0_i32_0 = arith.constant 0 : i32
    return %c0_i32, %arg1 : i32, i32
  }
  func.func @transform_7(%arg0: i32, %arg1: i32) -> (i32, i32) {
    %c0_i32 = arith.constant 0 : i32
    return %arg0, %arg1 : i32, i32
  }
}

</mosaic_0001>

<bundles_post_ra>
// kernel: darknet_forward.8
= control target key start
LH: loop header
LB: loop body
LE: loop exit
PB: predicated region body
PF: predicated region fallthrough
CT: control target
= control target key end

     0   :  { %s1428_s15 = smov 0   ;;  %s1430_s16 = smov 0   ;;  %s1605_s0 = inlined_call_operand.vmem [shape: bf16[512,36], index: 0, kind: input, shape index: {}]   ;;  %s1606_s1 = inlined_call_operand.vmem [shape: bf16[36,128], index: 1, kind: input, shape index: {}]   ;;  %s1607_s2 = inlined_call_operand.vmem [shape: f32[1,128], index: 2, kind: input, shape index: {}]   ;;  %s1608_s3 = inlined_call_operand.vmem [shape: f32[1,128], index: 3, kind: input, shape index: {}]   ;;  %s1609_s4 = inlined_call_operand.vmem [shape: bf16[512,128], index: 4, kind: output, shape index: {}]  }
   0x1   :  { %s1432_s17 = smov 0  }
   0x2 LB: > { %s26_s18 = sadd.s32 1, %s1397_s16  ;;  %p1068_p0 = scmp.ge.s32.totalorder %s1401_s17, 1  ;;  %s1401_s17 = sphi %s1432_s17, %s14_s17   ;;  %s1397_s16 = sphi %s1430_s16, %s1611_s16   ;;  %s1393_s15 = sphi %s1428_s15, %s1610_s15  }
   0x3   : > { %p28_p1 = scmp.ge.s32.totalorder %s26_s18, 2  ;;  %p202_p2 = scmp.lt.s32.totalorder %s1401_s17, 3 }
   0x5   : > { %s1613_s18 = smov (%p28_p1, %s26_s18), 0  ;;  %p203_p3 = pnand %p1068_p0, %p202_p2 }
   0x6   : > { %s1069_s23 = sshll.u32 (!%p203_p3), %s1393_s15, 5 }
   0x7   : > { %206 = sbr.rel (%p203_p3) target bundleno = 270 (0x10e), region = 36  ;;  %p242_p4 = scmp.lt.s32.totalorder (!%p203_p3), %s1069_s23, 63 }
   0xc   : > { %v1360_v0 = vld [vmem:[%s1606_s1 + $0x10] ss:$0 sps:$4 sm:$0x33]   ;;  %vm448_vm0 = vcmask 1041408   ;;  %v1361_v1 = vld [vmem:[%s1606_s1 + $0x8] sm:$0xff]   ;;  %v1362_v3 = vld [vmem:[%s1606_s1] sm:$0xff]  }
   0xd   : > { %1334 = vmatprep.subr.msk.bf16.mxu0 %vm448_vm0, %v1360_v0  ;;  %1335 = vmatprep.subr.msk.bf16.mxu1 %vm448_vm0, %v1360_v0  ;;  %v450_v2 = vsel %vm448_vm0, %v1360_v0, 0  ;;  %s1615_s23 = smov (!%p242_p4, %s1069_s23), 63  ;;  %vm399_vm1 = vcmask 293888   ;;  %v1500_v20 = vld [vmem:[%s1607_s2] ss:$0 sm:$0xff] }
   0xe   : > { %1291 = vmatpush3.bf16.msra.mxu0 %v450_v2  ;;  %1331 = vmatpush3.bf16.msra.mxu1 %v450_v2  ;;  %s1070_s26 = sshll.u32 %s1615_s23, 2  ;;  %v1505_v22 = vld [vmem:[%s1608_s3] ss:$0 sm:$0xff] }
   0xf   : > { %1292 = vmatprep.subr.bf16.mxu0 %v1361_v1  ;;  %1329 = vmatprep.subr.bf16.mxu1 %v1361_v1  ;;  %s1463_s29 = scalar_lea.vmem %s1605_s0, %s1070_s26  ;;  %s1530_s10 = scalar_lea.vmem %s1609_s4, %s1070_s26 }
  0x10   : > { %v1363_v4 = vld [vmem:[%s1463_s29] sm:$0xff]   ;;  %v1365_v6 = vld [vmem:[%s1463_s29 + $0x8] sm:$0xff]   ;;  %v1367_v8 = vld [vmem:[%s1463_s29 + $0x10] sm:$0xff]  }
  0x11   : > { %v1364_v5 = vld [vmem:[%s1463_s29 + $0x40] sm:$0xff]   ;;  %1296 = vmatprep.mubr.msk.bf16.mxu0 %vm399_vm1, %v1363_v4  ;;  %v1366_v7 = vld [vmem:[%s1463_s29 + $0x48] sm:$0xff]   ;;  %v1368_v9 = vld [vmem:[%s1463_s29 + $0x50] sm:$0xff]  }
  0x12   : > { %1293 = vmatpush3.bf16.msra.mxu0 %v1361_v1  ;;  %1332 = vmatpush3.bf16.msra.mxu1 %v1361_v1  ;;  %v1369_v10 = vld [vmem:[%s1463_s29 + $0x18] sm:$0xff]   ;;  %v1371_v12 = vld [vmem:[%s1463_s29 + $0x20] sm:$0xff]   ;;  %v1373_v14 = vld [vmem:[%s1463_s29 + $0x28] sm:$0xff]  }
  0x13   : > { %1294 = vmatprep.subr.bf16.mxu0 %v1362_v3  ;;  %1330 = vmatprep.subr.bf16.mxu1 %v1362_v3  ;;  %v1370_v11 = vld [vmem:[%s1463_s29 + $0x58] sm:$0xff]   ;;  %v1372_v13 = vld [vmem:[%s1463_s29 + $0x60] sm:$0xff]   ;;  %v1374_v15 = vld [vmem:[%s1463_s29 + $0x68] sm:$0xff]  }
  0x14   : > { %1312 = vmatprep.mubr.msk.bf16.mxu1 %vm399_vm1, %v1364_v5  ;;  %v1375_v16 = vld [vmem:[%s1463_s29 + $0x30] sm:$0xff]   ;;  %v1377_v18 = vld [vmem:[%s1463_s29 + $0x38] sm:$0xff]  }
  0x15   : > { %v1376_v17 = vld [vmem:[%s1463_s29 + $0x70] sm:$0xff]   ;;  %v1378_v19 = vld [vmem:[%s1463_s29 + $0x78] sm:$0xff]  }
  0x16   : > { %1295 = vmatpush3.bf16.msra.mxu0 %v1362_v3  ;;  %1333 = vmatpush3.bf16.msra.mxu1 %v1362_v3 }
  0x19   : > { %1297 = vmatmul.mubr.msk.bf16.vlgmr.msra.gmra.mxu0 %vm399_vm1, %v1365_v6  ;;  %1313 = vmatmul.mubr.msk.bf16.vlgmr.msra.gmra.mxu1 %vm399_vm1, %v1366_v7 }
  0x1a   : > { %1300 = vmatprep.mubr.msk.bf16.mxu0 %vm399_vm1, %v1367_v8  ;;  %1316 = vmatprep.mubr.msk.bf16.mxu1 %vm399_vm1, %v1368_v9 }
  0x21   : > { %1301 = vmatmul.mubr.msk.bf16.gmra.mxu0 %vm399_vm1, %v1369_v10  ;;  %1317 = vmatmul.mubr.msk.bf16.gmra.mxu1 %vm399_vm1, %v1370_v11 }
  0x22   : > { %1304 = vmatprep.mubr.msk.bf16.mxu0 %vm399_vm1, %v1371_v12  ;;  %1320 = vmatprep.mubr.msk.bf16.mxu1 %vm399_vm1, %v1372_v13 }
  0x29   : > { %1305 = vmatmul.mubr.msk.bf16.gmra.mxu0 %vm399_vm1, %v1373_v14  ;;  %1321 = vmatmul.mubr.msk.bf16.gmra.mxu1 %vm399_vm1, %v1374_v15 }
  0x2a   : > { %1308 = vmatprep.mubr.msk.bf16.mxu0 %vm399_vm1, %v1375_v16  ;;  %1324 = vmatprep.mubr.msk.bf16.mxu1 %vm399_vm1, %v1376_v17 }
  0x31   : > { %1309 = vmatmul.mubr.msk.bf16.gmra.mxu0 %vm399_vm1, %v1377_v18  ;;  %1325 = vmatmul.mubr.msk.bf16.gmra.mxu1 %vm399_vm1, %v1378_v19 }
  0xd9   : > { %v1298_v21 = vpop.f32.mrf.mxu0  ;;  %v1314_v23 = vpop.f32.mrf.mxu1 }
  0xda   : > { %v622_v24 = vmul.f32 %v1298_v21, %v1500_v20  ;;  %v638_v25 = vmul.f32 %v1314_v23, %v1500_v20 }
  0xdb   : > { %v486_v26 = vpop.f32.mrf.mxu0  ;;  %v550_v27 = vpop.f32.mrf.mxu1 }
  0xdc   : > { %v661_v28 = vadd.f32 %v1505_v22, %v622_v24  ;;  %v677_v29 = vadd.f32 %v1505_v22, %v638_v25  ;;  %v620_v30 = vmul.f32 %v1500_v20, %v486_v26  ;;  %v636_v31 = vmul.f32 %v1500_v20, %v550_v27 }
  0xdd   : > { %v1299_v32 = vpop.f32.mrf.mxu0  ;;  %v1315_v33 = vpop.f32.mrf.mxu1 }
  0xde   : > { %vm693_vm2 = vcmp.gt.f32.partialorder %v661_v28, 0.0  ;;  %v725_v34 = vmul.f32 0.1, %v661_v28  ;;  %vm709_vm3 = vcmp.gt.f32.partialorder %v677_v29, 0.0  ;;  %v741_v35 = vmul.f32 0.1, %v677_v29 }
  0xdf   : > { %v659_v36 = vadd.f32 %v1505_v22, %v620_v30  ;;  %v675_v37 = vadd.f32 %v1505_v22, %v636_v31  ;;  %v623_v38 = vmul.f32 %v1299_v32, %v1500_v20  ;;  %v639_v39 = vmul.f32 %v1315_v33, %v1500_v20  ;;  %v489_v40 = vpop.f32.mrf.mxu0  ;;  %v553_v41 = vpop.f32.mrf.mxu1 }
  0xe0   : > { %v757_v42 = vsel %vm693_vm2, %v661_v28, %v725_v34  ;;  %v773_v43 = vsel %vm709_vm3, %v677_v29, %v741_v35  ;;  %v621_v44 = vmul.f32 %v1500_v20, %v489_v40  ;;  %v637_v45 = vmul.f32 %v1500_v20, %v553_v41 }
  0xe1   : > { %vm691_vm4 = vcmp.gt.f32.partialorder %v659_v36, 0.0  ;;  %v723_v46 = vmul.f32 0.1, %v659_v36  ;;  %vm707_vm5 = vcmp.gt.f32.partialorder %v675_v37, 0.0  ;;  %v739_v47 = vmul.f32 0.1, %v675_v37  ;;  %v1302_v48 = vpop.f32.mrf.mxu0  ;;  %v1318_v49 = vpop.f32.mrf.mxu1 }
  0xe2   : > { %v662_v50 = vadd.f32 %v1505_v22, %v623_v38  ;;  %v678_v51 = vadd.f32 %v1505_v22, %v639_v39  ;;  %v660_v52 = vadd.f32 %v1505_v22, %v621_v44  ;;  %v676_v53 = vadd.f32 %v1505_v22, %v637_v45 }
  0xe3   : > { %v755_v54 = vsel %vm691_vm4, %v659_v36, %v723_v46  ;;  %v771_v55 = vsel %vm707_vm5, %v675_v37, %v739_v47  ;;  %v626_v56 = vmul.f32 %v1302_v48, %v1500_v20  ;;  %v642_v57 = vmul.f32 %v1318_v49, %v1500_v20  ;;  %v502_v58 = vpop.f32.mrf.mxu0  ;;  %v566_v59 = vpop.f32.mrf.mxu1 }
  0xe4   : > { %vm694_vm6 = vcmp.gt.f32.partialorder %v662_v50, 0.0  ;;  %v726_v60 = vmul.f32 0.1, %v662_v50  ;;  %vm710_vm7 = vcmp.gt.f32.partialorder %v678_v51, 0.0  ;;  %v742_v61 = vmul.f32 0.1, %v678_v51 }
  0xe5   : > { %vm692_vm8 = vcmp.gt.f32.partialorder %v660_v52, 0.0  ;;  %v724_v62 = vmul.f32 0.1, %v660_v52  ;;  %vm708_vm9 = vcmp.gt.f32.partialorder %v676_v53, 0.0  ;;  %v740_v63 = vmul.f32 0.1, %v676_v53  ;;  %v1303_v0 = vpop.f32.mrf.mxu0  ;;  %v1319_v1 = vpop.f32.mrf.mxu1 }
  0xe6   : > { %v758_v2 = vsel %vm694_vm6, %v662_v50, %v726_v60  ;;  %v774_v3 = vsel %vm710_vm7, %v678_v51, %v742_v61  ;;  %v665_v4 = vadd.f32 %v1505_v22, %v626_v56  ;;  %v681_v5 = vadd.f32 %v1505_v22, %v642_v57 }
  0xe7   : > { %v1184_v6 = vpack.c.bf16 %v758_v2, %v757_v42  ;;  %v1224_v7 = vpack.c.bf16 %v774_v3, %v773_v43  ;;  %v756_v8 = vsel %vm692_vm8, %v660_v52, %v724_v62  ;;  %v772_v9 = vsel %vm708_vm9, %v676_v53, %v740_v63  ;;  %v505_v10 = vpop.f32.mrf.mxu0  ;;  %v569_v11 = vpop.f32.mrf.mxu1 }
  0xe8   : > { %v1179_v12 = vpack.c.bf16 %v756_v8, %v755_v54  ;;  %v1219_v13 = vpack.c.bf16 %v772_v9, %v771_v55  ;;  %vm697_vm10 = vcmp.gt.f32.partialorder %v665_v4, 0.0  ;;  %v729_v14 = vmul.f32 0.1, %v665_v4 }
  0xe9   : > { %1256 = vst [vmem:[%s1530_s10 + $0x8] sm:$0xff] %v1184_v6   ;;  %1264 = vst [vmem:[%s1530_s10 + $0x48] sm:$0xff] %v1224_v7   ;;  %vm713_vm11 = vcmp.gt.f32.partialorder %v681_v5, 0.0  ;;  %v745_v15 = vmul.f32 0.1, %v681_v5  ;;  %v624_v16 = vmul.f32 %v1500_v20, %v502_v58  ;;  %v640_v17 = vmul.f32 %v1500_v20, %v566_v59  ;;  %v1306_v18 = vpop.f32.mrf.mxu0  ;;  %v1322_v19 = vpop.f32.mrf.mxu1 }
  0xea   : > { %1180 = vst [vmem:[%s1530_s10] sm:$0xff] %v1179_v12   ;;  %1263 = vst [vmem:[%s1530_s10 + $0x40] sm:$0xff] %v1219_v13   ;;  %v761_v21 = vsel %vm697_vm10, %v665_v4, %v729_v14  ;;  %v627_v23 = vmul.f32 %v1303_v0, %v1500_v20  ;;  %v643_v24 = vmul.f32 %v1319_v1, %v1500_v20 }
  0xeb   : > { %v625_v25 = vmul.f32 %v1500_v20, %v505_v10  ;;  %v777_v26 = vsel %vm713_vm11, %v681_v5, %v745_v15  ;;  %v663_v27 = vadd.f32 %v1505_v22, %v624_v16  ;;  %v679_v28 = vadd.f32 %v1505_v22, %v640_v17  ;;  %v518_v30 = vpop.f32.mrf.mxu0  ;;  %v582_v31 = vpop.f32.mrf.mxu1 }
  0xec   : > { %v641_v29 = vmul.f32 %v1500_v20, %v569_v11  ;;  %v666_v32 = vadd.f32 %v1505_v22, %v627_v23  ;;  %v682_v33 = vadd.f32 %v1505_v22, %v643_v24  ;;  %v630_v35 = vmul.f32 %v1306_v18, %v1500_v20 }
  0xed   : > { %v664_v34 = vadd.f32 %v1505_v22, %v625_v25  ;;  %vm695_vm12 = vcmp.gt.f32.partialorder %v663_v27, 0.0  ;;  %v727_v36 = vmul.f32 0.1, %v663_v27  ;;  %vm711_vm13 = vcmp.gt.f32.partialorder %v679_v28, 0.0  ;;  %v1307_v38 = vpop.f32.mrf.mxu0  ;;  %v1323_v39 = vpop.f32.mrf.mxu1 }
  0xee   : > { %v743_v37 = vmul.f32 0.1, %v679_v28  ;;  %vm698_vm14 = vcmp.gt.f32.partialorder %v666_v32, 0.0  ;;  %v730_v40 = vmul.f32 0.1, %v666_v32  ;;  %vm714_vm15 = vcmp.gt.f32.partialorder %v682_v33, 0.0 }
  0xef   : > { %v746_v41 = vmul.f32 0.1, %v682_v33  ;;  %v759_v42 = vsel %vm695_vm12, %v663_v27, %v727_v36  ;;  %vm696_vm0 = vcmp.gt.f32.partialorder %v664_v34, 0.0  ;;  %v728_v44 = vmul.f32 0.1, %v664_v34  ;;  %v521_v45 = vpop.f32.mrf.mxu0  ;;  %v585_v46 = vpop.f32.mrf.mxu1 }
  0xf0   : > { %v775_v43 = vsel %vm711_vm13, %v679_v28, %v743_v37  ;;  %v762_v47 = vsel %vm698_vm14, %v666_v32, %v730_v40  ;;  %v680_v49 = vadd.f32 %v1505_v22, %v641_v29  ;;  %v669_v50 = vadd.f32 %v1505_v22, %v630_v35 }
  0xf1   : > { %v778_v48 = vsel %vm714_vm15, %v682_v33, %v746_v41  ;;  %v1194_v51 = vpack.c.bf16 %v762_v47, %v761_v21  ;;  %v760_v53 = vsel %vm696_vm0, %v664_v34, %v728_v44  ;;  %v646_v54 = vmul.f32 %v1322_v19, %v1500_v20  ;;  %v1310_v55 = vpop.f32.mrf.mxu0  ;;  %v1326_v62 = vpop.f32.mrf.mxu1 }
  0xf2   : > { %v1234_v52 = vpack.c.bf16 %v778_v48, %v777_v26  ;;  %v1189_v56 = vpack.c.bf16 %v760_v53, %v759_v42  ;;  %vm712_vm1 = vcmp.gt.f32.partialorder %v680_v49, 0.0  ;;  %v744_v57 = vmul.f32 0.1, %v680_v49 }
  0xf3   : > { %vm701_vm2 = vcmp.gt.f32.partialorder %v669_v50, 0.0  ;;  %1258 = vst [vmem:[%s1530_s10 + $0x18] sm:$0xff] %v1194_v51   ;;  %v733_v58 = vmul.f32 0.1, %v669_v50  ;;  %v685_v59 = vadd.f32 %v1505_v22, %v646_v54  ;;  %v628_v60 = vmul.f32 %v1500_v20, %v518_v30  ;;  %v534_v3 = vpop.f32.mrf.mxu0  ;;  %v598_v14 = vpop.f32.mrf.mxu1 }
  0xf4   : > { %1266 = vst [vmem:[%s1530_s10 + $0x58] sm:$0xff] %v1234_v52   ;;  %v644_v61 = vmul.f32 %v1500_v20, %v582_v31  ;;  %1257 = vst [vmem:[%s1530_s10 + $0x10] sm:$0xff] %v1189_v56   ;;  %v776_v63 = vsel %vm712_vm1, %v680_v49, %v744_v57  ;;  %v631_v0 = vmul.f32 %v1307_v38, %v1500_v20 }
  0xf5   : > { %v647_v1 = vmul.f32 %v1323_v39, %v1500_v20  ;;  %v629_v2 = vmul.f32 %v1500_v20, %v521_v45  ;;  %v1229_v4 = vpack.c.bf16 %v776_v63, %v775_v43  ;;  %vm717_vm3 = vcmp.gt.f32.partialorder %v685_v59, 0.0  ;;  %v1311_v18 = vpop.f32.mrf.mxu0  ;;  %v1327_v29 = vpop.f32.mrf.mxu1 }
  0xf6   : > { %v749_v5 = vmul.f32 0.1, %v685_v59  ;;  %v667_v6 = vadd.f32 %v1505_v22, %v628_v60  ;;  %v683_v7 = vadd.f32 %v1505_v22, %v644_v61  ;;  %v670_v8 = vadd.f32 %v1505_v22, %v631_v0 }
  0xf7   : > { %v686_v9 = vadd.f32 %v1505_v22, %v647_v1  ;;  %1265 = vst [vmem:[%s1530_s10 + $0x50] sm:$0xff] %v1229_v4   ;;  %v765_v10 = vsel %vm701_vm2, %v669_v50, %v733_v58  ;;  %v668_v11 = vadd.f32 %v1505_v22, %v629_v2  ;;  %v645_v12 = vmul.f32 %v1500_v20, %v585_v46  ;;  %v537_v34 = vpop.f32.mrf.mxu0  ;;  %v601_v46 = vpop.f32.mrf.mxu1 }
  0xf8   : > { %v634_v13 = vmul.f32 %v1310_v55, %v1500_v20  ;;  %v781_v15 = vsel %vm717_vm3, %v685_v59, %v749_v5  ;;  %vm699_vm4 = vcmp.gt.f32.partialorder %v667_v6, 0.0  ;;  %v731_v16 = vmul.f32 0.1, %v667_v6 }
  0xf9   : > { %v747_v17 = vmul.f32 0.1, %v683_v7  ;;  %vm702_vm5 = vcmp.gt.f32.partialorder %v670_v8, 0.0  ;;  %v734_v19 = vmul.f32 0.1, %v670_v8  ;;  %vm718_vm6 = vcmp.gt.f32.partialorder %v686_v9, 0.0 }
  0xfa   : > { %v750_v21 = vmul.f32 0.1, %v686_v9  ;;  %v763_v23 = vsel %vm699_vm4, %v667_v6, %v731_v16  ;;  %vm715_vm7 = vcmp.gt.f32.partialorder %v683_v7, 0.0  ;;  %vm700_vm8 = vcmp.gt.f32.partialorder %v668_v11, 0.0 }
  0xfb   : > { %v732_v24 = vmul.f32 0.1, %v668_v11  ;;  %v766_v25 = vsel %vm702_vm5, %v670_v8, %v734_v19  ;;  %v684_v27 = vadd.f32 %v1505_v22, %v645_v12  ;;  %v673_v28 = vadd.f32 %v1505_v22, %v634_v13 }
  0xfc   : > { %v782_v26 = vsel %vm718_vm6, %v686_v9, %v750_v21  ;;  %v1204_v30 = vpack.c.bf16 %v766_v25, %v765_v10  ;;  %v650_v33 = vmul.f32 %v1326_v62, %v1500_v20  ;;  %v779_v35 = vsel %vm715_vm7, %v683_v7, %v747_v17 }
  0xfd   : > { %v1244_v31 = vpack.c.bf16 %v782_v26, %v781_v15  ;;  %v764_v32 = vsel %vm700_vm8, %v668_v11, %v732_v24  ;;  %vm716_vm9 = vcmp.gt.f32.partialorder %v684_v27, 0.0  ;;  %v748_v37 = vmul.f32 0.1, %v684_v27 }
  0xfe   : > { %v1199_v36 = vpack.c.bf16 %v764_v32, %v763_v23  ;;  %1260 = vst [vmem:[%s1530_s10 + $0x28] sm:$0xff] %v1204_v30   ;;  %v737_v38 = vmul.f32 0.1, %v673_v28  ;;  %v689_v39 = vadd.f32 %v1505_v22, %v650_v33  ;;  %v632_v40 = vmul.f32 %v1500_v20, %v534_v3 }
  0xff   : > { %1268 = vst [vmem:[%s1530_s10 + $0x68] sm:$0xff] %v1244_v31   ;;  %v648_v41 = vmul.f32 %v1500_v20, %v598_v14  ;;  %v780_v42 = vsel %vm716_vm9, %v684_v27, %v748_v37  ;;  %v635_v43 = vmul.f32 %v1311_v18, %v1500_v20  ;;  %v651_v44 = vmul.f32 %v1327_v29, %v1500_v20 }
 0x100   : > { %1259 = vst [vmem:[%s1530_s10 + $0x20] sm:$0xff] %v1199_v36   ;;  %v633_v45 = vmul.f32 %v1500_v20, %v537_v34  ;;  %v1239_v47 = vpack.c.bf16 %v780_v42, %v779_v35  ;;  %vm705_vm10 = vcmp.gt.f32.partialorder %v673_v28, 0.0  ;;  %v753_v48 = vmul.f32 0.1, %v689_v39 }
 0x101   : > { %v671_v49 = vadd.f32 %v1505_v22, %v632_v40  ;;  %v687_v50 = vadd.f32 %v1505_v22, %v648_v41  ;;  %v674_v51 = vadd.f32 %v1505_v22, %v635_v43  ;;  %v690_v52 = vadd.f32 %v1505_v22, %v651_v44 }
 0x102   : > { %1267 = vst [vmem:[%s1530_s10 + $0x60] sm:$0xff] %v1239_v47   ;;  %vm721_vm11 = vcmp.gt.f32.partialorder %v689_v39, 0.0  ;;  %v672_v53 = vadd.f32 %v1505_v22, %v633_v45  ;;  %v649_v54 = vmul.f32 %v1500_v20, %v601_v46  ;;  %v769_v55 = vsel %vm705_vm10, %v673_v28, %v737_v38 }
 0x103   : > { %vm703_vm12 = vcmp.gt.f32.partialorder %v671_v49, 0.0  ;;  %v735_v56 = vmul.f32 0.1, %v671_v49  ;;  %vm706_vm13 = vcmp.gt.f32.partialorder %v674_v51, 0.0  ;;  %v738_v57 = vmul.f32 0.1, %v674_v51 }
 0x104   : > { %vm722_vm14 = vcmp.gt.f32.partialorder %v690_v52, 0.0  ;;  %v754_v58 = vmul.f32 0.1, %v690_v52  ;;  %v785_v59 = vsel %vm721_vm11, %v689_v39, %v753_v48  ;;  %vm719_vm15 = vcmp.gt.f32.partialorder %v687_v50, 0.0 }
 0x105   : > { %vm704_vm0 = vcmp.gt.f32.partialorder %v672_v53, 0.0  ;;  %v736_v60 = vmul.f32 0.1, %v672_v53  ;;  %v751_v61 = vmul.f32 0.1, %v687_v50  ;;  %v770_v62 = vsel %vm706_vm13, %v674_v51, %v738_v57 }
 0x106   : > { %v786_v63 = vsel %vm722_vm14, %v690_v52, %v754_v58  ;;  %v688_v20 = vadd.f32 %v1505_v22, %v649_v54  ;;  %v767_v0 = vsel %vm703_vm12, %v671_v49, %v735_v56  ;;  %v1214_v1 = vpack.c.bf16 %v770_v62, %v769_v55 }
 0x107   : > { %v1254_v2 = vpack.c.bf16 %v786_v63, %v785_v59  ;;  %v768_v3 = vsel %vm704_vm0, %v672_v53, %v736_v60  ;;  %v783_v6 = vsel %vm719_vm15, %v687_v50, %v751_v61 }
 0x108   : > { %v1209_v4 = vpack.c.bf16 %v768_v3, %v767_v0  ;;  %vm720_vm1 = vcmp.gt.f32.partialorder %v688_v20, 0.0  ;;  %v752_v5 = vmul.f32 0.1, %v688_v20  ;;  %1262 = vst [vmem:[%s1530_s10 + $0x38] sm:$0xff] %v1214_v1  }
 0x109   : > { %1270 = vst [vmem:[%s1530_s10 + $0x78] sm:$0xff] %v1254_v2  }
 0x10a   : > { %1261 = vst [vmem:[%s1530_s10 + $0x30] sm:$0xff] %v1209_v4   ;;  %v784_v7 = vsel %vm720_vm1, %v688_v20, %v752_v5 }
 0x10b   : > { %v1249_v8 = vpack.c.bf16 %v784_v7, %v783_v6 }
 0x10d   : > { %1269 = vst [vmem:[%s1530_s10 + $0x70] sm:$0xff] %v1249_v8  }
 0x10e PF: > { %s14_s17 = sadd.s32 1, %s1401_s17   ;;  %s1610_s15 = smov %s1397_s16 }
 0x10f   : > { %p11_p5 = scmp.ge.s32.totalorder %s14_s17, 4   ;;  %s1611_s16 = smov %s1613_s18 }
 0x111   :  { %13 = sbr.rel (!%p11_p5) target bundleno = 2 (0x2), region = 75 }

// kernel: darknet_forward.9
= control target key start
LH: loop header
LB: loop body
LE: loop exit
PB: predicated region body
PF: predicated region fallthrough
CT: control target
= control target key end

     0   :  { %s1458_s15 = smov 0   ;;  %s1460_s16 = smov 0   ;;  %s1641_s0 = inlined_call_operand.vmem [shape: bf16[512,72], index: 0, kind: input, shape index: {}]   ;;  %s1642_s1 = inlined_call_operand.vmem [shape: bf16[72,128], index: 1, kind: input, shape index: {}]   ;;  %s1643_s2 = inlined_call_operand.vmem [shape: f32[1,128], index: 2, kind: input, shape index: {}]   ;;  %s1644_s3 = inlined_call_operand.vmem [shape: f32[1,128], index: 3, kind: input, shape index: {}]   ;;  %s1645_s4 = inlined_call_operand.vmem [shape: bf16[512,128], index: 4, kind: output, shape index: {}]  }
   0x1   :  { %s1462_s17 = smov 0  }
   0x2 LB: > { %s26_s18 = sadd.s32 1, %s1427_s16  ;;  %p1084_p0 = scmp.ge.s32.totalorder %s1431_s17, 1  ;;  %s1431_s17 = sphi %s1462_s17, %s14_s17   ;;  %s1427_s16 = sphi %s1460_s16, %s1647_s16   ;;  %s1423_s15 = sphi %s1458_s15, %s1646_s15  }
   0x3   : > { %p28_p1 = scmp.ge.s32.totalorder %s26_s18, 2  ;;  %p202_p2 = scmp.lt.s32.totalorder %s1431_s17, 3 }
   0x5   : > { %s1649_s18 = smov (%p28_p1, %s26_s18), 0  ;;  %p203_p3 = pnand %p1084_p0, %p202_p2 }
   0x6   : > { %s1085_s23 = sshll.u32 (!%p203_p3), %s1423_s15, 5 }
   0x7   : > { %206 = sbr.rel (%p203_p3) target bundleno = 278 (0x116), region = 36  ;;  %p242_p4 = scmp.lt.s32.totalorder (!%p203_p3), %s1085_s23, 63 }
   0xc   : > { %v1388_v0 = vld [vmem:[%s1642_s1 + $0x20] ss:$0 sps:$4 sm:$0xff]   ;;  %vm464_vm0 = vcmask 1043456   ;;  %v1389_v1 = vld [vmem:[%s1642_s1 + $0x18] sm:$0xff]   ;;  %v1390_v3 = vld [vmem:[%s1642_s1 + $0x10] sm:$0xff]   ;;  %s1651_s23 = smov (!%p242_p4, %s1085_s23), 63 }
   0xd   : > { %1362 = vmatprep.subr.msk.bf16.mxu0 %vm464_vm0, %v1388_v0  ;;  %1363 = vmatprep.subr.msk.bf16.mxu1 %vm464_vm0, %v1388_v0  ;;  %v466_v2 = vsel %vm464_vm0, %v1388_v0, 0  ;;  %v1391_v4 = vld [vmem:[%s1642_s1 + $0x8] sm:$0xff]   ;;  %s1086_s28 = sshll.u32 %s1651_s23, 2  ;;  %vm415_vm1 = vcmask 588800   ;;  %v1392_v7 = vld [vmem:[%s1642_s1] sm:$0xff]  }
   0xe   : > { %1311 = vmatpush3.bf16.msra.mxu0 %v466_v2  ;;  %1357 = vmatpush3.bf16.msra.mxu1 %v466_v2  ;;  %s1496_s5 = scalar_lea.vmem %s1641_s0, %s1086_s28  ;;  %v1536_v22 = vld [vmem:[%s1643_s2] ss:$0 sm:$0xff]  ;;  %s1566_s14 = scalar_lea.vmem %s1645_s4, %s1086_s28 }
   0xf   : > { %1312 = vmatprep.subr.bf16.mxu0 %v1389_v1  ;;  %1353 = vmatprep.subr.bf16.mxu1 %v1389_v1  ;;  %v1393_v5 = vld [vmem:[%s1496_s5] sm:$0xff]   ;;  %v1395_v8 = vld [vmem:[%s1496_s5 + $0x8] sm:$0xff]   ;;  %v1397_v10 = vld [vmem:[%s1496_s5 + $0x10] sm:$0xff]  }
  0x10   : > { %v1394_v6 = vld [vmem:[%s1496_s5 + $0x40] sm:$0xff]   ;;  %1320 = vmatprep.mubr.msk.bf16.mxu0 %vm415_vm1, %v1393_v5  ;;  %v1396_v9 = vld [vmem:[%s1496_s5 + $0x48] sm:$0xff]   ;;  %v1398_v11 = vld [vmem:[%s1496_s5 + $0x50] sm:$0xff]  }
  0x11   : > { %1336 = vmatprep.mubr.msk.bf16.mxu1 %vm415_vm1, %v1394_v6  ;;  %v1399_v12 = vld [vmem:[%s1496_s5 + $0x18] sm:$0xff]   ;;  %v1401_v14 = vld [vmem:[%s1496_s5 + $0x20] sm:$0xff]   ;;  %v1403_v16 = vld [vmem:[%s1496_s5 + $0x28] sm:$0xff]  }
  0x12   : > { %1313 = vmatpush3.bf16.msra.mxu0 %v1389_v1  ;;  %1358 = vmatpush3.bf16.msra.mxu1 %v1389_v1  ;;  %v1400_v13 = vld [vmem:[%s1496_s5 + $0x58] sm:$0xff]   ;;  %v1402_v15 = vld [vmem:[%s1496_s5 + $0x60] sm:$0xff]   ;;  %v1404_v17 = vld [vmem:[%s1496_s5 + $0x68] sm:$0xff]  }
  0x13   : > { %1314 = vmatprep.subr.bf16.mxu0 %v1390_v3  ;;  %1354 = vmatprep.subr.bf16.mxu1 %v1390_v3  ;;  %v1405_v18 = vld [vmem:[%s1496_s5 + $0x30] sm:$0xff]   ;;  %v1407_v20 = vld [vmem:[%s1496_s5 + $0x38] sm:$0xff]   ;;  %v1541_v24 = vld [vmem:[%s1644_s3] ss:$0 sm:$0xff] }
  0x14   : > { %v1406_v19 = vld [vmem:[%s1496_s5 + $0x70] sm:$0xff]   ;;  %v1408_v21 = vld [vmem:[%s1496_s5 + $0x78] sm:$0xff]  }
  0x16   : > { %1315 = vmatpush3.bf16.msra.mxu0 %v1390_v3  ;;  %1359 = vmatpush3.bf16.msra.mxu1 %v1390_v3 }
  0x17   : > { %1316 = vmatprep.subr.bf16.mxu0 %v1391_v4  ;;  %1355 = vmatprep.subr.bf16.mxu1 %v1391_v4 }
  0x1a   : > { %1317 = vmatpush3.bf16.msra.mxu0 %v1391_v4  ;;  %1360 = vmatpush3.bf16.msra.mxu1 %v1391_v4 }
  0x1b   : > { %1318 = vmatprep.subr.bf16.mxu0 %v1392_v7  ;;  %1356 = vmatprep.subr.bf16.mxu1 %v1392_v7 }
  0x1e   : > { %1319 = vmatpush3.bf16.msra.mxu0 %v1392_v7  ;;  %1361 = vmatpush3.bf16.msra.mxu1 %v1392_v7 }
  0x21   : > { %1321 = vmatmul.mubr.msk.bf16.vlgmr.msra.gmra.mxu0 %vm415_vm1, %v1395_v8  ;;  %1337 = vmatmul.mubr.msk.bf16.vlgmr.msra.gmra.mxu1 %vm415_vm1, %v1396_v9 }
  0x22   : > { %1324 = vmatprep.mubr.msk.bf16.mxu0 %vm415_vm1, %v1397_v10  ;;  %1340 = vmatprep.mubr.msk.bf16.mxu1 %vm415_vm1, %v1398_v11 }
  0x29   : > { %1325 = vmatmul.mubr.msk.bf16.gmra.mxu0 %vm415_vm1, %v1399_v12  ;;  %1341 = vmatmul.mubr.msk.bf16.gmra.mxu1 %vm415_vm1, %v1400_v13 }
  0x2a   : > { %1328 = vmatprep.mubr.msk.bf16.mxu0 %vm415_vm1, %v1401_v14  ;;  %1344 = vmatprep.mubr.msk.bf16.mxu1 %vm415_vm1, %v1402_v15 }
  0x31   : > { %1329 = vmatmul.mubr.msk.bf16.gmra.mxu0 %vm415_vm1, %v1403_v16  ;;  %1345 = vmatmul.mubr.msk.bf16.gmra.mxu1 %vm415_vm1, %v1404_v17 }
  0x32   : > { %1332 = vmatprep.mubr.msk.bf16.mxu0 %vm415_vm1, %v1405_v18  ;;  %1348 = vmatprep.mubr.msk.bf16.mxu1 %vm415_vm1, %v1406_v19 }
  0x39   : > { %1333 = vmatmul.mubr.msk.bf16.gmra.mxu0 %vm415_vm1, %v1407_v20  ;;  %1349 = vmatmul.mubr.msk.bf16.gmra.mxu1 %vm415_vm1, %v1408_v21 }
  0xe1   : > { %v1322_v23 = vpop.f32.mrf.mxu0  ;;  %v1338_v25 = vpop.f32.mrf.mxu1 }
  0xe2   : > { %v638_v26 = vmul.f32 %v1322_v23, %v1536_v22  ;;  %v654_v27 = vmul.f32 %v1338_v25, %v1536_v22 }
  0xe3   : > { %v502_v28 = vpop.f32.mrf.mxu0  ;;  %v566_v29 = vpop.f32.mrf.mxu1 }
  0xe4   : > { %v677_v30 = vadd.f32 %v1541_v24, %v638_v26  ;;  %v693_v31 = vadd.f32 %v1541_v24, %v654_v27  ;;  %v636_v32 = vmul.f32 %v1536_v22, %v502_v28  ;;  %v652_v33 = vmul.f32 %v1536_v22, %v566_v29 }
  0xe5   : > { %v1323_v34 = vpop.f32.mrf.mxu0  ;;  %v1339_v35 = vpop.f32.mrf.mxu1 }
  0xe6   : > { %vm709_vm2 = vcmp.gt.f32.partialorder %v677_v30, 0.0  ;;  %v741_v36 = vmul.f32 0.1, %v677_v30  ;;  %vm725_vm3 = vcmp.gt.f32.partialorder %v693_v31, 0.0  ;;  %v757_v37 = vmul.f32 0.1, %v693_v31 }
  0xe7   : > { %v675_v38 = vadd.f32 %v1541_v24, %v636_v32  ;;  %v691_v39 = vadd.f32 %v1541_v24, %v652_v33  ;;  %v639_v40 = vmul.f32 %v1323_v34, %v1536_v22  ;;  %v655_v41 = vmul.f32 %v1339_v35, %v1536_v22  ;;  %v505_v42 = vpop.f32.mrf.mxu0  ;;  %v569_v43 = vpop.f32.mrf.mxu1 }
  0xe8   : > { %v773_v44 = vsel %vm709_vm2, %v677_v30, %v741_v36  ;;  %v789_v45 = vsel %vm725_vm3, %v693_v31, %v757_v37  ;;  %v637_v46 = vmul.f32 %v1536_v22, %v505_v42  ;;  %v653_v47 = vmul.f32 %v1536_v22, %v569_v43 }
  0xe9   : > { %vm707_vm4 = vcmp.gt.f32.partialorder %v675_v38, 0.0  ;;  %v739_v48 = vmul.f32 0.1, %v675_v38  ;;  %vm723_vm5 = vcmp.gt.f32.partialorder %v691_v39, 0.0  ;;  %v755_v49 = vmul.f32 0.1, %v691_v39  ;;  %v1326_v50 = vpop.f32.mrf.mxu0  ;;  %v1342_v51 = vpop.f32.mrf.mxu1 }
  0xea   : > { %v678_v52 = vadd.f32 %v1541_v24, %v639_v40  ;;  %v694_v53 = vadd.f32 %v1541_v24, %v655_v41  ;;  %v676_v54 = vadd.f32 %v1541_v24, %v637_v46  ;;  %v692_v55 = vadd.f32 %v1541_v24, %v653_v47 }
  0xeb   : > { %v771_v56 = vsel %vm707_vm4, %v675_v38, %v739_v48  ;;  %v787_v57 = vsel %vm723_vm5, %v691_v39, %v755_v49  ;;  %v642_v58 = vmul.f32 %v1326_v50, %v1536_v22  ;;  %v658_v59 = vmul.f32 %v1342_v51, %v1536_v22  ;;  %v518_v60 = vpop.f32.mrf.mxu0  ;;  %v582_v61 = vpop.f32.mrf.mxu1 }
  0xec   : > { %vm710_vm6 = vcmp.gt.f32.partialorder %v678_v52, 0.0  ;;  %v742_v62 = vmul.f32 0.1, %v678_v52  ;;  %vm726_vm7 = vcmp.gt.f32.partialorder %v694_v53, 0.0  ;;  %v758_v63 = vmul.f32 0.1, %v694_v53 }
  0xed   : > { %vm708_vm8 = vcmp.gt.f32.partialorder %v676_v54, 0.0  ;;  %v740_v0 = vmul.f32 0.1, %v676_v54  ;;  %vm724_vm9 = vcmp.gt.f32.partialorder %v692_v55, 0.0  ;;  %v756_v1 = vmul.f32 0.1, %v692_v55  ;;  %v1327_v2 = vpop.f32.mrf.mxu0  ;;  %v1343_v3 = vpop.f32.mrf.mxu1 }
  0xee   : > { %v774_v4 = vsel %vm710_vm6, %v678_v52, %v742_v62  ;;  %v790_v5 = vsel %vm726_vm7, %v694_v53, %v758_v63  ;;  %v681_v6 = vadd.f32 %v1541_v24, %v642_v58  ;;  %v697_v7 = vadd.f32 %v1541_v24, %v658_v59 }
  0xef   : > { %v1202_v8 = vpack.c.bf16 %v774_v4, %v773_v44  ;;  %v1242_v9 = vpack.c.bf16 %v790_v5, %v789_v45  ;;  %v772_v10 = vsel %vm708_vm8, %v676_v54, %v740_v0  ;;  %v788_v11 = vsel %vm724_vm9, %v692_v55, %v756_v1  ;;  %v521_v12 = vpop.f32.mrf.mxu0  ;;  %v585_v13 = vpop.f32.mrf.mxu1 }
  0xf0   : > { %v1197_v14 = vpack.c.bf16 %v772_v10, %v771_v56  ;;  %v1237_v15 = vpack.c.bf16 %v788_v11, %v787_v57  ;;  %vm713_vm10 = vcmp.gt.f32.partialorder %v681_v6, 0.0  ;;  %v745_v16 = vmul.f32 0.1, %v681_v6 }
  0xf1   : > { %1274 = vst [vmem:[%s1566_s14 + $0x8] sm:$0xff] %v1202_v8   ;;  %1282 = vst [vmem:[%s1566_s14 + $0x48] sm:$0xff] %v1242_v9   ;;  %vm729_vm11 = vcmp.gt.f32.partialorder %v697_v7, 0.0  ;;  %v761_v17 = vmul.f32 0.1, %v697_v7  ;;  %v640_v18 = vmul.f32 %v1536_v22, %v518_v60  ;;  %v656_v19 = vmul.f32 %v1536_v22, %v582_v61  ;;  %v1330_v20 = vpop.f32.mrf.mxu0  ;;  %v1346_v21 = vpop.f32.mrf.mxu1 }
  0xf2   : > { %1198 = vst [vmem:[%s1566_s14] sm:$0xff] %v1197_v14   ;;  %1281 = vst [vmem:[%s1566_s14 + $0x40] sm:$0xff] %v1237_v15   ;;  %v777_v23 = vsel %vm713_vm10, %v681_v6, %v745_v16  ;;  %v643_v25 = vmul.f32 %v1327_v2, %v1536_v22  ;;  %v659_v26 = vmul.f32 %v1343_v3, %v1536_v22 }
  0xf3   : > { %v641_v27 = vmul.f32 %v1536_v22, %v521_v12  ;;  %v793_v28 = vsel %vm729_vm11, %v697_v7, %v761_v17  ;;  %v679_v29 = vadd.f32 %v1541_v24, %v640_v18  ;;  %v695_v30 = vadd.f32 %v1541_v24, %v656_v19  ;;  %v534_v32 = vpop.f32.mrf.mxu0  ;;  %v598_v33 = vpop.f32.mrf.mxu1 }
  0xf4   : > { %v657_v31 = vmul.f32 %v1536_v22, %v585_v13  ;;  %v682_v34 = vadd.f32 %v1541_v24, %v643_v25  ;;  %v698_v35 = vadd.f32 %v1541_v24, %v659_v26  ;;  %v646_v37 = vmul.f32 %v1330_v20, %v1536_v22 }
  0xf5   : > { %v680_v36 = vadd.f32 %v1541_v24, %v641_v27  ;;  %vm711_vm12 = vcmp.gt.f32.partialorder %v679_v29, 0.0  ;;  %v743_v38 = vmul.f32 0.1, %v679_v29  ;;  %vm727_vm13 = vcmp.gt.f32.partialorder %v695_v30, 0.0  ;;  %v1331_v40 = vpop.f32.mrf.mxu0  ;;  %v1347_v41 = vpop.f32.mrf.mxu1 }
  0xf6   : > { %v759_v39 = vmul.f32 0.1, %v695_v30  ;;  %vm714_vm14 = vcmp.gt.f32.partialorder %v682_v34, 0.0  ;;  %v746_v42 = vmul.f32 0.1, %v682_v34  ;;  %vm730_vm15 = vcmp.gt.f32.partialorder %v698_v35, 0.0 }
  0xf7   : > { %v762_v43 = vmul.f32 0.1, %v698_v35  ;;  %v775_v44 = vsel %vm711_vm12, %v679_v29, %v743_v38  ;;  %vm712_vm0 = vcmp.gt.f32.partialorder %v680_v36, 0.0  ;;  %v744_v46 = vmul.f32 0.1, %v680_v36  ;;  %v537_v47 = vpop.f32.mrf.mxu0  ;;  %v601_v48 = vpop.f32.mrf.mxu1 }
  0xf8   : > { %v791_v45 = vsel %vm727_vm13, %v695_v30, %v759_v39  ;;  %v778_v49 = vsel %vm714_vm14, %v682_v34, %v746_v42  ;;  %v696_v51 = vadd.f32 %v1541_v24, %v657_v31  ;;  %v685_v52 = vadd.f32 %v1541_v24, %v646_v37 }
  0xf9   : > { %v794_v50 = vsel %vm730_vm15, %v698_v35, %v762_v43  ;;  %v1212_v53 = vpack.c.bf16 %v778_v49, %v777_v23  ;;  %v776_v55 = vsel %vm712_vm0, %v680_v36, %v744_v46  ;;  %v662_v56 = vmul.f32 %v1346_v21, %v1536_v22  ;;  %v1334_v57 = vpop.f32.mrf.mxu0  ;;  %v1350_v0 = vpop.f32.mrf.mxu1 }
  0xfa   : > { %v1252_v54 = vpack.c.bf16 %v794_v50, %v793_v28  ;;  %v1207_v58 = vpack.c.bf16 %v776_v55, %v775_v44  ;;  %vm728_vm1 = vcmp.gt.f32.partialorder %v696_v51, 0.0  ;;  %v760_v59 = vmul.f32 0.1, %v696_v51 }
  0xfb   : > { %vm717_vm2 = vcmp.gt.f32.partialorder %v685_v52, 0.0  ;;  %1276 = vst [vmem:[%s1566_s14 + $0x18] sm:$0xff] %v1212_v53   ;;  %v749_v60 = vmul.f32 0.1, %v685_v52  ;;  %v701_v61 = vadd.f32 %v1541_v24, %v662_v56  ;;  %v644_v62 = vmul.f32 %v1536_v22, %v534_v32  ;;  %v550_v5 = vpop.f32.mrf.mxu0  ;;  %v614_v16 = vpop.f32.mrf.mxu1 }
  0xfc   : > { %1284 = vst [vmem:[%s1566_s14 + $0x58] sm:$0xff] %v1252_v54   ;;  %v660_v63 = vmul.f32 %v1536_v22, %v598_v33  ;;  %1275 = vst [vmem:[%s1566_s14 + $0x10] sm:$0xff] %v1207_v58   ;;  %v792_v1 = vsel %vm728_vm1, %v696_v51, %v760_v59  ;;  %v647_v2 = vmul.f32 %v1331_v40, %v1536_v22 }
  0xfd   : > { %v663_v3 = vmul.f32 %v1347_v41, %v1536_v22  ;;  %v645_v4 = vmul.f32 %v1536_v22, %v537_v47  ;;  %v1247_v6 = vpack.c.bf16 %v792_v1, %v791_v45  ;;  %vm733_vm3 = vcmp.gt.f32.partialorder %v701_v61, 0.0  ;;  %v1335_v20 = vpop.f32.mrf.mxu0  ;;  %v1351_v31 = vpop.f32.mrf.mxu1 }
  0xfe   : > { %v765_v7 = vmul.f32 0.1, %v701_v61  ;;  %v683_v8 = vadd.f32 %v1541_v24, %v644_v62  ;;  %v699_v9 = vadd.f32 %v1541_v24, %v660_v63  ;;  %v686_v10 = vadd.f32 %v1541_v24, %v647_v2 }
  0xff   : > { %v702_v11 = vadd.f32 %v1541_v24, %v663_v3  ;;  %1283 = vst [vmem:[%s1566_s14 + $0x50] sm:$0xff] %v1247_v6   ;;  %v781_v12 = vsel %vm717_vm2, %v685_v52, %v749_v60  ;;  %v684_v13 = vadd.f32 %v1541_v24, %v645_v4  ;;  %v661_v14 = vmul.f32 %v1536_v22, %v601_v48  ;;  %v553_v36 = vpop.f32.mrf.mxu0  ;;  %v617_v48 = vpop.f32.mrf.mxu1 }
 0x100   : > { %v650_v15 = vmul.f32 %v1334_v57, %v1536_v22  ;;  %v797_v17 = vsel %vm733_vm3, %v701_v61, %v765_v7  ;;  %vm715_vm4 = vcmp.gt.f32.partialorder %v683_v8, 0.0  ;;  %v747_v18 = vmul.f32 0.1, %v683_v8 }
 0x101   : > { %v763_v19 = vmul.f32 0.1, %v699_v9  ;;  %vm718_vm5 = vcmp.gt.f32.partialorder %v686_v10, 0.0  ;;  %v750_v21 = vmul.f32 0.1, %v686_v10  ;;  %vm734_vm6 = vcmp.gt.f32.partialorder %v702_v11, 0.0 }
 0x102   : > { %v766_v23 = vmul.f32 0.1, %v702_v11  ;;  %v779_v25 = vsel %vm715_vm4, %v683_v8, %v747_v18  ;;  %vm731_vm7 = vcmp.gt.f32.partialorder %v699_v9, 0.0  ;;  %vm716_vm8 = vcmp.gt.f32.partialorder %v684_v13, 0.0 }
 0x103   : > { %v748_v26 = vmul.f32 0.1, %v684_v13  ;;  %v782_v27 = vsel %vm718_vm5, %v686_v10, %v750_v21  ;;  %v700_v29 = vadd.f32 %v1541_v24, %v661_v14  ;;  %v689_v30 = vadd.f32 %v1541_v24, %v650_v15 }
 0x104   : > { %v798_v28 = vsel %vm734_vm6, %v702_v11, %v766_v23  ;;  %v1222_v32 = vpack.c.bf16 %v782_v27, %v781_v12  ;;  %v666_v35 = vmul.f32 %v1350_v0, %v1536_v22  ;;  %v795_v37 = vsel %vm731_vm7, %v699_v9, %v763_v19 }
 0x105   : > { %v1262_v33 = vpack.c.bf16 %v798_v28, %v797_v17  ;;  %v780_v34 = vsel %vm716_vm8, %v684_v13, %v748_v26  ;;  %vm732_vm9 = vcmp.gt.f32.partialorder %v700_v29, 0.0  ;;  %v764_v39 = vmul.f32 0.1, %v700_v29 }
 0x106   : > { %v1217_v38 = vpack.c.bf16 %v780_v34, %v779_v25  ;;  %1278 = vst [vmem:[%s1566_s14 + $0x28] sm:$0xff] %v1222_v32   ;;  %v753_v40 = vmul.f32 0.1, %v689_v30  ;;  %v705_v41 = vadd.f32 %v1541_v24, %v666_v35  ;;  %v648_v42 = vmul.f32 %v1536_v22, %v550_v5 }
 0x107   : > { %1286 = vst [vmem:[%s1566_s14 + $0x68] sm:$0xff] %v1262_v33   ;;  %v664_v43 = vmul.f32 %v1536_v22, %v614_v16  ;;  %v796_v44 = vsel %vm732_vm9, %v700_v29, %v764_v39  ;;  %v651_v45 = vmul.f32 %v1335_v20, %v1536_v22  ;;  %v667_v46 = vmul.f32 %v1351_v31, %v1536_v22 }
 0x108   : > { %1277 = vst [vmem:[%s1566_s14 + $0x20] sm:$0xff] %v1217_v38   ;;  %v649_v47 = vmul.f32 %v1536_v22, %v553_v36  ;;  %v1257_v49 = vpack.c.bf16 %v796_v44, %v795_v37  ;;  %vm721_vm10 = vcmp.gt.f32.partialorder %v689_v30, 0.0  ;;  %v769_v50 = vmul.f32 0.1, %v705_v41 }
 0x109   : > { %v687_v51 = vadd.f32 %v1541_v24, %v648_v42  ;;  %v703_v52 = vadd.f32 %v1541_v24, %v664_v43  ;;  %v690_v53 = vadd.f32 %v1541_v24, %v651_v45  ;;  %v706_v54 = vadd.f32 %v1541_v24, %v667_v46 }
 0x10a   : > { %1285 = vst [vmem:[%s1566_s14 + $0x60] sm:$0xff] %v1257_v49   ;;  %vm737_vm11 = vcmp.gt.f32.partialorder %v705_v41, 0.0  ;;  %v688_v55 = vadd.f32 %v1541_v24, %v649_v47  ;;  %v665_v56 = vmul.f32 %v1536_v22, %v617_v48  ;;  %v785_v57 = vsel %vm721_vm10, %v689_v30, %v753_v40 }
 0x10b   : > { %vm719_vm12 = vcmp.gt.f32.partialorder %v687_v51, 0.0  ;;  %v751_v58 = vmul.f32 0.1, %v687_v51  ;;  %vm722_vm13 = vcmp.gt.f32.partialorder %v690_v53, 0.0  ;;  %v754_v59 = vmul.f32 0.1, %v690_v53 }
 0x10c   : > { %vm738_vm14 = vcmp.gt.f32.partialorder %v706_v54, 0.0  ;;  %v770_v60 = vmul.f32 0.1, %v706_v54  ;;  %v801_v61 = vsel %vm737_vm11, %v705_v41, %v769_v50  ;;  %vm735_vm15 = vcmp.gt.f32.partialorder %v703_v52, 0.0 }
 0x10d   : > { %vm720_vm0 = vcmp.gt.f32.partialorder %v688_v55, 0.0  ;;  %v752_v62 = vmul.f32 0.1, %v688_v55  ;;  %v767_v63 = vmul.f32 0.1, %v703_v52  ;;  %v786_v0 = vsel %vm722_vm13, %v690_v53, %v754_v59 }
 0x10e   : > { %v802_v1 = vsel %vm738_vm14, %v706_v54, %v770_v60  ;;  %v704_v22 = vadd.f32 %v1541_v24, %v665_v56  ;;  %v783_v2 = vsel %vm719_vm12, %v687_v51, %v751_v58  ;;  %v1232_v3 = vpack.c.bf16 %v786_v0, %v785_v57 }
 0x10f   : > { %v1272_v4 = vpack.c.bf16 %v802_v1, %v801_v61  ;;  %v784_v5 = vsel %vm720_vm0, %v688_v55, %v752_v62  ;;  %v799_v8 = vsel %vm735_vm15, %v703_v52, %v767_v63 }
 0x110   : > { %v1227_v6 = vpack.c.bf16 %v784_v5, %v783_v2  ;;  %vm736_vm1 = vcmp.gt.f32.partialorder %v704_v22, 0.0  ;;  %v768_v7 = vmul.f32 0.1, %v704_v22  ;;  %1280 = vst [vmem:[%s1566_s14 + $0x38] sm:$0xff] %v1232_v3  }
 0x111   : > { %1288 = vst [vmem:[%s1566_s14 + $0x78] sm:$0xff] %v1272_v4  }
 0x112   : > { %1279 = vst [vmem:[%s1566_s14 + $0x30] sm:$0xff] %v1227_v6   ;;  %v800_v9 = vsel %vm736_vm1, %v704_v22, %v768_v7 }
 0x113   : > { %v1267_v10 = vpack.c.bf16 %v800_v9, %v799_v8 }
 0x115   : > { %1287 = vst [vmem:[%s1566_s14 + $0x70] sm:$0xff] %v1267_v10  }
 0x116 PF: > { %s14_s17 = sadd.s32 1, %s1431_s17   ;;  %s1646_s15 = smov %s1427_s16 }
 0x117   : > { %p11_p5 = scmp.ge.s32.totalorder %s14_s17, 4   ;;  %s1647_s16 = smov %s1649_s18 }
 0x119   :  { %13 = sbr.rel (!%p11_p5) target bundleno = 2 (0x2), region = 75 }

// kernel: darknet_forward.10
= control target key start
LH: loop header
LB: loop body
LE: loop exit
PB: predicated region body
PF: predicated region fallthrough
CT: control target
= control target key end

     0   :  { %vm135_vm0 = vcmask 1043456   ;;  %vm110_vm1 = vcmask 588800   ;;  %s719_s1 = inlined_call_operand.vmem [shape: bf16[72,128], index: 1, kind: input, shape index: {}]   ;;  %s720_s0 = inlined_call_operand.vmem [shape: bf16[128,72], index: 0, kind: input, shape index: {}]   ;;  %s721_s2 = inlined_call_operand.vmem [shape: f32[1,128], index: 2, kind: input, shape index: {}]   ;;  %s722_s3 = inlined_call_operand.vmem [shape: f32[1,128], index: 3, kind: input, shape index: {}]   ;;  %s723_s4 = inlined_call_operand.vmem [shape: bf16[128,128], index: 4, kind: output, shape index: {}]  }
   0x1   :  { %v567_v0 = vld [vmem:[%s719_s1 + $0x20] ss:$0 sps:$4 sm:$0xff]   ;;  %v568_v1 = vld [vmem:[%s719_s1 + $0x18] sm:$0xff]   ;;  %v569_v3 = vld [vmem:[%s719_s1 + $0x10] sm:$0xff]  }
   0x2   :  { %565 = vmatprep.subr.msk.bf16.mxu0 %vm135_vm0, %v567_v0  ;;  %566 = vmatprep.subr.msk.bf16.mxu1 %vm135_vm0, %v567_v0  ;;  %v137_v2 = vsel %vm135_vm0, %v567_v0, 0  ;;  %v572_v4 = vld [vmem:[%s720_s0] sm:$0xff]   ;;  %v570_v6 = vld [vmem:[%s719_s1 + $0x8] sm:$0xff]   ;;  %v576_v10 = vld [vmem:[%s720_s0 + $0x10] sm:$0xff]  }
   0x3   :  { %530 = vmatpush3.bf16.msra.mxu0 %v137_v2  ;;  %560 = vmatpush3.bf16.msra.mxu1 %v137_v2  ;;  %v573_v5 = vld [vmem:[%s720_s0 + $0x20] sm:$0xff]   ;;  %v574_v8 = vld [vmem:[%s720_s0 + $0x8] sm:$0xff]   ;;  %v577_v11 = vld [vmem:[%s720_s0 + $0x30] sm:$0xff]  }
   0x4   :  { %531 = vmatprep.subr.bf16.mxu0 %v568_v1  ;;  %556 = vmatprep.subr.bf16.mxu1 %v568_v1  ;;  %v571_v7 = vld [vmem:[%s719_s1] sm:$0xff]   ;;  %v575_v9 = vld [vmem:[%s720_s0 + $0x28] sm:$0xff]   ;;  %v578_v12 = vld [vmem:[%s720_s0 + $0x18] sm:$0xff]  }
   0x5   :  { %539 = vmatprep.mubr.msk.bf16.mxu0 %vm110_vm1, %v572_v4  ;;  %547 = vmatprep.mubr.msk.bf16.mxu1 %vm110_vm1, %v573_v5  ;;  %v579_v13 = vld [vmem:[%s720_s0 + $0x38] sm:$0xff]   ;;  %v655_v14 = vld [vmem:[%s721_s2] ss:$0 sm:$0xff] }
   0x6   :  { %v660_v16 = vld [vmem:[%s722_s3] ss:$0 sm:$0xff] }
   0x7   :  { %532 = vmatpush3.bf16.msra.mxu0 %v568_v1  ;;  %561 = vmatpush3.bf16.msra.mxu1 %v568_v1 }
   0x8   :  { %533 = vmatprep.subr.bf16.mxu0 %v569_v3  ;;  %557 = vmatprep.subr.bf16.mxu1 %v569_v3 }
   0xb   :  { %534 = vmatpush3.bf16.msra.mxu0 %v569_v3  ;;  %562 = vmatpush3.bf16.msra.mxu1 %v569_v3 }
   0xc   :  { %535 = vmatprep.subr.bf16.mxu0 %v570_v6  ;;  %558 = vmatprep.subr.bf16.mxu1 %v570_v6 }
   0xf   :  { %536 = vmatpush3.bf16.msra.mxu0 %v570_v6  ;;  %563 = vmatpush3.bf16.msra.mxu1 %v570_v6 }
  0x10   :  { %537 = vmatprep.subr.bf16.mxu0 %v571_v7  ;;  %559 = vmatprep.subr.bf16.mxu1 %v571_v7 }
  0x13   :  { %538 = vmatpush3.bf16.msra.mxu0 %v571_v7  ;;  %564 = vmatpush3.bf16.msra.mxu1 %v571_v7 }
  0x16   :  { %540 = vmatmul.mubr.msk.bf16.vlgmr.msra.gmra.mxu0 %vm110_vm1, %v574_v8  ;;  %548 = vmatmul.mubr.msk.bf16.vlgmr.msra.gmra.mxu1 %vm110_vm1, %v575_v9 }
  0x17   :  { %543 = vmatprep.mubr.msk.bf16.mxu0 %vm110_vm1, %v576_v10  ;;  %551 = vmatprep.mubr.msk.bf16.mxu1 %vm110_vm1, %v577_v11 }
  0x1e   :  { %544 = vmatmul.mubr.msk.bf16.gmra.mxu0 %vm110_vm1, %v578_v12  ;;  %552 = vmatmul.mubr.msk.bf16.gmra.mxu1 %vm110_vm1, %v579_v13 }
  0xd6   :  { %v541_v15 = vpop.f32.mrf.mxu0  ;;  %v549_v17 = vpop.f32.mrf.mxu1 }
  0xd7   :  { %v245_v18 = vmul.f32 %v541_v15, %v655_v14  ;;  %v253_v19 = vmul.f32 %v549_v17, %v655_v14 }
  0xd8   :  { %v173_v20 = vpop.f32.mrf.mxu0  ;;  %v205_v21 = vpop.f32.mrf.mxu1 }
  0xd9   :  { %v268_v22 = vadd.f32 %v660_v16, %v245_v18  ;;  %v276_v23 = vadd.f32 %v660_v16, %v253_v19  ;;  %v243_v24 = vmul.f32 %v655_v14, %v173_v20  ;;  %v251_v25 = vmul.f32 %v655_v14, %v205_v21 }
  0xda   :  { %v542_v26 = vpop.f32.mrf.mxu0  ;;  %v550_v27 = vpop.f32.mrf.mxu1 }
  0xdb   :  { %vm284_vm2 = vcmp.gt.f32.partialorder %v268_v22, 0.0  ;;  %v300_v28 = vmul.f32 0.1, %v268_v22  ;;  %vm292_vm3 = vcmp.gt.f32.partialorder %v276_v23, 0.0  ;;  %v308_v29 = vmul.f32 0.1, %v276_v23 }
  0xdc   :  { %v266_v30 = vadd.f32 %v660_v16, %v243_v24  ;;  %v274_v31 = vadd.f32 %v660_v16, %v251_v25  ;;  %v246_v32 = vmul.f32 %v542_v26, %v655_v14  ;;  %v254_v33 = vmul.f32 %v550_v27, %v655_v14  ;;  %v176_v34 = vpop.f32.mrf.mxu0  ;;  %v208_v35 = vpop.f32.mrf.mxu1 }
  0xdd   :  { %v316_v36 = vsel %vm284_vm2, %v268_v22, %v300_v28  ;;  %v324_v37 = vsel %vm292_vm3, %v276_v23, %v308_v29  ;;  %v244_v38 = vmul.f32 %v655_v14, %v176_v34  ;;  %v252_v39 = vmul.f32 %v655_v14, %v208_v35 }
  0xde   :  { %vm282_vm4 = vcmp.gt.f32.partialorder %v266_v30, 0.0  ;;  %v298_v40 = vmul.f32 0.1, %v266_v30  ;;  %vm290_vm5 = vcmp.gt.f32.partialorder %v274_v31, 0.0  ;;  %v306_v41 = vmul.f32 0.1, %v274_v31  ;;  %v545_v42 = vpop.f32.mrf.mxu0  ;;  %v553_v43 = vpop.f32.mrf.mxu1 }
  0xdf   :  { %v269_v44 = vadd.f32 %v660_v16, %v246_v32  ;;  %v277_v45 = vadd.f32 %v660_v16, %v254_v33  ;;  %v267_v46 = vadd.f32 %v660_v16, %v244_v38  ;;  %v275_v47 = vadd.f32 %v660_v16, %v252_v39 }
  0xe0   :  { %v314_v48 = vsel %vm282_vm4, %v266_v30, %v298_v40  ;;  %v322_v49 = vsel %vm290_vm5, %v274_v31, %v306_v41  ;;  %v249_v50 = vmul.f32 %v545_v42, %v655_v14  ;;  %v257_v51 = vmul.f32 %v553_v43, %v655_v14  ;;  %v189_v52 = vpop.f32.mrf.mxu0  ;;  %v221_v53 = vpop.f32.mrf.mxu1 }
  0xe1   :  { %vm285_vm6 = vcmp.gt.f32.partialorder %v269_v44, 0.0  ;;  %v301_v54 = vmul.f32 0.1, %v269_v44  ;;  %vm293_vm7 = vcmp.gt.f32.partialorder %v277_v45, 0.0  ;;  %v309_v55 = vmul.f32 0.1, %v277_v45 }
  0xe2   :  { %vm283_vm8 = vcmp.gt.f32.partialorder %v267_v46, 0.0  ;;  %v299_v56 = vmul.f32 0.1, %v267_v46  ;;  %vm291_vm9 = vcmp.gt.f32.partialorder %v275_v47, 0.0  ;;  %v307_v57 = vmul.f32 0.1, %v275_v47  ;;  %v546_v58 = vpop.f32.mrf.mxu0  ;;  %v554_v59 = vpop.f32.mrf.mxu1 }
  0xe3   :  { %v317_v60 = vsel %vm285_vm6, %v269_v44, %v301_v54  ;;  %v325_v61 = vsel %vm293_vm7, %v277_v45, %v309_v55  ;;  %v272_v62 = vadd.f32 %v660_v16, %v249_v50  ;;  %v280_v63 = vadd.f32 %v660_v16, %v257_v51 }
  0xe4   :  { %v477_v0 = vpack.c.bf16 %v317_v60, %v316_v36  ;;  %v497_v1 = vpack.c.bf16 %v325_v61, %v324_v37  ;;  %v315_v2 = vsel %vm283_vm8, %v267_v46, %v299_v56  ;;  %v323_v3 = vsel %vm291_vm9, %v275_v47, %v307_v57  ;;  %v192_v4 = vpop.f32.mrf.mxu0  ;;  %v224_v10 = vpop.f32.mrf.mxu1 }
  0xe5   :  { %v472_v5 = vpack.c.bf16 %v315_v2, %v314_v48  ;;  %v492_v6 = vpack.c.bf16 %v323_v3, %v322_v49  ;;  %v304_v7 = vmul.f32 0.1, %v272_v62  ;;  %v247_v8 = vmul.f32 %v655_v14, %v189_v52 }
  0xe6   :  { %509 = vst [vmem:[%s723_s4 + $0x8] sm:$0xff] %v477_v0   ;;  %513 = vst [vmem:[%s723_s4 + $0x28] sm:$0xff] %v497_v1   ;;  %v255_v9 = vmul.f32 %v655_v14, %v221_v53  ;;  %vm288_vm10 = vcmp.gt.f32.partialorder %v272_v62, 0.0  ;;  %v250_v11 = vmul.f32 %v546_v58, %v655_v14  ;;  %v258_v12 = vmul.f32 %v554_v59, %v655_v14 }
  0xe7   :  { %473 = vst [vmem:[%s723_s4] sm:$0xff] %v472_v5   ;;  %512 = vst [vmem:[%s723_s4 + $0x20] sm:$0xff] %v492_v6   ;;  %v248_v13 = vmul.f32 %v655_v14, %v192_v4  ;;  %vm296_vm11 = vcmp.gt.f32.partialorder %v280_v63, 0.0  ;;  %v312_v15 = vmul.f32 0.1, %v280_v63  ;;  %v270_v17 = vadd.f32 %v660_v16, %v247_v8 }
  0xe8   :  { %v278_v18 = vadd.f32 %v660_v16, %v255_v9  ;;  %v273_v19 = vadd.f32 %v660_v16, %v250_v11  ;;  %v281_v20 = vadd.f32 %v660_v16, %v258_v12  ;;  %v256_v22 = vmul.f32 %v655_v14, %v224_v10 }
  0xe9   :  { %v271_v21 = vadd.f32 %v660_v16, %v248_v13  ;;  %v320_v23 = vsel %vm288_vm10, %v272_v62, %v304_v7  ;;  %vm286_vm12 = vcmp.gt.f32.partialorder %v270_v17, 0.0  ;;  %v302_v24 = vmul.f32 0.1, %v270_v17 }
  0xea   :  { %vm289_vm13 = vcmp.gt.f32.partialorder %v273_v19, 0.0  ;;  %v305_v25 = vmul.f32 0.1, %v273_v19  ;;  %vm297_vm14 = vcmp.gt.f32.partialorder %v281_v20, 0.0  ;;  %v313_v26 = vmul.f32 0.1, %v281_v20 }
  0xeb   :  { %v328_v27 = vsel %vm296_vm11, %v280_v63, %v312_v15  ;;  %vm294_vm15 = vcmp.gt.f32.partialorder %v278_v18, 0.0  ;;  %vm287_vm0 = vcmp.gt.f32.partialorder %v271_v21, 0.0  ;;  %v303_v28 = vmul.f32 0.1, %v271_v21 }
  0xec   :  { %v310_v29 = vmul.f32 0.1, %v278_v18  ;;  %v321_v30 = vsel %vm289_vm13, %v273_v19, %v305_v25  ;;  %v329_v31 = vsel %vm297_vm14, %v281_v20, %v313_v26  ;;  %v279_v32 = vadd.f32 %v660_v16, %v256_v22 }
  0xed   :  { %v318_v33 = vsel %vm286_vm12, %v270_v17, %v302_v24  ;;  %v487_v34 = vpack.c.bf16 %v321_v30, %v320_v23  ;;  %v507_v35 = vpack.c.bf16 %v329_v31, %v328_v27  ;;  %v319_v14 = vsel %vm287_vm0, %v271_v21, %v303_v28 }
  0xee   :  { %v482_v36 = vpack.c.bf16 %v319_v14, %v318_v33  ;;  %vm295_vm1 = vcmp.gt.f32.partialorder %v279_v32, 0.0  ;;  %v311_v37 = vmul.f32 0.1, %v279_v32  ;;  %v326_v38 = vsel %vm294_vm15, %v278_v18, %v310_v29 }
  0xef   :  { %511 = vst [vmem:[%s723_s4 + $0x18] sm:$0xff] %v487_v34   ;;  %515 = vst [vmem:[%s723_s4 + $0x38] sm:$0xff] %v507_v35  }
  0xf0   :  { %510 = vst [vmem:[%s723_s4 + $0x10] sm:$0xff] %v482_v36   ;;  %v327_v16 = vsel %vm295_vm1, %v279_v32, %v311_v37 }
  0xf1   :  { %v502_v39 = vpack.c.bf16 %v327_v16, %v326_v38 }
  0xf3   :  { %514 = vst [vmem:[%s723_s4 + $0x30] sm:$0xff] %v502_v39  }

// kernel: darknet_forward.11
= control target key start
LH: loop header
LB: loop body
LE: loop exit
PB: predicated region body
PF: predicated region fallthrough
CT: control target
= control target key end

     0   :  { %v734_v0 = vmov 0   ;;  %vm181_vm0 = vcmask 130048   ;;  %s943_s1 = inlined_call_operand.vmem [shape: bf16[144,128], index: 1, kind: input, shape index: {}]   ;;  %s944_s0 = inlined_call_operand.vmem [shape: bf16[128,144], index: 0, kind: input, shape index: {}]   ;;  %s945_s2 = inlined_call_operand.vmem [shape: f32[1,128], index: 2, kind: input, shape index: {}]   ;;  %s946_s3 = inlined_call_operand.vmem [shape: f32[1,128], index: 3, kind: input, shape index: {}]   ;;  %s947_s4 = inlined_call_operand.vmem [shape: bf16[128,128], index: 4, kind: input, shape index: {}]   ;;  %s948_s5 = inlined_call_operand.vmem [shape: bf16[128,128], index: 5, kind: output, shape index: {}]  }
   0x1   :  { %206 = vmatprep.subr.bf16.mxu0 %v734_v0  ;;  %682 = vmatprep.subr.bf16.mxu1 %v734_v0  ;;  %v701_v1 = vld [vmem:[%s943_s1 + $0x38] sm:$0xff]   ;;  %v702_v2 = vld [vmem:[%s943_s1 + $0x30] sm:$0xff]   ;;  %v703_v3 = vld [vmem:[%s943_s1 + $0x28] sm:$0xff]  }
   0x2   :  { %207 = vmatpush1.bf16.msra.mxu0 %v701_v1  ;;  %691 = vmatpush1.bf16.msra.mxu1 %v701_v1  ;;  %v704_v4 = vld [vmem:[%s943_s1 + $0x20] sm:$0xff]   ;;  %v705_v7 = vld [vmem:[%s943_s1 + $0x18] sm:$0xff]   ;;  %v706_v8 = vld [vmem:[%s943_s1 + $0x10] sm:$0xff]  }
   0x3   :  { %208 = vmatprep.subr.bf16.mxu0 %v734_v0  ;;  %683 = vmatprep.subr.bf16.mxu1 %v734_v0  ;;  %v712_v5 = vld [vmem:[%s944_s0 + $0x4] ss:$8 sps:$4 sm:$0xff]   ;;  %v710_v12 = vld [vmem:[%s944_s0] ss:$8 sps:$4 sm:$0xff]   ;;  %v716_v14 = vld [vmem:[%s944_s0 + $0x14] ss:$8 sps:$4 sm:$0xff]  }
   0x4   :  { %v715_v6 = vld [vmem:[%s944_s0 + $0x44] ss:$8 sps:$4 sm:$0xff]   ;;  %554 = vmatprep.mubr.msk.bf16.mxu0 %vm181_vm0, %v712_v5  ;;  %v713_v13 = vld [vmem:[%s944_s0 + $0x40] ss:$8 sps:$4 sm:$0xff]   ;;  %v718_v15 = vld [vmem:[%s944_s0 + $0x54] ss:$8 sps:$4 sm:$0xff]  }
   0x5   :  { %558 = vmatprep.mubr.msk.bf16.mxu1 %vm181_vm0, %v715_v6  ;;  %v707_v9 = vld [vmem:[%s943_s1 + $0x8] sm:$0xff]   ;;  %v708_v10 = vld [vmem:[%s943_s1] sm:$0xff]   ;;  %v720_v16 = vld [vmem:[%s944_s0 + $0x10] ss:$8 sps:$4 sm:$0xff]  }
   0x6   :  { %209 = vmatpush1.bf16.msra.mxu0 %v702_v2  ;;  %692 = vmatpush1.bf16.msra.mxu1 %v702_v2  ;;  %v709_v11 = vld [vmem:[%s943_s1 + $0x40] sm:$0xff]   ;;  %v721_v17 = vld [vmem:[%s944_s0 + $0x50] ss:$8 sps:$4 sm:$0xff]   ;;  %v728_v22 = vld [vmem:[%s944_s0 + $0x34] ss:$8 sps:$4 sm:$0xff]  }
   0x7   :  { %210 = vmatprep.subr.bf16.mxu0 %v734_v0  ;;  %684 = vmatprep.subr.bf16.mxu1 %v734_v0  ;;  %v722_v18 = vld [vmem:[%s944_s0 + $0x24] ss:$8 sps:$4 sm:$0xff]   ;;  %v726_v20 = vld [vmem:[%s944_s0 + $0x20] ss:$8 sps:$4 sm:$0xff]   ;;  %v730_v23 = vld [vmem:[%s944_s0 + $0x74] ss:$8 sps:$4 sm:$0xff]  }
   0x8   :  { %v724_v19 = vld [vmem:[%s944_s0 + $0x64] ss:$8 sps:$4 sm:$0xff]   ;;  %v727_v21 = vld [vmem:[%s944_s0 + $0x60] ss:$8 sps:$4 sm:$0xff]   ;;  %v732_v24 = vld [vmem:[%s944_s0 + $0x30] ss:$8 sps:$4 sm:$0xff]  }
   0x9   :  { %v733_v25 = vld [vmem:[%s944_s0 + $0x70] ss:$8 sps:$4 sm:$0xff]   ;;  %v851_v26 = vld [vmem:[%s945_s2] ss:$0 sm:$0xff]  ;;  %v672_v5 = vld [vmem:[%s947_s4 + $0x28] sm:$0xff]  }
   0xa   :  { %211 = vmatpush1.bf16.msra.mxu0 %v703_v3  ;;  %693 = vmatpush1.bf16.msra.mxu1 %v703_v3  ;;  %v856_v28 = vld [vmem:[%s946_s3] ss:$0 sm:$0xff] }
   0xb   :  { %212 = vmatprep.subr.bf16.mxu0 %v734_v0  ;;  %685 = vmatprep.subr.bf16.mxu1 %v734_v0  ;;  %v597_v36 = vld [vmem:[%s947_s4] sm:$0xff]  }
   0xc   :  { %v671_v37 = vld [vmem:[%s947_s4 + $0x20] sm:$0xff]   ;;  %v598_v46 = vunpack.c.l.bf16 %v597_v36  ;;  %v599_v49 = vunpack.c.h.bf16 %v597_v36 }
   0xd   :  { %v614_v47 = vunpack.c.l.bf16 %v671_v37  ;;  %v615_v51 = vunpack.c.h.bf16 %v671_v37 }
   0xe   :  { %213 = vmatpush1.bf16.msra.mxu0 %v704_v4  ;;  %694 = vmatpush1.bf16.msra.mxu1 %v704_v4  ;;  %v668_v4 = vld [vmem:[%s947_s4 + $0x8] sm:$0xff]  }
   0xf   :  { %214 = vmatprep.subr.bf16.mxu0 %v734_v0  ;;  %686 = vmatprep.subr.bf16.mxu1 %v734_v0 }
  0x12   :  { %215 = vmatpush1.bf16.msra.mxu0 %v705_v7  ;;  %695 = vmatpush1.bf16.msra.mxu1 %v705_v7 }
  0x13   :  { %216 = vmatprep.subr.bf16.mxu0 %v734_v0  ;;  %687 = vmatprep.subr.bf16.mxu1 %v734_v0 }
  0x16   :  { %217 = vmatpush1.bf16.msra.mxu0 %v706_v8  ;;  %696 = vmatpush1.bf16.msra.mxu1 %v706_v8 }
  0x17   :  { %218 = vmatprep.subr.bf16.mxu0 %v734_v0  ;;  %688 = vmatprep.subr.bf16.mxu1 %v734_v0 }
  0x1a   :  { %219 = vmatpush1.bf16.msra.mxu0 %v707_v9  ;;  %697 = vmatpush1.bf16.msra.mxu1 %v707_v9 }
  0x1b   :  { %220 = vmatprep.subr.bf16.mxu0 %v734_v0  ;;  %689 = vmatprep.subr.bf16.mxu1 %v734_v0 }
  0x1e   :  { %221 = vmatpush1.bf16.msra.mxu0 %v708_v10  ;;  %698 = vmatpush1.bf16.msra.mxu1 %v708_v10 }
  0x1f   :  { %236 = vmatprep.subr.bf16.mxu0 %v734_v0  ;;  %690 = vmatprep.subr.bf16.mxu1 %v734_v0 }
  0x22   :  { %237 = vmatpush2.bf16.msra.mxu0 %v709_v11  ;;  %699 = vmatpush2.bf16.msra.mxu1 %v709_v11 }
  0x25   :  { %239 = vmatmul.mubr.bf16.vlgmr.msra.gmra.mxu0 %v710_v12  ;;  %271 = vmatmul.mubr.bf16.vlgmr.msra.gmra.mxu1 %v713_v13 }
  0x26   :  { %555 = vmatprep.mubr.msk.bf16.mxu0 %vm181_vm0, %v716_v14  ;;  %559 = vmatprep.mubr.msk.bf16.mxu1 %vm181_vm0, %v718_v15 }
  0x2d   :  { %247 = vmatmul.mubr.bf16.gmra.mxu0 %v720_v16  ;;  %279 = vmatmul.mubr.bf16.gmra.mxu1 %v721_v17 }
  0x2e   :  { %556 = vmatprep.mubr.msk.bf16.mxu0 %vm181_vm0, %v722_v18  ;;  %560 = vmatprep.mubr.msk.bf16.mxu1 %vm181_vm0, %v724_v19  ;;  %v602_v18 = vunpack.c.l.bf16 %v668_v4  ;;  %v618_v19 = vunpack.c.l.bf16 %v672_v5 }
  0x35   :  { %255 = vmatmul.mubr.bf16.gmra.mxu0 %v726_v20  ;;  %287 = vmatmul.mubr.bf16.gmra.mxu1 %v727_v21  ;;  %v603_v21 = vunpack.c.h.bf16 %v668_v4 }
  0x36   :  { %557 = vmatprep.mubr.msk.bf16.mxu0 %vm181_vm0, %v728_v22  ;;  %561 = vmatprep.mubr.msk.bf16.mxu1 %vm181_vm0, %v730_v23  ;;  %v619_v23 = vunpack.c.h.bf16 %v672_v5 }
  0x3d   :  { %263 = vmatmul.mubr.bf16.gmra.mxu0 %v732_v24  ;;  %295 = vmatmul.mubr.bf16.gmra.mxu1 %v733_v25 }
  0xe5   :  { %v240_v27 = vpop.f32.mrf.mxu0  ;;  %v272_v29 = vpop.f32.mrf.mxu1 }
  0xe6   :  { %v310_v30 = vmul.f32 %v851_v26, %v240_v27  ;;  %v318_v31 = vmul.f32 %v851_v26, %v272_v29 }
  0xe7   :  { %v242_v32 = vpop.f32.mrf.mxu0  ;;  %v274_v33 = vpop.f32.mrf.mxu1 }
  0xe8   :  { %v333_v34 = vadd.f32 %v856_v28, %v310_v30  ;;  %v341_v35 = vadd.f32 %v856_v28, %v318_v31 }
  0xe9   :  { %v243_v38 = vpop.f32.mrf.mxu0  ;;  %v275_v39 = vpop.f32.mrf.mxu1 }
  0xea   :  { %v365_v40 = vmul.f32 0.1, %v333_v34  ;;  %v373_v41 = vmul.f32 0.1, %v341_v35  ;;  %vm349_vm1 = vcmp.gt.f32.partialorder %v333_v34, 0.0  ;;  %vm357_vm2 = vcmp.gt.f32.partialorder %v341_v35, 0.0 }
  0xeb   :  { %v311_v42 = vmul.f32 %v851_v26, %v243_v38  ;;  %v319_v43 = vmul.f32 %v851_v26, %v275_v39  ;;  %v245_v44 = vpop.f32.mrf.mxu0  ;;  %v277_v45 = vpop.f32.mrf.mxu1 }
  0xec   :  { %v381_v54 = vsel %vm349_vm1, %v333_v34, %v365_v40  ;;  %v389_v55 = vsel %vm357_vm2, %v341_v35, %v373_v41 }
  0xed   :  { %v334_v48 = vadd.f32 %v856_v28, %v311_v42  ;;  %v342_v50 = vadd.f32 %v856_v28, %v319_v43  ;;  %v248_v52 = vpop.f32.mrf.mxu0  ;;  %v280_v53 = vpop.f32.mrf.mxu1  ;;  %v429_v0 = vadd.f32 %v598_v46, %v381_v54  ;;  %v437_v1 = vadd.f32 %v614_v47, %v389_v55  ;;  %v669_v42 = vld [vmem:[%s947_s4 + $0x10] sm:$0xff]  }
  0xee   :  { %v312_v56 = vmul.f32 %v851_v26, %v248_v52  ;;  %v320_v57 = vmul.f32 %v851_v26, %v280_v53  ;;  %v673_v43 = vld [vmem:[%s947_s4 + $0x30] sm:$0xff]  }
  0xef   :  { %vm350_vm3 = vcmp.gt.f32.partialorder %v334_v48, 0.0  ;;  %v366_v58 = vmul.f32 0.1, %v334_v48  ;;  %vm358_vm4 = vcmp.gt.f32.partialorder %v342_v50, 0.0  ;;  %v374_v59 = vmul.f32 0.1, %v342_v50  ;;  %v250_v60 = vpop.f32.mrf.mxu0  ;;  %v282_v61 = vpop.f32.mrf.mxu1 }
  0xf0   :  { %v335_v62 = vadd.f32 %v856_v28, %v312_v56  ;;  %v343_v63 = vadd.f32 %v856_v28, %v320_v57  ;;  %v606_v56 = vunpack.c.l.bf16 %v669_v42  ;;  %v622_v57 = vunpack.c.l.bf16 %v673_v43 }
  0xf1   :  { %v382_v2 = vsel %vm350_vm3, %v334_v48, %v366_v58  ;;  %v390_v3 = vsel %vm358_vm4, %v342_v50, %v374_v59  ;;  %v251_v6 = vpop.f32.mrf.mxu0  ;;  %v283_v7 = vpop.f32.mrf.mxu1  ;;  %v607_v59 = vunpack.c.h.bf16 %v669_v42  ;;  %v623_v61 = vunpack.c.h.bf16 %v673_v43 }
  0xf2   :  { %v430_v8 = vadd.f32 %v599_v49, %v382_v2  ;;  %v438_v9 = vadd.f32 %v615_v51, %v390_v3  ;;  %vm351_vm5 = vcmp.gt.f32.partialorder %v335_v62, 0.0  ;;  %v367_v10 = vmul.f32 0.1, %v335_v62 }
  0xf3   :  { %vm359_vm6 = vcmp.gt.f32.partialorder %v343_v63, 0.0  ;;  %v375_v11 = vmul.f32 0.1, %v343_v63  ;;  %v313_v12 = vmul.f32 %v851_v26, %v251_v6  ;;  %v321_v13 = vmul.f32 %v851_v26, %v283_v7  ;;  %v253_v14 = vpop.f32.mrf.mxu0  ;;  %v285_v15 = vpop.f32.mrf.mxu1 }
  0xf4   :  { %v631_v16 = vpack.c.bf16 %v430_v8, %v429_v0  ;;  %v651_v17 = vpack.c.bf16 %v438_v9, %v437_v1  ;;  %v383_v27 = vsel %vm351_vm5, %v335_v62, %v367_v10 }
  0xf5   :  { %v336_v20 = vadd.f32 %v856_v28, %v313_v12  ;;  %v344_v22 = vadd.f32 %v856_v28, %v321_v13  ;;  %v256_v24 = vpop.f32.mrf.mxu0  ;;  %v288_v25 = vpop.f32.mrf.mxu1  ;;  %v391_v29 = vsel %vm359_vm6, %v343_v63, %v375_v11  ;;  %v431_v38 = vadd.f32 %v602_v18, %v383_v27 }
  0xf6   :  { %632 = vst [vmem:[%s948_s5] sm:$0xff] %v631_v16   ;;  %678 = vst [vmem:[%s948_s5 + $0x20] sm:$0xff] %v651_v17   ;;  %v314_v30 = vmul.f32 %v851_v26, %v256_v24  ;;  %v322_v31 = vmul.f32 %v851_v26, %v288_v25  ;;  %v439_v39 = vadd.f32 %v618_v19, %v391_v29  ;;  %v670_v19 = vld [vmem:[%s947_s4 + $0x18] sm:$0xff]  }
  0xf7   :  { %vm352_vm7 = vcmp.gt.f32.partialorder %v336_v20, 0.0  ;;  %v368_v32 = vmul.f32 0.1, %v336_v20  ;;  %vm360_vm8 = vcmp.gt.f32.partialorder %v344_v22, 0.0  ;;  %v376_v33 = vmul.f32 0.1, %v344_v22  ;;  %v258_v34 = vpop.f32.mrf.mxu0  ;;  %v290_v35 = vpop.f32.mrf.mxu1 }
  0xf8   :  { %v337_v36 = vadd.f32 %v856_v28, %v314_v30  ;;  %v345_v37 = vadd.f32 %v856_v28, %v322_v31  ;;  %v610_v30 = vunpack.c.l.bf16 %v670_v19  ;;  %v611_v35 = vunpack.c.h.bf16 %v670_v19 }
  0xf9   :  { %v384_v40 = vsel %vm352_vm7, %v336_v20, %v368_v32  ;;  %v392_v41 = vsel %vm360_vm8, %v344_v22, %v376_v33  ;;  %v259_v44 = vpop.f32.mrf.mxu0  ;;  %v291_v45 = vpop.f32.mrf.mxu1  ;;  %v674_v20 = vld [vmem:[%s947_s4 + $0x38] sm:$0xff]  }
  0xfa   :  { %v432_v46 = vadd.f32 %v603_v21, %v384_v40  ;;  %v440_v47 = vadd.f32 %v619_v23, %v392_v41  ;;  %vm353_vm9 = vcmp.gt.f32.partialorder %v337_v36, 0.0  ;;  %v369_v48 = vmul.f32 0.1, %v337_v36 }
  0xfb   :  { %vm361_vm10 = vcmp.gt.f32.partialorder %v345_v37, 0.0  ;;  %v377_v49 = vmul.f32 0.1, %v345_v37  ;;  %v315_v50 = vmul.f32 %v851_v26, %v259_v44  ;;  %v323_v51 = vmul.f32 %v851_v26, %v291_v45  ;;  %v261_v52 = vpop.f32.mrf.mxu0  ;;  %v293_v53 = vpop.f32.mrf.mxu1 }
  0xfc   :  { %v636_v54 = vpack.c.bf16 %v432_v46, %v431_v38  ;;  %v656_v55 = vpack.c.bf16 %v440_v47, %v439_v39  ;;  %v385_v0 = vsel %vm353_vm9, %v337_v36, %v369_v48  ;;  %v626_v31 = vunpack.c.l.bf16 %v674_v20 }
  0xfd   :  { %v338_v58 = vadd.f32 %v856_v28, %v315_v50  ;;  %v346_v60 = vadd.f32 %v856_v28, %v323_v51  ;;  %v264_v62 = vpop.f32.mrf.mxu0  ;;  %v296_v63 = vpop.f32.mrf.mxu1  ;;  %v393_v1 = vsel %vm361_vm10, %v345_v37, %v377_v49  ;;  %v433_v10 = vadd.f32 %v606_v56, %v385_v0 }
  0xfe   :  { %675 = vst [vmem:[%s948_s5 + $0x8] sm:$0xff] %v636_v54   ;;  %679 = vst [vmem:[%s948_s5 + $0x28] sm:$0xff] %v656_v55   ;;  %v316_v2 = vmul.f32 %v851_v26, %v264_v62  ;;  %v324_v3 = vmul.f32 %v851_v26, %v296_v63  ;;  %v441_v11 = vadd.f32 %v622_v57, %v393_v1  ;;  %v627_v36 = vunpack.c.h.bf16 %v674_v20 }
  0xff   :  { %vm354_vm11 = vcmp.gt.f32.partialorder %v338_v58, 0.0  ;;  %v370_v4 = vmul.f32 0.1, %v338_v58  ;;  %vm362_vm12 = vcmp.gt.f32.partialorder %v346_v60, 0.0  ;;  %v378_v5 = vmul.f32 0.1, %v346_v60  ;;  %v266_v6 = vpop.f32.mrf.mxu0  ;;  %v298_v7 = vpop.f32.mrf.mxu1 }
 0x100   :  { %v339_v8 = vadd.f32 %v856_v28, %v316_v2  ;;  %v347_v9 = vadd.f32 %v856_v28, %v324_v3 }
 0x101   :  { %v386_v12 = vsel %vm354_vm11, %v338_v58, %v370_v4  ;;  %v394_v13 = vsel %vm362_vm12, %v346_v60, %v378_v5  ;;  %v267_v14 = vpop.f32.mrf.mxu0  ;;  %v299_v15 = vpop.f32.mrf.mxu1 }
 0x102   :  { %v434_v16 = vadd.f32 %v607_v59, %v386_v12  ;;  %v442_v17 = vadd.f32 %v623_v61, %v394_v13  ;;  %vm355_vm13 = vcmp.gt.f32.partialorder %v339_v8, 0.0  ;;  %v371_v18 = vmul.f32 0.1, %v339_v8 }
 0x103   :  { %vm363_vm14 = vcmp.gt.f32.partialorder %v347_v9, 0.0  ;;  %v379_v21 = vmul.f32 0.1, %v347_v9  ;;  %v317_v22 = vmul.f32 %v851_v26, %v267_v14  ;;  %v325_v23 = vmul.f32 %v851_v26, %v299_v15  ;;  %v269_v24 = vpop.f32.mrf.mxu0  ;;  %v301_v25 = vpop.f32.mrf.mxu1 }
 0x104   :  { %v641_v27 = vpack.c.bf16 %v434_v16, %v433_v10  ;;  %v661_v29 = vpack.c.bf16 %v442_v17, %v441_v11  ;;  %v387_v26 = vsel %vm355_vm13, %v339_v8, %v371_v18 }
 0x105   :  { %v340_v32 = vadd.f32 %v856_v28, %v317_v22  ;;  %v348_v33 = vadd.f32 %v856_v28, %v325_v23  ;;  %v395_v34 = vsel %vm363_vm14, %v347_v9, %v379_v21  ;;  %v435_v28 = vadd.f32 %v610_v30, %v387_v26 }
 0x106   :  { %676 = vst [vmem:[%s948_s5 + $0x10] sm:$0xff] %v641_v27   ;;  %680 = vst [vmem:[%s948_s5 + $0x30] sm:$0xff] %v661_v29   ;;  %v443_v41 = vadd.f32 %v626_v31, %v395_v34 }
 0x107   :  { %vm356_vm15 = vcmp.gt.f32.partialorder %v340_v32, 0.0  ;;  %v372_v37 = vmul.f32 0.1, %v340_v32  ;;  %vm364_vm0 = vcmp.gt.f32.partialorder %v348_v33, 0.0  ;;  %v380_v38 = vmul.f32 0.1, %v348_v33 }
 0x109   :  { %v388_v39 = vsel %vm356_vm15, %v340_v32, %v372_v37  ;;  %v396_v40 = vsel %vm364_vm0, %v348_v33, %v380_v38 }
 0x10a   :  { %v436_v42 = vadd.f32 %v611_v35, %v388_v39  ;;  %v444_v43 = vadd.f32 %v627_v36, %v396_v40 }
 0x10c   :  { %v646_v44 = vpack.c.bf16 %v436_v42, %v435_v28  ;;  %v666_v45 = vpack.c.bf16 %v444_v43, %v443_v41 }
 0x10e   :  { %677 = vst [vmem:[%s948_s5 + $0x18] sm:$0xff] %v646_v44   ;;  %681 = vst [vmem:[%s948_s5 + $0x38] sm:$0xff] %v666_v45  }

// kernel: darknet_forward.13
= control target key start
LH: loop header
LB: loop body
LE: loop exit
PB: predicated region body
PF: predicated region fallthrough
CT: control target
= control target key end

     0   :  { %vm82_vm0 = vcmask 130048   ;;  %s645_s1 = inlined_call_operand.vmem [shape: bf16[16,128], index: 1, kind: input, shape index: {}]   ;;  %s646_s0 = inlined_call_operand.vmem [shape: bf16[128,16], index: 0, kind: input, shape index: {}]   ;;  %s647_s2 = inlined_call_operand.vmem [shape: f32[1,128], index: 2, kind: input, shape index: {}]   ;;  %s648_s3 = inlined_call_operand.vmem [shape: f32[1,128], index: 3, kind: input, shape index: {}]   ;;  %s649_s4 = inlined_call_operand.vmem [shape: bf16[128,128], index: 4, kind: output, shape index: {}]  }
   0x1   :  { %v509_v0 = vld [vmem:[%s645_s1] sm:$0xff]   ;;  %v512_v3 = vld [vmem:[%s646_s0 + $0x8] sm:$0xff]   ;;  %v514_v5 = vld [vmem:[%s646_s0 + $0x10] sm:$0xff]  }
   0x2   :  { %v510_v1 = vld [vmem:[%s646_s0] sm:$0xff]   ;;  %489 = vmatprep.subr.bf16.mxu0 %v509_v0  ;;  %507 = vmatprep.subr.bf16.mxu1 %v509_v0  ;;  %v513_v4 = vld [vmem:[%s646_s0 + $0x28] sm:$0xff]   ;;  %v515_v6 = vld [vmem:[%s646_s0 + $0x30] sm:$0xff]  }
   0x3   :  { %v511_v2 = vld [vmem:[%s646_s0 + $0x20] sm:$0xff]   ;;  %490 = vmatpush3.bf16.msra.mxu0 %v509_v0  ;;  %508 = vmatpush3.bf16.msra.mxu1 %v509_v0  ;;  %v516_v7 = vld [vmem:[%s646_s0 + $0x18] sm:$0xff]  }
   0x4   :  { %491 = vmatprep.mubr.msk.bf16.mxu0 %vm82_vm0, %v510_v1  ;;  %499 = vmatprep.mubr.msk.bf16.mxu1 %vm82_vm0, %v511_v2  ;;  %v517_v8 = vld [vmem:[%s646_s0 + $0x38] sm:$0xff]   ;;  %v581_v9 = vld [vmem:[%s647_s2] ss:$0 sm:$0xff] }
   0x5   :  { %v586_v11 = vld [vmem:[%s648_s3] ss:$0 sm:$0xff] }
   0x6   :  { %492 = vmatmul.mubr.msk.bf16.vlgmr.msra.gmra.mxu0 %vm82_vm0, %v512_v3  ;;  %500 = vmatmul.mubr.msk.bf16.vlgmr.msra.gmra.mxu1 %vm82_vm0, %v513_v4 }
   0x7   :  { %495 = vmatprep.mubr.msk.bf16.mxu0 %vm82_vm0, %v514_v5  ;;  %503 = vmatprep.mubr.msk.bf16.mxu1 %vm82_vm0, %v515_v6 }
   0xe   :  { %496 = vmatmul.mubr.msk.bf16.gmra.mxu0 %vm82_vm0, %v516_v7  ;;  %504 = vmatmul.mubr.msk.bf16.gmra.mxu1 %vm82_vm0, %v517_v8 }
  0xc6   :  { %v493_v10 = vpop.f32.mrf.mxu0  ;;  %v501_v12 = vpop.f32.mrf.mxu1 }
  0xc7   :  { %v213_v13 = vmul.f32 %v493_v10, %v581_v9  ;;  %v221_v14 = vmul.f32 %v501_v12, %v581_v9 }
  0xc8   :  { %v141_v15 = vpop.f32.mrf.mxu0  ;;  %v173_v16 = vpop.f32.mrf.mxu1 }
  0xc9   :  { %v236_v17 = vadd.f32 %v586_v11, %v213_v13  ;;  %v244_v18 = vadd.f32 %v586_v11, %v221_v14  ;;  %v211_v19 = vmul.f32 %v581_v9, %v141_v15  ;;  %v219_v20 = vmul.f32 %v581_v9, %v173_v16 }
  0xca   :  { %v494_v21 = vpop.f32.mrf.mxu0  ;;  %v502_v22 = vpop.f32.mrf.mxu1 }
  0xcb   :  { %vm252_vm1 = vcmp.gt.f32.partialorder %v236_v17, 0.0  ;;  %v268_v23 = vmul.f32 0.1, %v236_v17  ;;  %vm260_vm2 = vcmp.gt.f32.partialorder %v244_v18, 0.0  ;;  %v276_v24 = vmul.f32 0.1, %v244_v18 }
  0xcc   :  { %v234_v25 = vadd.f32 %v586_v11, %v211_v19  ;;  %v242_v26 = vadd.f32 %v586_v11, %v219_v20  ;;  %v214_v27 = vmul.f32 %v494_v21, %v581_v9  ;;  %v222_v28 = vmul.f32 %v502_v22, %v581_v9  ;;  %v144_v29 = vpop.f32.mrf.mxu0  ;;  %v176_v30 = vpop.f32.mrf.mxu1 }
  0xcd   :  { %v284_v31 = vsel %vm252_vm1, %v236_v17, %v268_v23  ;;  %v292_v32 = vsel %vm260_vm2, %v244_v18, %v276_v24  ;;  %v212_v33 = vmul.f32 %v581_v9, %v144_v29  ;;  %v220_v34 = vmul.f32 %v581_v9, %v176_v30 }
  0xce   :  { %vm250_vm3 = vcmp.gt.f32.partialorder %v234_v25, 0.0  ;;  %v266_v35 = vmul.f32 0.1, %v234_v25  ;;  %vm258_vm4 = vcmp.gt.f32.partialorder %v242_v26, 0.0  ;;  %v274_v36 = vmul.f32 0.1, %v242_v26  ;;  %v497_v37 = vpop.f32.mrf.mxu0  ;;  %v505_v38 = vpop.f32.mrf.mxu1 }
  0xcf   :  { %v237_v39 = vadd.f32 %v586_v11, %v214_v27  ;;  %v245_v40 = vadd.f32 %v586_v11, %v222_v28  ;;  %v235_v41 = vadd.f32 %v586_v11, %v212_v33  ;;  %v243_v42 = vadd.f32 %v586_v11, %v220_v34 }
  0xd0   :  { %v282_v43 = vsel %vm250_vm3, %v234_v25, %v266_v35  ;;  %v290_v44 = vsel %vm258_vm4, %v242_v26, %v274_v36  ;;  %v217_v45 = vmul.f32 %v497_v37, %v581_v9  ;;  %v225_v46 = vmul.f32 %v505_v38, %v581_v9  ;;  %v157_v47 = vpop.f32.mrf.mxu0  ;;  %v189_v48 = vpop.f32.mrf.mxu1 }
  0xd1   :  { %vm253_vm5 = vcmp.gt.f32.partialorder %v237_v39, 0.0  ;;  %v269_v49 = vmul.f32 0.1, %v237_v39  ;;  %vm261_vm6 = vcmp.gt.f32.partialorder %v245_v40, 0.0  ;;  %v277_v50 = vmul.f32 0.1, %v245_v40 }
  0xd2   :  { %vm251_vm7 = vcmp.gt.f32.partialorder %v235_v41, 0.0  ;;  %v267_v51 = vmul.f32 0.1, %v235_v41  ;;  %vm259_vm8 = vcmp.gt.f32.partialorder %v243_v42, 0.0  ;;  %v275_v52 = vmul.f32 0.1, %v243_v42  ;;  %v498_v53 = vpop.f32.mrf.mxu0  ;;  %v506_v54 = vpop.f32.mrf.mxu1 }
  0xd3   :  { %v285_v55 = vsel %vm253_vm5, %v237_v39, %v269_v49  ;;  %v293_v56 = vsel %vm261_vm6, %v245_v40, %v277_v50  ;;  %v240_v57 = vadd.f32 %v586_v11, %v217_v45  ;;  %v248_v58 = vadd.f32 %v586_v11, %v225_v46 }
  0xd4   :  { %v441_v59 = vpack.c.bf16 %v285_v55, %v284_v31  ;;  %v461_v60 = vpack.c.bf16 %v293_v56, %v292_v32  ;;  %v283_v61 = vsel %vm251_vm7, %v235_v41, %v267_v51  ;;  %v291_v62 = vsel %vm259_vm8, %v243_v42, %v275_v52  ;;  %v160_v63 = vpop.f32.mrf.mxu0  ;;  %v192_v5 = vpop.f32.mrf.mxu1 }
  0xd5   :  { %v436_v0 = vpack.c.bf16 %v283_v61, %v282_v43  ;;  %v456_v1 = vpack.c.bf16 %v291_v62, %v290_v44  ;;  %v272_v2 = vmul.f32 0.1, %v240_v57  ;;  %v215_v3 = vmul.f32 %v581_v9, %v157_v47 }
  0xd6   :  { %473 = vst [vmem:[%s649_s4 + $0x8] sm:$0xff] %v441_v59   ;;  %477 = vst [vmem:[%s649_s4 + $0x28] sm:$0xff] %v461_v60   ;;  %v223_v4 = vmul.f32 %v581_v9, %v189_v48  ;;  %vm256_vm9 = vcmp.gt.f32.partialorder %v240_v57, 0.0  ;;  %v218_v6 = vmul.f32 %v498_v53, %v581_v9  ;;  %v226_v7 = vmul.f32 %v506_v54, %v581_v9 }
  0xd7   :  { %437 = vst [vmem:[%s649_s4] sm:$0xff] %v436_v0   ;;  %476 = vst [vmem:[%s649_s4 + $0x20] sm:$0xff] %v456_v1   ;;  %v216_v8 = vmul.f32 %v581_v9, %v160_v63  ;;  %vm264_vm10 = vcmp.gt.f32.partialorder %v248_v58, 0.0  ;;  %v280_v10 = vmul.f32 0.1, %v248_v58  ;;  %v238_v12 = vadd.f32 %v586_v11, %v215_v3 }
  0xd8   :  { %v246_v13 = vadd.f32 %v586_v11, %v223_v4  ;;  %v241_v14 = vadd.f32 %v586_v11, %v218_v6  ;;  %v249_v15 = vadd.f32 %v586_v11, %v226_v7  ;;  %v224_v17 = vmul.f32 %v581_v9, %v192_v5 }
  0xd9   :  { %v239_v16 = vadd.f32 %v586_v11, %v216_v8  ;;  %v288_v18 = vsel %vm256_vm9, %v240_v57, %v272_v2  ;;  %vm254_vm11 = vcmp.gt.f32.partialorder %v238_v12, 0.0  ;;  %v270_v19 = vmul.f32 0.1, %v238_v12 }
  0xda   :  { %vm257_vm12 = vcmp.gt.f32.partialorder %v241_v14, 0.0  ;;  %v273_v20 = vmul.f32 0.1, %v241_v14  ;;  %vm265_vm13 = vcmp.gt.f32.partialorder %v249_v15, 0.0  ;;  %v281_v21 = vmul.f32 0.1, %v249_v15 }
  0xdb   :  { %v296_v22 = vsel %vm264_vm10, %v248_v58, %v280_v10  ;;  %vm262_vm14 = vcmp.gt.f32.partialorder %v246_v13, 0.0  ;;  %vm255_vm15 = vcmp.gt.f32.partialorder %v239_v16, 0.0  ;;  %v271_v23 = vmul.f32 0.1, %v239_v16 }
  0xdc   :  { %v278_v24 = vmul.f32 0.1, %v246_v13  ;;  %v289_v25 = vsel %vm257_vm12, %v241_v14, %v273_v20  ;;  %v297_v26 = vsel %vm265_vm13, %v249_v15, %v281_v21  ;;  %v247_v27 = vadd.f32 %v586_v11, %v224_v17 }
  0xdd   :  { %v286_v28 = vsel %vm254_vm11, %v238_v12, %v270_v19  ;;  %v451_v29 = vpack.c.bf16 %v289_v25, %v288_v18  ;;  %v471_v30 = vpack.c.bf16 %v297_v26, %v296_v22  ;;  %v287_v9 = vsel %vm255_vm15, %v239_v16, %v271_v23 }
  0xde   :  { %v446_v31 = vpack.c.bf16 %v287_v9, %v286_v28  ;;  %vm263_vm0 = vcmp.gt.f32.partialorder %v247_v27, 0.0  ;;  %v279_v32 = vmul.f32 0.1, %v247_v27  ;;  %v294_v33 = vsel %vm262_vm14, %v246_v13, %v278_v24 }
  0xdf   :  { %475 = vst [vmem:[%s649_s4 + $0x18] sm:$0xff] %v451_v29   ;;  %479 = vst [vmem:[%s649_s4 + $0x38] sm:$0xff] %v471_v30  }
  0xe0   :  { %474 = vst [vmem:[%s649_s4 + $0x10] sm:$0xff] %v446_v31   ;;  %v295_v11 = vsel %vm263_vm0, %v247_v27, %v279_v32 }
  0xe1   :  { %v466_v34 = vpack.c.bf16 %v295_v11, %v294_v33 }
  0xe3   :  { %478 = vst [vmem:[%s649_s4 + $0x30] sm:$0xff] %v466_v34  }

// kernel: darknet_forward.14
= control target key start
LH: loop header
LB: loop body
LE: loop exit
PB: predicated region body
PF: predicated region fallthrough
CT: control target
= control target key end

     0   :  { %vm156_vm0 = vcmask 1040384   ;;  %vm510_vm1 = vcmask 60416   ;;  %vm205_vm2 = vcmask 1046528   ;;  %s1527_s0 = inlined_call_operand.vmem [shape: bf16[2,8,8,8], index: 0, kind: input, shape index: {}]   ;;  %s1528_s1 = inlined_call_operand.vmem [shape: bf16[2,8,8,8], index: 1, kind: output, shape index: {0}]   ;;  %s1529_s2 = inlined_call_operand.vmem [shape: bf16[2,8,8,8], index: 2, kind: output, shape index: {1}]   ;;  %s1530_s3 = inlined_call_operand.vmem [shape: bf16[2,8,8,8], index: 3, kind: output, shape index: {2}]   ;;  %s1531_s4 = inlined_call_operand.vmem [shape: bf16[2,8,8,8], index: 4, kind: output, shape index: {3}]  }
   0x1   :  { %v640_v0 = vld [vmem:[%s1527_s0] sm:$0xff]   ;;  %v671_v1 = vld [vmem:[%s1527_s0 + $0x8] sm:$0xff]   ;;  %v672_v2 = vld [vmem:[%s1527_s0 + $0x10] sm:$0xff]  }
   0x2   :  { %v641_v3 = vunpack.c.l.bf16 %v640_v0  ;;  %v642_v4 = vunpack.c.h.bf16 %v640_v0  ;;  %v645_v5 = vunpack.c.l.bf16 %v671_v1  ;;  %v646_v6 = vunpack.c.h.bf16 %v671_v1  ;;  %v715_v7 = vld [vmem:[%s1527_s0 + $0x18] sm:$0xff]   ;;  %v674_v56 = vld [vmem:[%s1527_s0 + $0x20] sm:$0xff]  }
   0x3   :  { %v649_v8 = vunpack.c.l.bf16 %v672_v2  ;;  %v650_v9 = vunpack.c.h.bf16 %v672_v2  ;;  %v653_v10 = vunpack.c.l.bf16 %v715_v7  ;;  %v1532_v11 = vunpack.c.h.bf16 %v715_v7 }
   0x4   :  { %v44_v12 = vmul.f32 0.25, %v641_v3  ;;  %v719_v13 = vmul.f32 0.75, %v641_v3  ;;  %v721_v14 = vmul.f32 0.75, %v642_v4  ;;  %v723_v15 = vmul.f32 0.25, %v642_v4 }
   0x5   :  { %v725_v16 = vmul.f32 0.75, %v645_v5  ;;  %v727_v17 = vmul.f32 0.25, %v645_v5  ;;  %v729_v18 = vmul.f32 0.75, %v646_v6  ;;  %v731_v19 = vmul.f32 0.25, %v646_v6  ;;  %v675_v5 = vld [vmem:[%s1527_s0 + $0x28] sm:$0xff]  }
   0x6   :  { %v734_v20 = vadd.f32 %v719_v13, %v44_v12  ;;  %v737_v21 = vadd.f32 %v721_v14, %v44_v12  ;;  %v739_v22 = vmul.f32 0.75, %v649_v8  ;;  %v741_v23 = vmul.f32 0.25, %v649_v8 }
   0x7   :  { %v745_v24 = vadd.f32 %v725_v16, %v723_v15  ;;  %v749_v25 = vadd.f32 %v729_v18, %v727_v17  ;;  %v751_v26 = vmul.f32 0.75, %v650_v9  ;;  %v753_v27 = vmul.f32 0.25, %v650_v9 }
   0x8   :  { %v124_v28 = vrot.slane %v734_v20, 7  ;;  %v757_v29 = vmul.f32 0.75, %v734_v20  ;;  %v125_v30 = vrot.slane %v737_v21, 7  ;;  %v761_v31 = vmul.f32 0.75, %v737_v21 }
   0x9   :  { %v126_v32 = vrot.slane %v745_v24, 7  ;;  %v765_v33 = vmul.f32 0.75, %v745_v24  ;;  %v127_v34 = vrot.slane %v749_v25, 7  ;;  %v769_v35 = vmul.f32 0.75, %v749_v25 }
   0xa   :  { %v157_v36 = vsel %vm156_vm0, %v734_v20, %v124_v28  ;;  %v158_v37 = vsel %vm156_vm0, %v737_v21, %v125_v30  ;;  %v777_v38 = vadd.f32 %v739_v22, %v731_v19  ;;  %v781_v39 = vadd.f32 %v751_v26, %v741_v23 }
   0xb   :  { %v222_v40 = vmul.f32 0.25, %v157_v36  ;;  %v223_v41 = vmul.f32 0.25, %v158_v37  ;;  %v159_v42 = vsel %vm156_vm0, %v745_v24, %v126_v32  ;;  %v160_v43 = vsel %vm156_vm0, %v749_v25, %v127_v34 }
   0xc   :  { %v224_v44 = vmul.f32 0.25, %v159_v42  ;;  %v225_v45 = vmul.f32 0.25, %v160_v43  ;;  %v128_v46 = vrot.slane %v777_v38, 7  ;;  %v789_v47 = vmul.f32 0.75, %v777_v38 }
   0xd   :  { %v254_v48 = vadd.f32 %v757_v29, %v222_v40  ;;  %v255_v49 = vadd.f32 %v761_v31, %v223_v41  ;;  %v129_v50 = vrot.slane %v781_v39, 7  ;;  %v795_v51 = vmul.f32 0.75, %v781_v39 }
   0xe   :  { %v256_v52 = vadd.f32 %v765_v33, %v224_v44  ;;  %v257_v53 = vadd.f32 %v769_v35, %v225_v45  ;;  %v161_v54 = vsel %vm156_vm0, %v777_v38, %v128_v46  ;;  %v801_v55 = vmul.f32 0.75, %v653_v10 }
   0xf   :  { %v494_v57 = vpack.c.bf16 %v254_v48, %v254_v48  ;;  %v495_v58 = vpack.c.bf16 %v255_v49, %v255_v49  ;;  %v226_v59 = vmul.f32 0.25, %v161_v54  ;;  %v162_v60 = vsel %vm156_vm0, %v781_v39, %v129_v50 }
  0x10   :  { %v496_v61 = vpack.c.bf16 %v256_v52, %v256_v52  ;;  %v497_v62 = vpack.c.bf16 %v257_v53, %v257_v53  ;;  %v227_v63 = vmul.f32 0.25, %v162_v60  ;;  %v810_v0 = vadd.f32 %v801_v55, %v753_v27  ;;  %v676_v60 = vld [vmem:[%s1527_s0 + $0x30] sm:$0xff]  }
  0x11   :  { %511 = vst.msk [vmem:[%s1528_s1] sm:$0xf] %vm510_vm1, %v494_v57  ;;  %512 = vst.msk [vmem:[%s1528_s1 + $0x4] sm:$0xf] %vm510_vm1, %v495_v58  ;;  %v258_v1 = vadd.f32 %v789_v47, %v226_v59  ;;  %v821_v2 = vmul.f32 0.25, %v653_v10  ;;  %v825_v3 = vmul.f32 0.75, %v1532_v11  ;;  %v657_v4 = vunpack.c.l.bf16 %v674_v56 }
  0x12   :  { %513 = vst.msk [vmem:[%s1528_s1 + $0x8] sm:$0xf] %vm510_vm1, %v496_v61  ;;  %514 = vst.msk [vmem:[%s1528_s1 + $0xc] sm:$0xf] %vm510_vm1, %v497_v62  ;;  %v259_v6 = vadd.f32 %v795_v51, %v227_v63  ;;  %v130_v8 = vrot.slane %v810_v0, 7  ;;  %v841_v9 = vmul.f32 0.75, %v810_v0  ;;  %v658_v10 = vunpack.c.h.bf16 %v674_v56 }
  0x13   :  { %v498_v12 = vpack.c.bf16 %v258_v1, %v258_v1  ;;  %v845_v28 = vadd.f32 %v825_v3, %v821_v2  ;;  %v51_v30 = vmul.f32 0.25, %v657_v4  ;;  %v847_v32 = vmul.f32 0.75, %v657_v4 }
  0x14   :  { %v499_v34 = vpack.c.bf16 %v259_v6, %v259_v6  ;;  %v163_v36 = vsel %vm156_vm0, %v810_v0, %v130_v8  ;;  %v851_v37 = vmul.f32 0.75, %v658_v10  ;;  %v661_v40 = vunpack.c.l.bf16 %v675_v5 }
  0x15   :  { %515 = vst.msk [vmem:[%s1528_s1 + $0x10] sm:$0xf] %vm510_vm1, %v498_v12  ;;  %v228_v41 = vmul.f32 0.25, %v163_v36  ;;  %v131_v42 = vrot.slane %v845_v28, 7  ;;  %v859_v43 = vmul.f32 0.75, %v845_v28  ;;  %v862_v44 = vadd.f32 %v847_v32, %v51_v30 }
  0x16   :  { %1547 = vst [vmem:[#allocation2_spill] sm:$0xff] %v851_v37  ;;  %516 = vst.msk [vmem:[%s1528_s1 + $0x14] sm:$0xf] %vm510_vm1, %v499_v34  ;;  %v869_v45 = vadd.f32 %v851_v37, %v51_v30  ;;  %v871_v46 = vmul.f32 0.25, %v658_v10  ;;  %v873_v48 = vmul.f32 0.75, %v661_v40  ;;  %v662_v49 = vunpack.c.h.bf16 %v675_v5 }
  0x17   :  { %v260_v50 = vadd.f32 %v841_v9, %v228_v41  ;;  %v164_v52 = vsel %vm156_vm0, %v845_v28, %v131_v42  ;;  %v132_v53 = vrot.slane %v862_v44, 7  ;;  %v880_v54 = vmul.f32 0.75, %v862_v44 }
  0x18   :  { %1548 = vst [vmem:[#allocation3_spill] sm:$0xff] %v873_v48  ;;  %v229_v56 = vmul.f32 0.25, %v164_v52  ;;  %v133_v57 = vrot.slane %v869_v45, 7  ;;  %v884_v58 = vmul.f32 0.75, %v869_v45  ;;  %v888_v59 = vadd.f32 %v873_v48, %v871_v46 }
  0x19   :  { %v500_v61 = vpack.c.bf16 %v260_v50, %v260_v50  ;;  %v165_v62 = vsel %vm156_vm0, %v862_v44, %v132_v53  ;;  %v895_v63 = vmul.f32 0.25, %v661_v40  ;;  %v897_v1 = vmul.f32 0.75, %v662_v49  ;;  %v922_v50 = vld [vmem:[%s1527_s0 + $0x38] sm:$0xff]  }
  0x1a   :  { %v261_v4 = vadd.f32 %v859_v43, %v229_v56  ;;  %v230_v5 = vmul.f32 0.25, %v165_v62  ;;  %v166_v6 = vsel %vm156_vm0, %v869_v45, %v133_v57  ;;  %v134_v8 = vrot.slane %v888_v59, 7  ;;  %1552 = vst [vmem:[#allocation7_spill] sm:$0xff] %v922_v50 }
  0x1b   :  { %1549 = vst [vmem:[#allocation4_spill] sm:$0xff] %v895_v63  ;;  %1550 = vst [vmem:[#allocation5_spill] sm:$0xff] %v897_v1  ;;  %v231_v10 = vmul.f32 0.25, %v166_v6  ;;  %v908_v12 = vmul.f32 0.75, %v888_v59  ;;  %v912_v30 = vadd.f32 %v897_v1, %v895_v63  ;;  %v665_v34 = vunpack.c.l.bf16 %v676_v60 }
  0x1c   :  { %517 = vst.msk [vmem:[%s1528_s1 + $0x18] sm:$0xf] %vm510_vm1, %v500_v61  ;;  %v501_v36 = vpack.c.bf16 %v261_v4, %v261_v4  ;;  %v262_v40 = vadd.f32 %v880_v54, %v230_v5  ;;  %v167_v41 = vsel %vm156_vm0, %v888_v59, %v134_v8  ;;  %v917_v42 = vmul.f32 0.25, %v662_v49 }
  0x1d   :  { %v263_v52 = vadd.f32 %v884_v58, %v231_v10  ;;  %v232_v53 = vmul.f32 0.25, %v167_v41  ;;  %v135_v56 = vrot.slane %v912_v30, 7  ;;  %v927_v57 = vmul.f32 0.75, %v912_v30 }
  0x1e   :  { %1551 = vst [vmem:[#allocation6_spill] sm:$0xff] %v917_v42  ;;  %518 = vst.msk [vmem:[%s1528_s1 + $0x1c] sm:$0xf] %vm510_vm1, %v501_v36  ;;  %v502_v49 = vpack.c.bf16 %v262_v40, %v262_v40  ;;  %v933_v61 = vmul.f32 0.75, %v665_v34  ;;  %v666_v62 = vunpack.c.h.bf16 %v676_v60  ;;  %v935_v4 = vmul.f32 0.25, %v665_v34 }
  0x1f   :  { %v503_v5 = vpack.c.bf16 %v263_v52, %v263_v52  ;;  %v264_v6 = vadd.f32 %v908_v12, %v232_v53  ;;  %v168_v8 = vsel %vm156_vm0, %v912_v30, %v135_v56  ;;  %v669_v10 = vunpack.c.l.bf16 %v922_v50 }
  0x20   :  { %1553 = vst [vmem:[#allocation8_spill] sm:$0xff] %v933_v61  ;;  %1554 = vst [vmem:[#allocation9_spill] sm:$0xff] %v935_v4  ;;  %v233_v36 = vmul.f32 0.25, %v168_v8  ;;  %v947_v40 = vadd.f32 %v933_v61, %v917_v42  ;;  %v949_v60 = vmul.f32 0.75, %v666_v62  ;;  %v951_v34 = vmul.f32 0.25, %v666_v62 }
  0x21   :  { %519 = vst.msk [vmem:[%s1528_s1 + $0x20] sm:$0xf] %vm510_vm1, %v502_v49  ;;  %520 = vst.msk [vmem:[%s1528_s1 + $0x24] sm:$0xf] %vm510_vm1, %v503_v5  ;;  %v504_v41 = vpack.c.bf16 %v264_v6, %v264_v6  ;;  %v957_v52 = vmul.f32 0.75, %v669_v10  ;;  %v1539_v53 = vunpack.c.h.bf16 %v922_v50  ;;  %v960_v56 = vmul.f32 0.25, %v669_v10 }
  0x22   :  { %1555 = vst [vmem:[#allocation10_spill] sm:$0xff] %v949_v60  ;;  %1556 = vst [vmem:[#allocation11_spill] sm:$0xff] %v951_v34  ;;  %v265_v49 = vadd.f32 %v927_v57, %v233_v36  ;;  %v136_v8 = vrot.slane %v947_v40, 7  ;;  %v965_v11 = vmul.f32 0.75, %v947_v40  ;;  %v969_v62 = vadd.f32 %v949_v60, %v935_v4 }
  0x23   :  { %1557 = vst [vmem:[#allocation12_spill] sm:$0xff] %v957_v52  ;;  %1558 = vst [vmem:[#allocation13_spill] sm:$0xff] %v960_v56  ;;  %v977_v5 = vadd.f32 %v957_v52, %v951_v34  ;;  %v981_v6 = vmul.f32 0.75, %v1539_v53  ;;  %v173_v10 = vrot.slane %v734_v20, 1  ;;  %v174_v36 = vrot.slane %v737_v21, 1 }
  0x24   :  { %521 = vst.msk [vmem:[%s1528_s1 + $0x28] sm:$0xf] %vm510_vm1, %v504_v41  ;;  %v505_v61 = vpack.c.bf16 %v265_v49, %v265_v49  ;;  %v169_v60 = vsel %vm156_vm0, %v947_v40, %v136_v8  ;;  %v137_v1 = vrot.slane %v969_v62, 7  ;;  %v989_v41 = vmul.f32 0.75, %v969_v62 }
  0x25   :  { %1559 = vst [vmem:[#allocation14_spill] sm:$0xff] %v981_v6  ;;  %v234_v4 = vmul.f32 0.25, %v169_v60  ;;  %v138_v52 = vrot.slane %v977_v5, 7  ;;  %v993_v50 = vmul.f32 0.75, %v977_v5  ;;  %v997_v53 = vadd.f32 %v981_v6, %v960_v56 }
  0x26   :  { %522 = vst.msk [vmem:[%s1528_s1 + $0x2c] sm:$0xf] %vm510_vm1, %v505_v61  ;;  %v170_v49 = vsel %vm156_vm0, %v969_v62, %v137_v1  ;;  %v206_v60 = vsel %vm205_vm2, %v173_v10, %v734_v20  ;;  %v207_v8 = vsel %vm205_vm2, %v174_v36, %v737_v21  ;;  %v175_v34 = vrot.slane %v745_v24, 1 }
  0x27   :  { %v266_v48 = vadd.f32 %v965_v11, %v234_v4  ;;  %v235_v6 = vmul.f32 0.25, %v170_v49  ;;  %v171_v56 = vsel %vm156_vm0, %v977_v5, %v138_v52  ;;  %v139_v42 = vrot.slane %v997_v53, 7 }
  0x28   :  { %v236_v61 = vmul.f32 0.25, %v171_v56  ;;  %v1015_v37 = vmul.f32 0.75, %v997_v53  ;;  %v270_v1 = vmul.f32 0.25, %v206_v60  ;;  %v271_v63 = vmul.f32 0.25, %v207_v8 }
  0x29   :  { %v506_v20 = vpack.c.bf16 %v266_v48, %v266_v48  ;;  %v267_v10 = vadd.f32 %v989_v41, %v235_v6  ;;  %v172_v21 = vsel %vm156_vm0, %v997_v53, %v139_v42  ;;  %v208_v4 = vsel %vm205_vm2, %v175_v34, %v745_v24 }
  0x2a   :  { %v268_v36 = vadd.f32 %v993_v50, %v236_v61  ;;  %v237_v52 = vmul.f32 0.25, %v172_v21  ;;  %v286_v49 = vadd.f32 %v270_v1, %v757_v29  ;;  %v287_v56 = vadd.f32 %v271_v63, %v761_v31 }
  0x2b   :  { %523 = vst.msk [vmem:[%s1528_s1 + $0x30] sm:$0xf] %vm510_vm1, %v506_v20  ;;  %v507_v48 = vpack.c.bf16 %v267_v10, %v267_v10  ;;  %v272_v6 = vmul.f32 0.25, %v208_v4  ;;  %v176_v60 = vrot.slane %v749_v25, 1  ;;  %v177_v42 = vrot.slane %v777_v38, 1 }
  0x2c   :  { %v508_v8 = vpack.c.bf16 %v268_v36, %v268_v36  ;;  %v269_v24 = vadd.f32 %v1015_v37, %v237_v52  ;;  %v527_v34 = vpack.c.bf16 %v286_v49, %v286_v49  ;;  %v528_v61 = vpack.c.bf16 %v287_v56, %v287_v56 }
  0x2d   :  { %524 = vst.msk [vmem:[%s1528_s1 + $0x34] sm:$0xf] %vm510_vm1, %v507_v48  ;;  %v288_v29 = vadd.f32 %v272_v6, %v765_v33  ;;  %v209_v31 = vsel %vm205_vm2, %v176_v60, %v749_v25  ;;  %v210_v63 = vsel %vm205_vm2, %v177_v42, %v777_v38  ;;  %v178_v1 = vrot.slane %v781_v39, 1 }
  0x2e   :  { %525 = vst.msk [vmem:[%s1528_s1 + $0x38] sm:$0xf] %vm510_vm1, %v508_v8  ;;  %v509_v20 = vpack.c.bf16 %v269_v24, %v269_v24  ;;  %543 = vst.msk [vmem:[%s1529_s2] sm:$0xf] %vm510_vm1, %v527_v34  ;;  %v273_v25 = vmul.f32 0.25, %v209_v31  ;;  %v274_v33 = vmul.f32 0.25, %v210_v63 }
  0x2f   :  { %544 = vst.msk [vmem:[%s1529_s2 + $0x4] sm:$0xf] %vm510_vm1, %v528_v61  ;;  %v179_v38 = vrot.slane %v810_v0, 1  ;;  %v529_v10 = vpack.c.bf16 %v288_v29, %v288_v29  ;;  %v211_v21 = vsel %vm205_vm2, %v178_v1, %v781_v39  ;;  %v180_v4 = vrot.slane %v845_v28, 1 }
  0x30   :  { %v181_v36 = vrot.slane %v862_v44, 1  ;;  %526 = vst.msk [vmem:[%s1528_s1 + $0x3c] sm:$0xf] %vm510_vm1, %v509_v20  ;;  %v289_v52 = vadd.f32 %v273_v25, %v769_v35  ;;  %v290_v49 = vadd.f32 %v274_v33, %v789_v47  ;;  %v275_v56 = vmul.f32 0.25, %v211_v21 }
  0x31   :  { %v212_v48 = vsel %vm205_vm2, %v179_v38, %v810_v0  ;;  %545 = vst.msk [vmem:[%s1529_s2 + $0x8] sm:$0xf] %vm510_vm1, %v529_v10  ;;  %v213_v6 = vsel %vm205_vm2, %v180_v4, %v845_v28  ;;  %v182_v35 = vrot.slane %v869_v45, 1  ;;  %v183_v29 = vrot.slane %v888_v59, 1 }
  0x32   :  { %v276_v39 = vmul.f32 0.25, %v212_v48  ;;  %v214_v60 = vsel %vm205_vm2, %v181_v36, %v862_v44  ;;  %v530_v42 = vpack.c.bf16 %v289_v52, %v289_v52  ;;  %v531_v47 = vpack.c.bf16 %v290_v49, %v290_v49 }
  0x33   :  { %v291_v8 = vadd.f32 %v275_v56, %v795_v51  ;;  %v277_v24 = vmul.f32 0.25, %v213_v6  ;;  %v278_v34 = vmul.f32 0.25, %v214_v60  ;;  %v215_v61 = vsel %vm205_vm2, %v182_v35, %v869_v45 }
  0x34   :  { %v292_v0 = vadd.f32 %v276_v39, %v841_v9  ;;  %546 = vst.msk [vmem:[%s1529_s2 + $0xc] sm:$0xf] %vm510_vm1, %v530_v42  ;;  %547 = vst.msk [vmem:[%s1529_s2 + $0x10] sm:$0xf] %vm510_vm1, %v531_v47  ;;  %v279_v9 = vmul.f32 0.25, %v215_v61  ;;  %v184_v44 = vrot.slane %v912_v30, 1  ;;  %v216_v63 = vsel %vm205_vm2, %v183_v29, %v888_v59 }
  0x35   :  { %v532_v51 = vpack.c.bf16 %v291_v8, %v291_v8  ;;  %v293_v28 = vadd.f32 %v277_v24, %v859_v43  ;;  %v294_v45 = vadd.f32 %v278_v34, %v880_v54  ;;  %v185_v1 = vrot.slane %v947_v40, 1 }
  0x36   :  { %v533_v31 = vpack.c.bf16 %v292_v0, %v292_v0  ;;  %v295_v25 = vadd.f32 %v279_v9, %v884_v58  ;;  %v280_v43 = vmul.f32 0.25, %v216_v63  ;;  %v217_v33 = vsel %vm205_vm2, %v184_v44, %v912_v30 }
  0x37   :  { %548 = vst.msk [vmem:[%s1529_s2 + $0x14] sm:$0xf] %vm510_vm1, %v532_v51  ;;  %v534_v20 = vpack.c.bf16 %v293_v28, %v293_v28  ;;  %v535_v54 = vpack.c.bf16 %v294_v45, %v294_v45  ;;  %v281_v59 = vmul.f32 0.25, %v217_v33  ;;  %v218_v38 = vsel %vm205_vm2, %v185_v1, %v947_v40 }
  0x38   :  { %549 = vst.msk [vmem:[%s1529_s2 + $0x18] sm:$0xf] %vm510_vm1, %v533_v31  ;;  %v186_v10 = vrot.slane %v969_v62, 1  ;;  %v536_v58 = vpack.c.bf16 %v295_v25, %v295_v25  ;;  %v296_v30 = vadd.f32 %v280_v43, %v908_v12  ;;  %v282_v21 = vmul.f32 0.25, %v218_v38 }
  0x39   :  { %550 = vst.msk [vmem:[%s1529_s2 + $0x1c] sm:$0xf] %vm510_vm1, %v534_v20  ;;  %v187_v4 = vrot.slane %v977_v5, 1  ;;  %551 = vst.msk [vmem:[%s1529_s2 + $0x20] sm:$0xf] %vm510_vm1, %v535_v54  ;;  %v297_v40 = vadd.f32 %v281_v59, %v927_v57  ;;  %v188_v52 = vrot.slane %v997_v53, 1  ;;  %v1125_v49 = vadd.f32 %v719_v13, %v723_v15 }
  0x3a   :  { %v219_v36 = vsel %vm205_vm2, %v186_v10, %v969_v62  ;;  %552 = vst.msk [vmem:[%s1529_s2 + $0x24] sm:$0xf] %vm510_vm1, %v536_v58  ;;  %v537_v12 = vpack.c.bf16 %v296_v30, %v296_v30  ;;  %v298_v56 = vadd.f32 %v282_v21, %v965_v11  ;;  %v1154_v42 = vadd.f32 %v721_v14, %v727_v17 }
  0x3b   :  { %v283_v48 = vmul.f32 0.25, %v219_v36  ;;  %v220_v57 = vsel %vm205_vm2, %v187_v4, %v977_v5  ;;  %v538_v39 = vpack.c.bf16 %v297_v40, %v297_v40  ;;  %v221_v6 = vsel %vm205_vm2, %v188_v52, %v997_v53 }
  0x3c   :  { %v284_v62 = vmul.f32 0.25, %v220_v57  ;;  %v318_v13 = vrot.slane %v1125_v49, 7  ;;  %553 = vst.msk [vmem:[%s1529_s2 + $0x28] sm:$0xf] %vm510_vm1, %v537_v12  ;;  %v539_v15 = vpack.c.bf16 %v298_v56, %v298_v56  ;;  %v285_v11 = vmul.f32 0.25, %v221_v6 }
  0x3d   :  { %v299_v60 = vadd.f32 %v283_v48, %v989_v41  ;;  %v1143_v35 = vmul.f32 0.75, %v1125_v49  ;;  %554 = vst.msk [vmem:[%s1529_s2 + $0x2c] sm:$0xf] %vm510_vm1, %v538_v39  ;;  %v1158_v41 = vadd.f32 %v725_v16, %v731_v19  ;;  %v1167_v24 = vadd.f32 %v729_v18, %v741_v23 }
  0x3e   :  { %v300_v53 = vadd.f32 %v284_v62, %v993_v50  ;;  %v350_v5 = vsel %vm156_vm0, %v1125_v49, %v318_v13  ;;  %555 = vst.msk [vmem:[%s1529_s2 + $0x30] sm:$0xf] %vm510_vm1, %v539_v15  ;;  %v301_v8 = vadd.f32 %v285_v11, %v1015_v37  ;;  %v319_v14 = vrot.slane %v1154_v42, 7  ;;  %v1561_v15 = vld [vmem:[#allocation4_spill] sm:$0xff] }
  0x3f   :  { %v540_v47 = vpack.c.bf16 %v299_v60, %v299_v60  ;;  %v414_v50 = vmul.f32 0.25, %v350_v5  ;;  %v1171_v17 = vmul.f32 0.75, %v1154_v42  ;;  %v320_v16 = vrot.slane %v1158_v41, 7  ;;  %v1562_v60 = vld [vmem:[#allocation2_spill] sm:$0xff]  ;;  %v1564_v5 = vld [vmem:[#allocation3_spill] sm:$0xff] }
  0x40   :  { %v541_v0 = vpack.c.bf16 %v300_v53, %v300_v53  ;;  %v542_v19 = vpack.c.bf16 %v301_v8, %v301_v8  ;;  %v1180_v34 = vmul.f32 0.75, %v1158_v41  ;;  %v321_v18 = vrot.slane %v1167_v24, 7  ;;  %v1563_v53 = vld [vmem:[#allocation6_spill] sm:$0xff] }
  0x41   :  { %556 = vst.msk [vmem:[%s1529_s2 + $0x34] sm:$0xf] %vm510_vm1, %v540_v47  ;;  %v446_v37 = vadd.f32 %v1143_v35, %v414_v50  ;;  %v351_v23 = vsel %vm156_vm0, %v1154_v42, %v319_v14  ;;  %v352_v61 = vsel %vm156_vm0, %v1158_v41, %v320_v16  ;;  %v1192_v29 = vmul.f32 0.75, %v1167_v24  ;;  %v1565_v14 = vld [vmem:[#allocation9_spill] sm:$0xff] }
  0x42   :  { %557 = vst.msk [vmem:[%s1529_s2 + $0x38] sm:$0xf] %vm510_vm1, %v541_v0  ;;  %v1196_v51 = vadd.f32 %v739_v22, %v753_v27  ;;  %558 = vst.msk [vmem:[%s1529_s2 + $0x3c] sm:$0xf] %vm510_vm1, %v542_v19  ;;  %v415_v9 = vmul.f32 0.25, %v351_v23  ;;  %v416_v44 = vmul.f32 0.25, %v352_v61  ;;  %v353_v31 = vsel %vm156_vm0, %v1167_v24, %v321_v18 }
  0x43   :  { %v559_v28 = vpack.c.bf16 %v446_v37, %v446_v37  ;;  %v417_v45 = vmul.f32 0.25, %v353_v31  ;;  %v1210_v22 = vadd.f32 %v751_v26, %v821_v2  ;;  %v1560_v25 = vunpack.c.h.bf16 %v715_v7  ;;  %v1566_v16 = vld [vmem:[#allocation5_spill] sm:$0xff] }
  0x44   :  { %v322_v63 = vrot.slane %v1196_v51, 7  ;;  %v1206_v1 = vmul.f32 0.75, %v1196_v51  ;;  %v447_v27 = vadd.f32 %v1171_v17, %v415_v9  ;;  %v448_v20 = vadd.f32 %v1180_v34, %v416_v44 }
  0x45   :  { %575 = vst.msk [vmem:[%s1530_s3] sm:$0xf] %vm510_vm1, %v559_v28  ;;  %v90_v43 = vmul.f32 0.25, %v1560_v25  ;;  %v1222_v33 = vadd.f32 %v847_v32, %v871_v46  ;;  %v449_v54 = vadd.f32 %v1192_v29, %v417_v45  ;;  %v323_v2 = vrot.slane %v1210_v22, 7 }
  0x46   :  { %v354_v26 = vsel %vm156_vm0, %v1196_v51, %v322_v63  ;;  %v1229_v59 = vmul.f32 0.75, %v1210_v22  ;;  %v560_v38 = vpack.c.bf16 %v447_v27, %v447_v27  ;;  %v561_v10 = vpack.c.bf16 %v448_v20, %v448_v20 }
  0x47   :  { %v418_v58 = vmul.f32 0.25, %v354_v26  ;;  %v1232_v7 = vadd.f32 %v90_v43, %v801_v55  ;;  %v562_v30 = vpack.c.bf16 %v449_v54, %v449_v54  ;;  %v355_v32 = vsel %vm156_vm0, %v1210_v22, %v323_v2 }
  0x48   :  { %v1237_v46 = vadd.f32 %v90_v43, %v825_v3  ;;  %v326_v21 = vrot.slane %v1222_v33, 7  ;;  %576 = vst.msk [vmem:[%s1530_s3 + $0x4] sm:$0xf] %vm510_vm1, %v560_v38  ;;  %577 = vst.msk [vmem:[%s1530_s3 + $0x8] sm:$0xf] %vm510_vm1, %v561_v10  ;;  %v419_v4 = vmul.f32 0.25, %v355_v32  ;;  %v1273_v11 = vadd.f32 %v1562_v60, %v1561_v15 }
  0x49   :  { %v450_v55 = vadd.f32 %v1206_v1, %v418_v58  ;;  %v324_v40 = vrot.slane %v1232_v7, 7  ;;  %v1251_v3 = vmul.f32 0.75, %v1232_v7  ;;  %578 = vst.msk [vmem:[%s1530_s3 + $0xc] sm:$0xf] %vm510_vm1, %v562_v30  ;;  %v1264_v56 = vmul.f32 0.75, %v1222_v33  ;;  %v1567_v38 = vld [vmem:[#allocation11_spill] sm:$0xff] }
  0x4a   :  { %v325_v36 = vrot.slane %v1237_v46, 7  ;;  %v1259_v52 = vmul.f32 0.75, %v1237_v46  ;;  %v358_v12 = vsel %vm156_vm0, %v1222_v33, %v326_v21  ;;  %v451_v57 = vadd.f32 %v1229_v59, %v419_v4  ;;  %v1568_v10 = vld [vmem:[#allocation8_spill] sm:$0xff]  ;;  %v1569_v30 = vld [vmem:[#allocation13_spill] sm:$0xff]  ;;  %v1570_v32 = vld [vmem:[#allocation10_spill] sm:$0xff] }
  0x4b   :  { %v563_v48 = vpack.c.bf16 %v450_v55, %v450_v55  ;;  %v356_v39 = vsel %vm156_vm0, %v1232_v7, %v324_v40  ;;  %v422_v62 = vmul.f32 0.25, %v358_v12  ;;  %v1277_v47 = vadd.f32 %v1564_v5, %v1563_v53  ;;  %v1571_v55 = vld [vmem:[#allocation7_spill] sm:$0xff]  ;;  %v1573_v5 = vld [vmem:[#allocation12_spill] sm:$0xff] }
  0x4c   :  { %v420_v6 = vmul.f32 0.25, %v356_v39  ;;  %v357_v13 = vsel %vm156_vm0, %v1237_v46, %v325_v36  ;;  %v564_v8 = vpack.c.bf16 %v451_v57, %v451_v57  ;;  %v1286_v19 = vadd.f32 %v1566_v16, %v1565_v14  ;;  %v1574_v16 = vld [vmem:[#allocation14_spill] sm:$0xff] }
  0x4d   :  { %579 = vst.msk [vmem:[%s1530_s3 + $0x10] sm:$0xf] %vm510_vm1, %v563_v48  ;;  %v421_v50 = vmul.f32 0.25, %v357_v13  ;;  %v454_v0 = vadd.f32 %v1264_v56, %v422_v62  ;;  %v327_v18 = vrot.slane %v1273_v11, 7  ;;  %v1291_v23 = vmul.f32 0.75, %v1273_v11 }
  0x4e   :  { %v452_v37 = vadd.f32 %v1251_v3, %v420_v6  ;;  %v328_v61 = vrot.slane %v1277_v47, 7  ;;  %580 = vst.msk [vmem:[%s1530_s3 + $0x14] sm:$0xf] %vm510_vm1, %v564_v8  ;;  %v1300_v44 = vmul.f32 0.75, %v1277_v47  ;;  %v329_v31 = vrot.slane %v1286_v19, 7 }
  0x4f   :  { %v453_v28 = vadd.f32 %v1259_v52, %v421_v50  ;;  %v567_v9 = vpack.c.bf16 %v454_v0, %v454_v0  ;;  %v359_v63 = vsel %vm156_vm0, %v1273_v11, %v327_v18  ;;  %v1308_v20 = vmul.f32 0.75, %v1286_v19 }
  0x50   :  { %v565_v45 = vpack.c.bf16 %v452_v37, %v452_v37  ;;  %v360_v27 = vsel %vm156_vm0, %v1277_v47, %v328_v61  ;;  %v423_v43 = vmul.f32 0.25, %v359_v63  ;;  %v361_v26 = vsel %vm156_vm0, %v1286_v19, %v329_v31 }
  0x51   :  { %v566_v25 = vpack.c.bf16 %v453_v28, %v453_v28  ;;  %583 = vst.msk [vmem:[%s1530_s3 + $0x20] sm:$0xf] %vm510_vm1, %v567_v9  ;;  %v424_v54 = vmul.f32 0.25, %v360_v27  ;;  %v425_v2 = vmul.f32 0.25, %v361_v26  ;;  %v1322_v58 = vadd.f32 %v1568_v10, %v1567_v38 }
  0x52   :  { %581 = vst.msk [vmem:[%s1530_s3 + $0x18] sm:$0xf] %vm510_vm1, %v565_v45  ;;  %v1326_v21 = vadd.f32 %v1570_v32, %v1569_v30  ;;  %v1572_v4 = vunpack.c.h.bf16 %v1571_v55  ;;  %v455_v36 = vadd.f32 %v1291_v23, %v423_v43  ;;  %v366_v48 = vrot.slane %v1125_v49, 1 }
  0x53   :  { %582 = vst.msk [vmem:[%s1530_s3 + $0x1c] sm:$0xf] %vm510_vm1, %v566_v25  ;;  %v456_v12 = vadd.f32 %v1300_v44, %v424_v54  ;;  %v367_v57 = vrot.slane %v1154_v42, 1  ;;  %v457_v39 = vadd.f32 %v1308_v20, %v425_v2  ;;  %v330_v62 = vrot.slane %v1322_v58, 7 }
  0x54   :  { %v91_v40 = vmul.f32 0.25, %v1572_v4  ;;  %v1341_v6 = vmul.f32 0.75, %v1322_v58  ;;  %v331_v13 = vrot.slane %v1326_v21, 7  ;;  %v568_v15 = vpack.c.bf16 %v455_v36, %v455_v36 }
  0x55   :  { %v569_v60 = vpack.c.bf16 %v456_v12, %v456_v12  ;;  %v1345_v53 = vmul.f32 0.75, %v1326_v21  ;;  %v570_v50 = vpack.c.bf16 %v457_v39, %v457_v39  ;;  %v362_v0 = vsel %vm156_vm0, %v1322_v58, %v330_v62 }
  0x56   :  { %v1348_v8 = vadd.f32 %v91_v40, %v1573_v5  ;;  %v363_v14 = vsel %vm156_vm0, %v1326_v21, %v331_v13  ;;  %v1355_v37 = vadd.f32 %v91_v40, %v1574_v16  ;;  %584 = vst.msk [vmem:[%s1530_s3 + $0x24] sm:$0xf] %vm510_vm1, %v568_v15  ;;  %v426_v18 = vmul.f32 0.25, %v362_v0 }
  0x57   :  { %585 = vst.msk [vmem:[%s1530_s3 + $0x28] sm:$0xf] %vm510_vm1, %v569_v60  ;;  %v427_v61 = vmul.f32 0.25, %v363_v14  ;;  %586 = vst.msk [vmem:[%s1530_s3 + $0x2c] sm:$0xf] %vm510_vm1, %v570_v50  ;;  %v398_v63 = vsel %vm205_vm2, %v366_v48, %v1125_v49  ;;  %v399_v27 = vsel %vm205_vm2, %v367_v57, %v1154_v42  ;;  %v368_v30 = vrot.slane %v1158_v41, 1 }
  0x58   :  { %v332_v28 = vrot.slane %v1348_v8, 7  ;;  %v1367_v9 = vmul.f32 0.75, %v1348_v8  ;;  %v333_v31 = vrot.slane %v1355_v37, 7  ;;  %v1375_v45 = vmul.f32 0.75, %v1355_v37 }
  0x59   :  { %v458_v25 = vadd.f32 %v1341_v6, %v426_v18  ;;  %v459_v43 = vadd.f32 %v1345_v53, %v427_v61  ;;  %v462_v26 = vmul.f32 0.25, %v398_v63  ;;  %v463_v10 = vmul.f32 0.25, %v399_v27 }
  0x5a   :  { %v364_v54 = vsel %vm156_vm0, %v1348_v8, %v332_v28  ;;  %v365_v38 = vsel %vm156_vm0, %v1355_v37, %v333_v31  ;;  %v400_v36 = vsel %vm205_vm2, %v368_v30, %v1158_v41  ;;  %v369_v12 = vrot.slane %v1167_v24, 1 }
  0x5b   :  { %v428_v2 = vmul.f32 0.25, %v364_v54  ;;  %v571_v32 = vpack.c.bf16 %v458_v25, %v458_v25  ;;  %v572_v49 = vpack.c.bf16 %v459_v43, %v459_v43  ;;  %v429_v55 = vmul.f32 0.25, %v365_v38 }
  0x5c   :  { %v478_v42 = vadd.f32 %v462_v26, %v1143_v35  ;;  %v479_v40 = vadd.f32 %v463_v10, %v1171_v17  ;;  %v464_v57 = vmul.f32 0.25, %v400_v36  ;;  %v370_v17 = vrot.slane %v1196_v51, 1 }
  0x5d   :  { %v460_v4 = vadd.f32 %v1367_v9, %v428_v2  ;;  %587 = vst.msk [vmem:[%s1530_s3 + $0x30] sm:$0xf] %vm510_vm1, %v571_v32  ;;  %588 = vst.msk [vmem:[%s1530_s3 + $0x34] sm:$0xf] %vm510_vm1, %v572_v49  ;;  %v461_v35 = vadd.f32 %v1375_v45, %v429_v55  ;;  %v401_v62 = vsel %vm205_vm2, %v369_v12, %v1167_v24  ;;  %v371_v13 = vrot.slane %v1210_v22, 1 }
  0x5e   :  { %v591_v48 = vpack.c.bf16 %v478_v42, %v478_v42  ;;  %v592_v41 = vpack.c.bf16 %v479_v40, %v479_v40  ;;  %v480_v60 = vadd.f32 %v464_v57, %v1180_v34  ;;  %v465_v5 = vmul.f32 0.25, %v401_v62 }
  0x5f   :  { %v573_v39 = vpack.c.bf16 %v460_v4, %v460_v4  ;;  %v574_v15 = vpack.c.bf16 %v461_v35, %v461_v35  ;;  %v402_v50 = vsel %vm205_vm2, %v370_v17, %v1196_v51  ;;  %v403_v0 = vsel %vm205_vm2, %v371_v13, %v1210_v22 }
  0x60   :  { %607 = vst.msk [vmem:[%s1531_s4] sm:$0xf] %vm510_vm1, %v591_v48  ;;  %608 = vst.msk [vmem:[%s1531_s4 + $0x4] sm:$0xf] %vm510_vm1, %v592_v41  ;;  %v466_v24 = vmul.f32 0.25, %v402_v50  ;;  %v372_v34 = vrot.slane %v1232_v7, 1  ;;  %v593_v51 = vpack.c.bf16 %v480_v60, %v480_v60  ;;  %v481_v16 = vadd.f32 %v465_v5, %v1192_v29 }
  0x61   :  { %589 = vst.msk [vmem:[%s1530_s3 + $0x38] sm:$0xf] %vm510_vm1, %v573_v39  ;;  %v373_v14 = vrot.slane %v1237_v46, 1  ;;  %590 = vst.msk [vmem:[%s1530_s3 + $0x3c] sm:$0xf] %vm510_vm1, %v574_v15  ;;  %v467_v18 = vmul.f32 0.25, %v403_v0 }
  0x62   :  { %v374_v61 = vrot.slane %v1222_v33, 1  ;;  %v482_v28 = vadd.f32 %v466_v24, %v1206_v1  ;;  %v404_v22 = vsel %vm205_vm2, %v372_v34, %v1232_v7  ;;  %v375_v63 = vrot.slane %v1273_v11, 1  ;;  %609 = vst.msk [vmem:[%s1531_s4 + $0x8] sm:$0xf] %vm510_vm1, %v593_v51 }
  0x63   :  { %v405_v31 = vsel %vm205_vm2, %v373_v14, %v1237_v46  ;;  %v594_v27 = vpack.c.bf16 %v481_v16, %v481_v16  ;;  %v483_v29 = vadd.f32 %v467_v18, %v1229_v59  ;;  %v468_v25 = vmul.f32 0.25, %v404_v22 }
  0x64   :  { %v469_v43 = vmul.f32 0.25, %v405_v31  ;;  %v595_v54 = vpack.c.bf16 %v482_v28, %v482_v28  ;;  %v406_v1 = vsel %vm205_vm2, %v374_v61, %v1222_v33  ;;  %v407_v7 = vsel %vm205_vm2, %v375_v63, %v1273_v11 }
  0x65   :  { %v376_v46 = vrot.slane %v1277_v47, 1  ;;  %610 = vst.msk [vmem:[%s1531_s4 + $0xc] sm:$0xf] %vm510_vm1, %v594_v27  ;;  %v596_v26 = vpack.c.bf16 %v483_v29, %v483_v29  ;;  %v484_v2 = vadd.f32 %v468_v25, %v1251_v3  ;;  %v470_v38 = vmul.f32 0.25, %v406_v1 }
  0x66   :  { %v485_v59 = vadd.f32 %v469_v43, %v1259_v52  ;;  %611 = vst.msk [vmem:[%s1531_s4 + $0x10] sm:$0xf] %vm510_vm1, %v595_v54  ;;  %v471_v33 = vmul.f32 0.25, %v407_v7  ;;  %v377_v10 = vrot.slane %v1286_v19, 1  ;;  %v378_v30 = vrot.slane %v1322_v58, 1 }
  0x67   :  { %v408_v11 = vsel %vm205_vm2, %v376_v46, %v1277_v47  ;;  %612 = vst.msk [vmem:[%s1531_s4 + $0x14] sm:$0xf] %vm510_vm1, %v596_v26  ;;  %v597_v3 = vpack.c.bf16 %v484_v2, %v484_v2  ;;  %v486_v32 = vadd.f32 %v470_v38, %v1264_v56  ;;  %v379_v4 = vrot.slane %v1326_v21, 1 }
  0x68   :  { %v598_v52 = vpack.c.bf16 %v485_v59, %v485_v59  ;;  %v472_v49 = vmul.f32 0.25, %v408_v11  ;;  %v487_v55 = vadd.f32 %v471_v33, %v1291_v23  ;;  %v409_v42 = vsel %vm205_vm2, %v377_v10, %v1286_v19 }
  0x69   :  { %v410_v47 = vsel %vm205_vm2, %v378_v30, %v1322_v58  ;;  %613 = vst.msk [vmem:[%s1531_s4 + $0x18] sm:$0xf] %vm510_vm1, %v597_v3  ;;  %v599_v56 = vpack.c.bf16 %v486_v32, %v486_v32  ;;  %v473_v40 = vmul.f32 0.25, %v409_v42  ;;  %v411_v58 = vsel %vm205_vm2, %v379_v4, %v1326_v21 }
  0x6a   :  { %614 = vst.msk [vmem:[%s1531_s4 + $0x1c] sm:$0xf] %vm510_vm1, %v598_v52  ;;  %v488_v23 = vadd.f32 %v472_v49, %v1300_v44  ;;  %v474_v19 = vmul.f32 0.25, %v410_v47  ;;  %v600_v36 = vpack.c.bf16 %v487_v55, %v487_v55  ;;  %v380_v12 = vrot.slane %v1348_v8, 1 }
  0x6b   :  { %v381_v35 = vrot.slane %v1355_v37, 1  ;;  %615 = vst.msk [vmem:[%s1531_s4 + $0x20] sm:$0xf] %vm510_vm1, %v599_v56  ;;  %v489_v57 = vadd.f32 %v473_v40, %v1308_v20  ;;  %v475_v17 = vmul.f32 0.25, %v411_v58 }
  0x6c   :  { %v601_v48 = vpack.c.bf16 %v488_v23, %v488_v23  ;;  %v490_v44 = vadd.f32 %v474_v19, %v1341_v6  ;;  %616 = vst.msk [vmem:[%s1531_s4 + $0x24] sm:$0xf] %vm510_vm1, %v600_v36  ;;  %v412_v21 = vsel %vm205_vm2, %v380_v12, %v1348_v8 }
  0x6d   :  { %v413_v39 = vsel %vm205_vm2, %v381_v35, %v1355_v37  ;;  %v602_v20 = vpack.c.bf16 %v489_v57, %v489_v57  ;;  %v491_v6 = vadd.f32 %v475_v17, %v1345_v53  ;;  %v476_v62 = vmul.f32 0.25, %v412_v21 }
  0x6e   :  { %617 = vst.msk [vmem:[%s1531_s4 + $0x28] sm:$0xf] %vm510_vm1, %v601_v48  ;;  %v603_v41 = vpack.c.bf16 %v490_v44, %v490_v44  ;;  %v477_v13 = vmul.f32 0.25, %v413_v39 }
  0x6f   :  { %618 = vst.msk [vmem:[%s1531_s4 + $0x2c] sm:$0xf] %vm510_vm1, %v602_v20  ;;  %v604_v8 = vpack.c.bf16 %v491_v6, %v491_v6  ;;  %v492_v37 = vadd.f32 %v476_v62, %v1367_v9 }
  0x70   :  { %619 = vst.msk [vmem:[%s1531_s4 + $0x30] sm:$0xf] %vm510_vm1, %v603_v41  ;;  %v493_v15 = vadd.f32 %v477_v13, %v1375_v45 }
  0x71   :  { %620 = vst.msk [vmem:[%s1531_s4 + $0x34] sm:$0xf] %vm510_vm1, %v604_v8  ;;  %v605_v53 = vpack.c.bf16 %v492_v37, %v492_v37 }
  0x72   :  { %v606_v60 = vpack.c.bf16 %v493_v15, %v493_v15 }
  0x73   :  { %621 = vst.msk [vmem:[%s1531_s4 + $0x38] sm:$0xf] %vm510_vm1, %v605_v53 }
  0x74   :  { %622 = vst.msk [vmem:[%s1531_s4 + $0x3c] sm:$0xf] %vm510_vm1, %v606_v60 }

// kernel: darknet_forward.12
= control target key start
LH: loop header
LB: loop body
LE: loop exit
PB: predicated region body
PF: predicated region fallthrough
CT: control target
= control target key end

     0   :  { %vm91_vm0 = vcmask 130048   ;;  %v295_v9 = vlaneseq  ;;  %v593_v13 = vmov 0   ;;  %s950_s1 = inlined_call_operand.vmem [shape: bf16[16,128], index: 1, kind: input, shape index: {}]   ;;  %s951_s0 = inlined_call_operand.vmem [shape: bf16[128,16], index: 0, kind: input, shape index: {}]   ;;  %s952_s4 = inlined_call_operand.vmem [shape: f32[1,128], index: 4, kind: input, shape index: {}]   ;;  %s953_s2 = inlined_call_operand.vmem [shape: f32[1,128], index: 2, kind: input, shape index: {}]   ;;  %s954_s3 = inlined_call_operand.vmem [shape: f32[1,128], index: 3, kind: input, shape index: {}]   ;;  %s955_s5 = inlined_call_operand.vmem [shape: f32[128,128], index: 5, kind: input, shape index: {}]   ;;  %s956_s6 = inlined_call_operand.vmem [shape: f32[1,128], index: 6, kind: input, shape index: {}]   ;;  %s957_s7 = inlined_call_operand.vmem [shape: f32[128,128], index: 7, kind: output, shape index: {}]  }
   0x1   :  { %v520_v0 = vld [vmem:[%s950_s1] sm:$0xff]   ;;  %v523_v3 = vld [vmem:[%s951_s0 + $0x8] sm:$0xff]   ;;  %v525_v5 = vld [vmem:[%s951_s0 + $0x10] sm:$0xff]  }
   0x2   :  { %v521_v1 = vld [vmem:[%s951_s0] sm:$0xff]   ;;  %499 = vmatprep.subr.bf16.mxu0 %v520_v0  ;;  %517 = vmatprep.subr.bf16.mxu1 %v520_v0  ;;  %v524_v4 = vld [vmem:[%s951_s0 + $0x28] sm:$0xff]   ;;  %v526_v6 = vld [vmem:[%s951_s0 + $0x30] sm:$0xff]   ;;  %v296_v11 = vshrl.u32 %v295_v9, 7 }
   0x3   :  { %v522_v2 = vld [vmem:[%s951_s0 + $0x20] sm:$0xff]   ;;  %500 = vmatpush3.bf16.msra.mxu0 %v520_v0  ;;  %518 = vmatpush3.bf16.msra.mxu1 %v520_v0  ;;  %v527_v7 = vld [vmem:[%s951_s0 + $0x18] sm:$0xff]  }
   0x4   :  { %501 = vmatprep.mubr.msk.bf16.mxu0 %vm91_vm0, %v521_v1  ;;  %509 = vmatprep.mubr.msk.bf16.mxu1 %vm91_vm0, %v522_v2  ;;  %v528_v8 = vld [vmem:[%s951_s0 + $0x38] sm:$0xff]   ;;  %v259_v10 = vld [vmem:[%s952_s4] sm:$0x1]  ;;  %v297_v12 = vsub.s32 0, %v296_v11 }
   0x5   :  { %vm277_vm1 = vcmp.gt.f32.partialorder %v259_v10, 0.0  ;;  %v675_v15 = vld [vmem:[%s953_s2] ss:$0 sm:$0xff] }
   0x6   :  { %502 = vmatmul.mubr.msk.bf16.vlgmr.msra.gmra.mxu0 %vm91_vm0, %v523_v3  ;;  %510 = vmatmul.mubr.msk.bf16.vlgmr.msra.gmra.mxu1 %vm91_vm0, %v524_v4  ;;  %v294_v14 = vsel %vm277_vm1, 1, %v593_v13  ;;  %v680_v17 = vld [vmem:[%s954_s3] ss:$0 sm:$0xff] }
   0x7   :  { %505 = vmatprep.mubr.msk.bf16.mxu0 %vm91_vm0, %v525_v5  ;;  %513 = vmatprep.mubr.msk.bf16.mxu1 %vm91_vm0, %v526_v6  ;;  %v682_v18 = vrot.slane %v294_v14, %v297_v12 }
   0x9   :  { %vm299_vm2 = vcmp.eq.s32.totalorder %v682_v18, 1 }
   0xe   :  { %506 = vmatmul.mubr.msk.bf16.gmra.mxu0 %vm91_vm0, %v527_v7  ;;  %514 = vmatmul.mubr.msk.bf16.gmra.mxu1 %vm91_vm0, %v528_v8 }
  0xc6   :  { %v503_v16 = vpop.f32.mrf.mxu0  ;;  %v511_v19 = vpop.f32.mrf.mxu1 }
  0xc7   :  { %v222_v20 = vmul.f32 %v503_v16, %v675_v15  ;;  %v230_v21 = vmul.f32 %v511_v19, %v675_v15 }
  0xc8   :  { %v150_v22 = vpop.f32.mrf.mxu0  ;;  %v182_v23 = vpop.f32.mrf.mxu1 }
  0xc9   :  { %v245_v24 = vadd.f32 %v680_v17, %v222_v20  ;;  %v253_v25 = vadd.f32 %v680_v17, %v230_v21  ;;  %v220_v26 = vmul.f32 %v675_v15, %v150_v22  ;;  %v228_v27 = vmul.f32 %v675_v15, %v182_v23 }
  0xca   :  { %v504_v28 = vpop.f32.mrf.mxu0  ;;  %v512_v29 = vpop.f32.mrf.mxu1 }
  0xcb   :  { %v280_v30 = vsub.f32 0.0, %v245_v24  ;;  %v288_v31 = vsub.f32 0.0, %v253_v25  ;;  %v243_v32 = vadd.f32 %v680_v17, %v220_v26  ;;  %v251_v33 = vadd.f32 %v680_v17, %v228_v27 }
  0xcc   :  { %v223_v34 = vmul.f32 %v504_v28, %v675_v15  ;;  %v231_v35 = vmul.f32 %v512_v29, %v675_v15  ;;  %v153_v36 = vpop.f32.mrf.mxu0  ;;  %v185_v37 = vpop.f32.mrf.mxu1 }
  0xcd   :  { %v302_v38 = vsel %vm299_vm2, %v245_v24, %v280_v30  ;;  %v310_v39 = vsel %vm299_vm2, %v253_v25, %v288_v31  ;;  %v278_v40 = vsub.f32 0.0, %v243_v32  ;;  %v286_v41 = vsub.f32 0.0, %v251_v33 }
  0xce   :  { %v320_v42 = vmul.f32 1.442695, %v302_v38  ;;  %v336_v43 = vmul.f32 1.442695, %v310_v39  ;;  %v246_v44 = vadd.f32 %v680_v17, %v223_v34  ;;  %v254_v45 = vadd.f32 %v680_v17, %v231_v35  ;;  %v507_v46 = vpop.f32.mrf.mxu0  ;;  %v515_v47 = vpop.f32.mrf.mxu1 }
  0xcf   :  { %v300_v48 = vsel %vm299_vm2, %v243_v32, %v278_v40  ;;  %v308_v49 = vsel %vm299_vm2, %v251_v33, %v286_v41  ;;  %v221_v50 = vmul.f32 %v675_v15, %v153_v36  ;;  %v229_v51 = vmul.f32 %v675_v15, %v185_v37 }
  0xd0   :  { %529 = vpow2.f32 %v320_v42  ;;  %v316_v52 = vmul.f32 1.442695, %v300_v48  ;;  %v332_v53 = vmul.f32 1.442695, %v308_v49  ;;  %v281_v54 = vsub.f32 0.0, %v246_v44  ;;  %v166_v55 = vpop.f32.mrf.mxu0  ;;  %v198_v56 = vpop.f32.mrf.mxu1 }
  0xd1   :  { %531 = vpow2.f32 %v336_v43  ;;  %v289_v57 = vsub.f32 0.0, %v254_v45  ;;  %v244_v58 = vadd.f32 %v680_v17, %v221_v50  ;;  %v252_v59 = vadd.f32 %v680_v17, %v229_v51 }
  0xd2   :  { %533 = vpow2.f32 %v316_v52  ;;  %v303_v60 = vsel %vm299_vm2, %v246_v44, %v281_v54  ;;  %v226_v61 = vmul.f32 %v507_v46, %v675_v15  ;;  %v234_v62 = vmul.f32 %v515_v47, %v675_v15  ;;  %v508_v6 = vpop.f32.mrf.mxu0  ;;  %v516_v7 = vpop.f32.mrf.mxu1 }
  0xd3   :  { %535 = vpow2.f32 %v332_v53  ;;  %v322_v63 = vmul.f32 1.442695, %v303_v60  ;;  %v311_v0 = vsel %vm299_vm2, %v254_v45, %v289_v57  ;;  %v279_v1 = vsub.f32 0.0, %v244_v58 }
  0xd4   :  { %v338_v2 = vmul.f32 1.442695, %v311_v0  ;;  %v287_v3 = vsub.f32 0.0, %v252_v59  ;;  %v249_v4 = vadd.f32 %v680_v17, %v226_v61  ;;  %v257_v5 = vadd.f32 %v680_v17, %v234_v62  ;;  %v169_v24 = vpop.f32.mrf.mxu0  ;;  %v201_v25 = vpop.f32.mrf.mxu1 }
  0xd5   :  { %537 = vpow2.f32 %v322_v63  ;;  %v301_v8 = vsel %vm299_vm2, %v244_v58, %v279_v1  ;;  %v224_v9 = vmul.f32 %v675_v15, %v166_v55  ;;  %v232_v10 = vmul.f32 %v675_v15, %v198_v56 }
  0xd6   :  { %539 = vpow2.f32 %v338_v2  ;;  %v318_v11 = vmul.f32 1.442695, %v301_v8  ;;  %v309_v12 = vsel %vm299_vm2, %v252_v59, %v287_v3  ;;  %v284_v13 = vsub.f32 0.0, %v249_v4 }
  0xd7   :  { %v334_v14 = vmul.f32 1.442695, %v309_v12  ;;  %v292_v16 = vsub.f32 0.0, %v257_v5  ;;  %v247_v19 = vadd.f32 %v680_v17, %v224_v9  ;;  %v255_v20 = vadd.f32 %v680_v17, %v232_v10  ;;  %v262_v9 = vld [vmem:[%s955_s5 + $0x10] sm:$0xff] }
  0xd8   :  { %541 = vpow2.f32 %v318_v11  ;;  %v306_v21 = vsel %vm299_vm2, %v249_v4, %v284_v13  ;;  %v227_v22 = vmul.f32 %v508_v6, %v675_v15  ;;  %v235_v23 = vmul.f32 %v516_v7, %v675_v15  ;;  %v270_v12 = vld [vmem:[%s955_s5 + $0x50] sm:$0xff] }
  0xd9   :  { %543 = vpow2.f32 %v334_v14  ;;  %v328_v26 = vmul.f32 1.442695, %v306_v21  ;;  %v314_v27 = vsel %vm299_vm2, %v257_v5, %v292_v16  ;;  %v282_v28 = vsub.f32 0.0, %v247_v19  ;;  %v791_v16 = vld [vmem:[%s956_s6] ss:$0 sm:$0xff] }
  0xda   :  { %v344_v29 = vmul.f32 1.442695, %v314_v27  ;;  %v290_v30 = vsub.f32 0.0, %v255_v20  ;;  %v250_v31 = vadd.f32 %v680_v17, %v227_v22  ;;  %v258_v32 = vadd.f32 %v680_v17, %v235_v23 }
  0xdb   :  { %545 = vpow2.f32 %v328_v26  ;;  %v304_v33 = vsel %vm299_vm2, %v247_v19, %v282_v28  ;;  %v225_v34 = vmul.f32 %v675_v15, %v169_v24  ;;  %v233_v35 = vmul.f32 %v675_v15, %v201_v25  ;;  %v268_v24 = vld [vmem:[%s955_s5 + $0x40] sm:$0xff] }
  0xdc   :  { %547 = vpow2.f32 %v344_v29  ;;  %v324_v36 = vmul.f32 1.442695, %v304_v33  ;;  %v312_v37 = vsel %vm299_vm2, %v255_v20, %v290_v30  ;;  %v285_v38 = vsub.f32 0.0, %v250_v31  ;;  %v260_v20 = vld [vmem:[%s955_s5] sm:$0xff] }
  0xdd   :  { %v530_v39 = vpop.eup %529  ;;  %v340_v40 = vmul.f32 1.442695, %v312_v37  ;;  %v293_v41 = vsub.f32 0.0, %v258_v32  ;;  %v248_v42 = vadd.f32 %v680_v17, %v225_v34  ;;  %v256_v15 = vadd.f32 %v680_v17, %v233_v35 }
  0xde   :  { %v740_v43 = vpop.eup %531  ;;  %v350_v44 = vadd.f32 1.0, %v530_v39  ;;  %549 = vpow2.f32 %v324_v36  ;;  %v307_v45 = vsel %vm299_vm2, %v250_v31, %v285_v38  ;;  %v271_v36 = vld [vmem:[%s955_s5 + $0x58] sm:$0xff] }
  0xdf   :  { %v745_v46 = vpop.eup %533  ;;  %v358_v47 = vadd.f32 1.0, %v740_v43  ;;  %551 = vpow2.f32 %v340_v40  ;;  %v330_v48 = vmul.f32 1.442695, %v307_v45  ;;  %v315_v51 = vsel %vm299_vm2, %v258_v32, %v293_v41  ;;  %v263_v32 = vld [vmem:[%s955_s5 + $0x18] sm:$0xff]  ;;  %v261_v45 = vld [vmem:[%s955_s5 + $0x8] sm:$0xff] }
  0xe0   :  { %v748_v49 = vpop.eup %535  ;;  %553 = vrcp.f32 %v350_v44  ;;  %v348_v50 = vadd.f32 1.0, %v745_v46  ;;  %v283_v52 = vsub.f32 0.0, %v248_v42  ;;  %v291_v17 = vsub.f32 0.0, %v256_v15 }
  0xe1   :  { %555 = vrcp.f32 %v358_v47  ;;  %v356_v53 = vadd.f32 1.0, %v748_v49  ;;  %v346_v57 = vmul.f32 1.442695, %v315_v51  ;;  %v269_v47 = vld [vmem:[%s955_s5 + $0x48] sm:$0xff] }
  0xe2   :  { %v754_v54 = vpop.eup %537  ;;  %557 = vrcp.f32 %v348_v50  ;;  %v305_v58 = vsel %vm299_vm2, %v248_v42, %v283_v52  ;;  %v313_v0 = vsel %vm299_vm2, %v256_v15, %v291_v17 }
  0xe3   :  { %v756_v55 = vpop.eup %539  ;;  %559 = vrcp.f32 %v356_v53  ;;  %v351_v56 = vadd.f32 1.0, %v754_v54  ;;  %v326_v63 = vmul.f32 1.442695, %v305_v58  ;;  %v342_v5 = vmul.f32 1.442695, %v313_v0  ;;  %v274_v58 = vld [vmem:[%s955_s5 + $0x70] sm:$0xff] }
  0xe4   :  { %v359_v59 = vadd.f32 1.0, %v756_v55  ;;  %561 = vpow2.f32 %v330_v48 }
  0xe5   :  { %v762_v60 = vpop.eup %541  ;;  %563 = vrcp.f32 %v351_v56 }
  0xe6   :  { %v764_v61 = vpop.eup %543  ;;  %565 = vrcp.f32 %v359_v59  ;;  %v349_v62 = vadd.f32 1.0, %v762_v60 }
  0xe7   :  { %v357_v1 = vadd.f32 1.0, %v764_v61  ;;  %567 = vpow2.f32 %v346_v57 }
  0xe8   :  { %v770_v2 = vpop.eup %545  ;;  %569 = vrcp.f32 %v349_v62 }
  0xe9   :  { %v772_v3 = vpop.eup %547  ;;  %571 = vrcp.f32 %v357_v1  ;;  %v354_v4 = vadd.f32 1.0, %v770_v2 }
  0xea   :  { %v362_v6 = vadd.f32 1.0, %v772_v3  ;;  %573 = vpow2.f32 %v326_v63 }
  0xeb   :  { %v776_v7 = vpop.eup %549  ;;  %575 = vrcp.f32 %v354_v4 }
  0xec   :  { %v778_v8 = vpop.eup %551  ;;  %577 = vrcp.f32 %v362_v6  ;;  %v352_v10 = vadd.f32 1.0, %v776_v7 }
  0xed   :  { %v554_v11 = vpop.eup %553  ;;  %v360_v13 = vadd.f32 1.0, %v778_v8  ;;  %579 = vpow2.f32 %v342_v5  ;;  %v264_v5 = vld [vmem:[%s955_s5 + $0x20] sm:$0xff] }
  0xee   :  { %v556_v14 = vpop.eup %555  ;;  %v398_v19 = vsel %vm299_vm2, %v530_v39, %v554_v11  ;;  %581 = vrcp.f32 %v352_v10 }
  0xef   :  { %v558_v21 = vpop.eup %557  ;;  %v414_v22 = vadd.f32 %v398_v19, %v262_v9  ;;  %v406_v23 = vsel %vm299_vm2, %v740_v43, %v556_v14  ;;  %583 = vrcp.f32 %v360_v13 }
  0xf0   :  { %v560_v25 = vpop.eup %559  ;;  %v422_v26 = vadd.f32 %v406_v23, %v270_v12  ;;  %v396_v27 = vsel %vm299_vm2, %v745_v46, %v558_v21 }
  0xf1   :  { %v807_v28 = vpop.eup %561  ;;  %v436_v29 = vmul.f32 %v791_v16, %v414_v22  ;;  %v412_v30 = vadd.f32 %v396_v27, %v260_v20  ;;  %v404_v31 = vsel %vm299_vm2, %v748_v49, %v560_v25  ;;  %v267_v22 = vld [vmem:[%s955_s5 + $0x38] sm:$0xff] }
  0xf2   :  { %v564_v33 = vpop.eup %563  ;;  %v444_v34 = vmul.f32 %v791_v16, %v422_v26  ;;  %v420_v35 = vadd.f32 %v404_v31, %v268_v24  ;;  %v355_v37 = vadd.f32 1.0, %v807_v28  ;;  %v275_v25 = vld [vmem:[%s955_s5 + $0x78] sm:$0xff]  ;;  %v265_v31 = vld [vmem:[%s955_s5 + $0x28] sm:$0xff] }
  0xf3   :  { %v566_v38 = vpop.eup %565  ;;  %452 = vst [vmem:[%s957_s7 + $0x10] sm:$0xff] %v436_v29  ;;  %v434_v39 = vmul.f32 %v791_v16, %v412_v30  ;;  %v399_v40 = vsel %vm299_vm2, %v754_v54, %v564_v33 }
  0xf4   :  { %v828_v41 = vpop.eup %567  ;;  %460 = vst [vmem:[%s957_s7 + $0x50] sm:$0xff] %v444_v34  ;;  %v442_v42 = vmul.f32 %v791_v16, %v420_v35  ;;  %v415_v43 = vadd.f32 %v399_v40, %v263_v32  ;;  %v407_v44 = vsel %vm299_vm2, %v756_v55, %v566_v38  ;;  %585 = vrcp.f32 %v355_v37  ;;  %v266_v55 = vld [vmem:[%s955_s5 + $0x30] sm:$0xff]  ;;  %v273_v35 = vld [vmem:[%s955_s5 + $0x68] sm:$0xff] }
  0xf5   :  { %v570_v15 = vpop.eup %569  ;;  %450 = vst [vmem:[%s957_s7] sm:$0xff] %v434_v39  ;;  %v423_v46 = vadd.f32 %v407_v44, %v271_v36  ;;  %v363_v48 = vadd.f32 1.0, %v828_v41 }
  0xf6   :  { %v572_v49 = vpop.eup %571  ;;  %458 = vst [vmem:[%s957_s7 + $0x40] sm:$0xff] %v442_v42  ;;  %v437_v50 = vmul.f32 %v791_v16, %v415_v43  ;;  %v397_v51 = vsel %vm299_vm2, %v762_v60, %v570_v15 }
  0xf7   :  { %v574_v52 = vpop.eup %573  ;;  %v445_v53 = vmul.f32 %v791_v16, %v423_v46  ;;  %v413_v54 = vadd.f32 %v397_v51, %v261_v45  ;;  %v405_v17 = vsel %vm299_vm2, %v764_v61, %v572_v49  ;;  %587 = vrcp.f32 %v363_v48 }
  0xf8   :  { %v576_v56 = vpop.eup %575  ;;  %453 = vst [vmem:[%s957_s7 + $0x18] sm:$0xff] %v437_v50  ;;  %v421_v57 = vadd.f32 %v405_v17, %v269_v47  ;;  %v353_v59 = vadd.f32 1.0, %v574_v52 }
  0xf9   :  { %v578_v60 = vpop.eup %577  ;;  %461 = vst [vmem:[%s957_s7 + $0x58] sm:$0xff] %v445_v53  ;;  %v435_v61 = vmul.f32 %v791_v16, %v413_v54  ;;  %v402_v62 = vsel %vm299_vm2, %v770_v2, %v576_v56  ;;  %v272_v2 = vld [vmem:[%s955_s5 + $0x60] sm:$0xff] }
  0xfa   :  { %v580_v63 = vpop.eup %579  ;;  %v443_v0 = vmul.f32 %v791_v16, %v421_v57  ;;  %v418_v1 = vadd.f32 %v402_v62, %v266_v55  ;;  %v410_v4 = vsel %vm299_vm2, %v772_v3, %v578_v60  ;;  %589 = vrcp.f32 %v353_v59 }
  0xfb   :  { %v582_v6 = vpop.eup %581  ;;  %451 = vst [vmem:[%s957_s7 + $0x8] sm:$0xff] %v435_v61  ;;  %v426_v9 = vadd.f32 %v410_v4, %v274_v58  ;;  %v361_v10 = vadd.f32 1.0, %v580_v63 }
  0xfc   :  { %v584_v11 = vpop.eup %583  ;;  %459 = vst [vmem:[%s957_s7 + $0x48] sm:$0xff] %v443_v0  ;;  %v440_v3 = vmul.f32 %v791_v16, %v418_v1  ;;  %v400_v12 = vsel %vm299_vm2, %v776_v7, %v582_v6 }
  0xfd   :  { %v448_v13 = vmul.f32 %v791_v16, %v426_v9  ;;  %v416_v14 = vadd.f32 %v400_v12, %v264_v5  ;;  %v408_v19 = vsel %vm299_vm2, %v778_v8, %v584_v11  ;;  %591 = vrcp.f32 %v361_v10 }
  0xfe   :  { %456 = vst [vmem:[%s957_s7 + $0x30] sm:$0xff] %v440_v3  ;;  %v424_v20 = vadd.f32 %v408_v19, %v272_v2 }
  0xff   :  { %464 = vst [vmem:[%s957_s7 + $0x70] sm:$0xff] %v448_v13  ;;  %v438_v21 = vmul.f32 %v791_v16, %v416_v14 }
 0x100   :  { %v446_v7 = vmul.f32 %v791_v16, %v424_v20 }
 0x101   :  { %v586_v23 = vpop.eup %585  ;;  %454 = vst [vmem:[%s957_s7 + $0x20] sm:$0xff] %v438_v21 }
 0x102   :  { %462 = vst [vmem:[%s957_s7 + $0x60] sm:$0xff] %v446_v7  ;;  %v403_v8 = vsel %vm299_vm2, %v807_v28, %v586_v23 }
 0x103   :  { %v419_v24 = vadd.f32 %v403_v8, %v267_v22 }
 0x104   :  { %v588_v26 = vpop.eup %587 }
 0x105   :  { %v441_v27 = vmul.f32 %v791_v16, %v419_v24  ;;  %v411_v29 = vsel %vm299_vm2, %v828_v41, %v588_v26 }
 0x106   :  { %v427_v30 = vadd.f32 %v411_v29, %v275_v25 }
 0x107   :  { %v590_v32 = vpop.eup %589  ;;  %457 = vst [vmem:[%s957_s7 + $0x38] sm:$0xff] %v441_v27 }
 0x108   :  { %v449_v28 = vmul.f32 %v791_v16, %v427_v30  ;;  %v401_v33 = vsel %vm299_vm2, %v574_v52, %v590_v32 }
 0x109   :  { %v417_v34 = vadd.f32 %v401_v33, %v265_v31 }
 0x10a   :  { %v592_v36 = vpop.eup %591  ;;  %465 = vst [vmem:[%s957_s7 + $0x78] sm:$0xff] %v449_v28 }
 0x10b   :  { %v439_v37 = vmul.f32 %v791_v16, %v417_v34  ;;  %v409_v38 = vsel %vm299_vm2, %v580_v63, %v592_v36 }
 0x10c   :  { %v425_v39 = vadd.f32 %v409_v38, %v273_v35 }
 0x10d   :  { %455 = vst [vmem:[%s957_s7 + $0x28] sm:$0xff] %v439_v37 }
 0x10e   :  { %v447_v40 = vmul.f32 %v791_v16, %v425_v39 }
 0x110   :  { %463 = vst [vmem:[%s957_s7 + $0x68] sm:$0xff] %v447_v40 }

// kernel: darknet_forward.15
= control target key start
LH: loop header
LB: loop body
LE: loop exit
PB: predicated region body
PF: predicated region fallthrough
CT: control target
= control target key end

     0   :  { %s1873_s24 = smov 0   ;;  %s1875_s25 = smov 0   ;;  %s2445_s0 = inlined_call_operand.vmem [shape: bf16[512,144], index: 0, kind: input, shape index: {}]   ;;  %s2446_s1 = inlined_call_operand.vmem [shape: bf16[144,128], index: 1, kind: input, shape index: {}]   ;;  %s2447_s2 = inlined_call_operand.vmem [shape: f32[1,128], index: 2, kind: input, shape index: {}]   ;;  %s2448_s3 = inlined_call_operand.vmem [shape: f32[1,128], index: 3, kind: input, shape index: {}]   ;;  %s2449_s4 = inlined_call_operand.vmem [shape: f32[1,128], index: 4, kind: input, shape index: {}]   ;;  %s2450_s5 = inlined_call_operand.vmem [shape: f32[512,128], index: 5, kind: input, shape index: {}]   ;;  %s2451_s6 = inlined_call_operand.vmem [shape: f32[1,128], index: 6, kind: input, shape index: {}]   ;;  %s2452_s7 = inlined_call_operand.vmem [shape: f32[512,128], index: 7, kind: output, shape index: {}]  }
   0x1   :  { %s1877_s26 = smov 0  }
   0x2 LB: > { %s29_s27 = sadd.s32 1, %s1826_s25  ;;  %p1509_p0 = scmp.ge.s32.totalorder %s1830_s26, 1  ;;  %s1830_s26 = sphi %s1877_s26, %s17_s26   ;;  %s1826_s25 = sphi %s1875_s25, %s2454_s25   ;;  %s1822_s24 = sphi %s1873_s24, %s2453_s24  }
   0x3   : > { %p31_p1 = scmp.ge.s32.totalorder %s29_s27, 2  ;;  %p310_p2 = scmp.lt.s32.totalorder %s1830_s26, 3 }
   0x5   : > { %s2456_s27 = smov (%p31_p1, %s29_s27), 0  ;;  %p311_p3 = pnand %p1509_p0, %p310_p2 }
   0x6   : > { %s1510_s30 = sshll.u32 (!%p311_p3), %s1822_s24, 5 }
   0x7   : > { %314 = sbr.rel (%p311_p3) target bundleno = 366 (0x16e), region = 48  ;;  %p371_p4 = scmp.lt.s32.totalorder (!%p311_p3), %s1510_s30, 63 }
   0xc   : > { %v1623_v0 = vld [vmem:[%s2446_s1 + $0x38] sm:$0xff]   ;;  %v1832_v1 = vmov 0   ;;  %v1624_v2 = vld [vmem:[%s2446_s1 + $0x30] sm:$0xff]   ;;  %s2458_s30 = smov (!%p371_p4, %s1510_s30), 63  ;;  %v1625_v3 = vld [vmem:[%s2446_s1 + $0x28] sm:$0xff]   ;;  %vm660_vm0 = vcmask 130048   ;;  %v1016_v42 = vlaneseq }
   0xd   : > { %709 = vmatprep.subr.bf16.mxu0 %v1832_v1  ;;  %1580 = vmatprep.subr.bf16.mxu1 %v1832_v1  ;;  %s1904_s12 = sshll.u32 %s2458_s30, 3  ;;  %v1626_v4 = vld [vmem:[%s2446_s1 + $0x20] sm:$0xff]   ;;  %v1627_v7 = vld [vmem:[%s2446_s1 + $0x18] sm:$0xff]   ;;  %v1628_v8 = vld [vmem:[%s2446_s1 + $0x10] sm:$0xff]  }
   0xe   : > { %710 = vmatpush1.bf16.msra.mxu0 %v1623_v0  ;;  %1589 = vmatpush1.bf16.msra.mxu1 %v1623_v0  ;;  %s1912_s15 = scalar_lea.vmem %s2445_s0, %s1904_s12  ;;  %v1629_v9 = vld [vmem:[%s2446_s1 + $0x8] sm:$0xff]   ;;  %v1630_v10 = vld [vmem:[%s2446_s1] sm:$0xff]   ;;  %v1017_v44 = vshrl.u32 %v1016_v42, 7  ;;  %s2093_s17 = scalar_lea.vmem %s2450_s5, %s1904_s12 }
   0xf   : > { %711 = vmatprep.subr.bf16.mxu0 %v1832_v1  ;;  %1581 = vmatprep.subr.bf16.mxu1 %v1832_v1  ;;  %v1634_v5 = vld [vmem:[%s1912_s15 + $0x4] ss:$8 sps:$4 sm:$0xff]   ;;  %v1632_v12 = vld [vmem:[%s1912_s15] ss:$8 sps:$4 sm:$0xff]   ;;  %v1638_v14 = vld [vmem:[%s1912_s15 + $0x14] ss:$8 sps:$4 sm:$0xff]   ;;  %s2133_s22 = scalar_lea.vmem %s2452_s7, %s1904_s12 }
  0x10   : > { %v1637_v6 = vld [vmem:[%s1912_s15 + $0x84] ss:$8 sps:$4 sm:$0xff]   ;;  %1558 = vmatprep.mubr.msk.bf16.mxu0 %vm660_vm0, %v1634_v5  ;;  %v1635_v13 = vld [vmem:[%s1912_s15 + $0x80] ss:$8 sps:$4 sm:$0xff]   ;;  %v1640_v15 = vld [vmem:[%s1912_s15 + $0x94] ss:$8 sps:$4 sm:$0xff]  }
  0x11   : > { %1566 = vmatprep.mubr.msk.bf16.mxu1 %vm660_vm0, %v1637_v6  ;;  %v1631_v11 = vld [vmem:[%s2446_s1 + $0x40] sm:$0xff]   ;;  %v1642_v16 = vld [vmem:[%s1912_s15 + $0x10] ss:$8 sps:$4 sm:$0xff]   ;;  %v1650_v22 = vld [vmem:[%s1912_s15 + $0x34] ss:$8 sps:$4 sm:$0xff]   ;;  %v1018_v45 = vsub.s32 0, %v1017_v44 }
  0x12   : > { %712 = vmatpush1.bf16.msra.mxu0 %v1624_v2  ;;  %1590 = vmatpush1.bf16.msra.mxu1 %v1624_v2  ;;  %v1643_v17 = vld [vmem:[%s1912_s15 + $0x90] ss:$8 sps:$4 sm:$0xff]   ;;  %v1644_v18 = vld [vmem:[%s1912_s15 + $0x24] ss:$8 sps:$4 sm:$0xff]   ;;  %v1648_v20 = vld [vmem:[%s1912_s15 + $0x20] ss:$8 sps:$4 sm:$0xff]  }
  0x13   : > { %713 = vmatprep.subr.bf16.mxu0 %v1832_v1  ;;  %1582 = vmatprep.subr.bf16.mxu1 %v1832_v1  ;;  %v1646_v19 = vld [vmem:[%s1912_s15 + $0xa4] ss:$8 sps:$4 sm:$0xff]   ;;  %v1649_v21 = vld [vmem:[%s1912_s15 + $0xa0] ss:$8 sps:$4 sm:$0xff]   ;;  %v1652_v23 = vld [vmem:[%s1912_s15 + $0xb4] ss:$8 sps:$4 sm:$0xff]  }
  0x14   : > { %v1654_v24 = vld [vmem:[%s1912_s15 + $0x30] ss:$8 sps:$4 sm:$0xff]   ;;  %v1656_v26 = vld [vmem:[%s1912_s15 + $0x44] ss:$8 sps:$4 sm:$0xff]   ;;  %v1660_v28 = vld [vmem:[%s1912_s15 + $0x40] ss:$8 sps:$4 sm:$0xff]  }
  0x15   : > { %v1655_v25 = vld [vmem:[%s1912_s15 + $0xb0] ss:$8 sps:$4 sm:$0xff]   ;;  %v1658_v27 = vld [vmem:[%s1912_s15 + $0xc4] ss:$8 sps:$4 sm:$0xff]   ;;  %v1661_v29 = vld [vmem:[%s1912_s15 + $0xc0] ss:$8 sps:$4 sm:$0xff]  }
  0x16   : > { %714 = vmatpush1.bf16.msra.mxu0 %v1625_v3  ;;  %1591 = vmatpush1.bf16.msra.mxu1 %v1625_v3  ;;  %v1662_v30 = vld [vmem:[%s1912_s15 + $0x54] ss:$8 sps:$4 sm:$0xff]   ;;  %v1666_v32 = vld [vmem:[%s1912_s15 + $0x50] ss:$8 sps:$4 sm:$0xff]   ;;  %v1668_v34 = vld [vmem:[%s1912_s15 + $0x64] ss:$8 sps:$4 sm:$0xff]  }
  0x17   : > { %715 = vmatprep.subr.bf16.mxu0 %v1832_v1  ;;  %1583 = vmatprep.subr.bf16.mxu1 %v1832_v1  ;;  %v1664_v31 = vld [vmem:[%s1912_s15 + $0xd4] ss:$8 sps:$4 sm:$0xff]   ;;  %v1667_v33 = vld [vmem:[%s1912_s15 + $0xd0] ss:$8 sps:$4 sm:$0xff]   ;;  %v1670_v35 = vld [vmem:[%s1912_s15 + $0xe4] ss:$8 sps:$4 sm:$0xff]  }
  0x18   : > { %v1672_v36 = vld [vmem:[%s1912_s15 + $0x60] ss:$8 sps:$4 sm:$0xff]   ;;  %v1674_v38 = vld [vmem:[%s1912_s15 + $0x74] ss:$8 sps:$4 sm:$0xff]   ;;  %v1678_v40 = vld [vmem:[%s1912_s15 + $0x70] ss:$8 sps:$4 sm:$0xff]  }
  0x19   : > { %v1673_v37 = vld [vmem:[%s1912_s15 + $0xe0] ss:$8 sps:$4 sm:$0xff]   ;;  %v1676_v39 = vld [vmem:[%s1912_s15 + $0xf4] ss:$8 sps:$4 sm:$0xff]   ;;  %v1679_v41 = vld [vmem:[%s1912_s15 + $0xf0] ss:$8 sps:$4 sm:$0xff]  }
  0x1a   : > { %716 = vmatpush1.bf16.msra.mxu0 %v1626_v4  ;;  %1592 = vmatpush1.bf16.msra.mxu1 %v1626_v4  ;;  %v948_v43 = vld [vmem:[%s2449_s4] sm:$0x1] }
  0x1b   : > { %717 = vmatprep.subr.bf16.mxu0 %v1832_v1  ;;  %1584 = vmatprep.subr.bf16.mxu1 %v1832_v1  ;;  %vm982_vm1 = vcmp.gt.f32.partialorder %v948_v43, 0.0  ;;  %v1999_v47 = vld [vmem:[%s2447_s2] ss:$0 sm:$0xff] }
  0x1c   : > { %v1015_v46 = vsel %vm982_vm1, 1, %v1832_v1  ;;  %v2004_v49 = vld [vmem:[%s2448_s3] ss:$0 sm:$0xff] }
  0x1d   : > { %v2006_v50 = vrot.slane %v1015_v46, %v1018_v45 }
  0x1e   : > { %718 = vmatpush1.bf16.msra.mxu0 %v1627_v7  ;;  %1593 = vmatpush1.bf16.msra.mxu1 %v1627_v7 }
  0x1f   : > { %719 = vmatprep.subr.bf16.mxu0 %v1832_v1  ;;  %1585 = vmatprep.subr.bf16.mxu1 %v1832_v1  ;;  %vm1020_vm2 = vcmp.eq.s32.totalorder %v2006_v50, 1 }
  0x22   : > { %720 = vmatpush1.bf16.msra.mxu0 %v1628_v8  ;;  %1594 = vmatpush1.bf16.msra.mxu1 %v1628_v8 }
  0x23   : > { %721 = vmatprep.subr.bf16.mxu0 %v1832_v1  ;;  %1586 = vmatprep.subr.bf16.mxu1 %v1832_v1 }
  0x26   : > { %722 = vmatpush1.bf16.msra.mxu0 %v1629_v9  ;;  %1595 = vmatpush1.bf16.msra.mxu1 %v1629_v9 }
  0x27   : > { %723 = vmatprep.subr.bf16.mxu0 %v1832_v1  ;;  %1587 = vmatprep.subr.bf16.mxu1 %v1832_v1 }
  0x2a   : > { %724 = vmatpush1.bf16.msra.mxu0 %v1630_v10  ;;  %1596 = vmatpush1.bf16.msra.mxu1 %v1630_v10 }
  0x2b   : > { %739 = vmatprep.subr.bf16.mxu0 %v1832_v1  ;;  %1588 = vmatprep.subr.bf16.mxu1 %v1832_v1 }
  0x2e   : > { %740 = vmatpush2.bf16.msra.mxu0 %v1631_v11  ;;  %1597 = vmatpush2.bf16.msra.mxu1 %v1631_v11 }
  0x31   : > { %742 = vmatmul.mubr.bf16.vlgmr.msra.gmra.mxu0 %v1632_v12  ;;  %806 = vmatmul.mubr.bf16.vlgmr.msra.gmra.mxu1 %v1635_v13 }
  0x32   : > { %1559 = vmatprep.mubr.msk.bf16.mxu0 %vm660_vm0, %v1638_v14  ;;  %1567 = vmatprep.mubr.msk.bf16.mxu1 %vm660_vm0, %v1640_v15 }
  0x39   : > { %750 = vmatmul.mubr.bf16.gmra.mxu0 %v1642_v16  ;;  %814 = vmatmul.mubr.bf16.gmra.mxu1 %v1643_v17 }
  0x3a   : > { %1560 = vmatprep.mubr.msk.bf16.mxu0 %vm660_vm0, %v1644_v18  ;;  %1568 = vmatprep.mubr.msk.bf16.mxu1 %vm660_vm0, %v1646_v19 }
  0x41   : > { %758 = vmatmul.mubr.bf16.gmra.mxu0 %v1648_v20  ;;  %822 = vmatmul.mubr.bf16.gmra.mxu1 %v1649_v21 }
  0x42   : > { %1561 = vmatprep.mubr.msk.bf16.mxu0 %vm660_vm0, %v1650_v22  ;;  %1569 = vmatprep.mubr.msk.bf16.mxu1 %vm660_vm0, %v1652_v23 }
  0x49   : > { %766 = vmatmul.mubr.bf16.gmra.mxu0 %v1654_v24  ;;  %830 = vmatmul.mubr.bf16.gmra.mxu1 %v1655_v25 }
  0x4a   : > { %1562 = vmatprep.mubr.msk.bf16.mxu0 %vm660_vm0, %v1656_v26  ;;  %1570 = vmatprep.mubr.msk.bf16.mxu1 %vm660_vm0, %v1658_v27 }
  0x51   : > { %774 = vmatmul.mubr.bf16.gmra.mxu0 %v1660_v28  ;;  %838 = vmatmul.mubr.bf16.gmra.mxu1 %v1661_v29 }
  0x52   : > { %1563 = vmatprep.mubr.msk.bf16.mxu0 %vm660_vm0, %v1662_v30  ;;  %1571 = vmatprep.mubr.msk.bf16.mxu1 %vm660_vm0, %v1664_v31 }
  0x59   : > { %782 = vmatmul.mubr.bf16.gmra.mxu0 %v1666_v32  ;;  %846 = vmatmul.mubr.bf16.gmra.mxu1 %v1667_v33 }
  0x5a   : > { %1564 = vmatprep.mubr.msk.bf16.mxu0 %vm660_vm0, %v1668_v34  ;;  %1572 = vmatprep.mubr.msk.bf16.mxu1 %vm660_vm0, %v1670_v35 }
  0x61   : > { %790 = vmatmul.mubr.bf16.gmra.mxu0 %v1672_v36  ;;  %854 = vmatmul.mubr.bf16.gmra.mxu1 %v1673_v37 }
  0x62   : > { %1565 = vmatprep.mubr.msk.bf16.mxu0 %vm660_vm0, %v1674_v38  ;;  %1573 = vmatprep.mubr.msk.bf16.mxu1 %vm660_vm0, %v1676_v39 }
  0x69   : > { %798 = vmatmul.mubr.bf16.gmra.mxu0 %v1678_v40  ;;  %862 = vmatmul.mubr.bf16.gmra.mxu1 %v1679_v41 }
  0xf1   : > { %v743_v48 = vpop.f32.mrf.mxu0  ;;  %v807_v51 = vpop.f32.mrf.mxu1 }
  0xf2   : > { %v877_v52 = vmul.f32 %v1999_v47, %v743_v48  ;;  %v893_v53 = vmul.f32 %v1999_v47, %v807_v51 }
  0xf3   : > { %v745_v54 = vpop.f32.mrf.mxu0  ;;  %v809_v55 = vpop.f32.mrf.mxu1 }
  0xf4   : > { %v916_v56 = vadd.f32 %v2004_v49, %v877_v52  ;;  %v932_v57 = vadd.f32 %v2004_v49, %v893_v53 }
  0xf5   : > { %v746_v58 = vpop.f32.mrf.mxu0  ;;  %v810_v59 = vpop.f32.mrf.mxu1 }
  0xf6   : > { %v983_v60 = vsub.f32 0.0, %v916_v56  ;;  %v999_v61 = vsub.f32 0.0, %v932_v57  ;;  %v878_v62 = vmul.f32 %v1999_v47, %v746_v58  ;;  %v894_v63 = vmul.f32 %v1999_v47, %v810_v59 }
  0xf7   : > { %v748_v0 = vpop.f32.mrf.mxu0  ;;  %v812_v1 = vpop.f32.mrf.mxu1 }
  0xf8   : > { %v1021_v2 = vsel %vm1020_vm2, %v916_v56, %v983_v60  ;;  %v1037_v3 = vsel %vm1020_vm2, %v932_v57, %v999_v61  ;;  %v917_v4 = vadd.f32 %v2004_v49, %v878_v62  ;;  %v933_v5 = vadd.f32 %v2004_v49, %v894_v63 }
  0xf9   : > { %v1053_v6 = vmul.f32 1.442695, %v1021_v2  ;;  %v1085_v7 = vmul.f32 1.442695, %v1037_v3  ;;  %v751_v8 = vpop.f32.mrf.mxu0  ;;  %v815_v9 = vpop.f32.mrf.mxu1 }
  0xfa   : > { %v984_v10 = vsub.f32 0.0, %v917_v4  ;;  %v1000_v11 = vsub.f32 0.0, %v933_v5  ;;  %v879_v12 = vmul.f32 %v1999_v47, %v751_v8  ;;  %v895_v13 = vmul.f32 %v1999_v47, %v815_v9 }
  0xfb   : > { %1680 = vpow2.f32 %v1053_v6  ;;  %v753_v14 = vpop.f32.mrf.mxu0  ;;  %v817_v15 = vpop.f32.mrf.mxu1 }
  0xfc   : > { %1682 = vpow2.f32 %v1085_v7  ;;  %v1022_v16 = vsel %vm1020_vm2, %v917_v4, %v984_v10  ;;  %v1038_v17 = vsel %vm1020_vm2, %v933_v5, %v1000_v11  ;;  %v918_v18 = vadd.f32 %v2004_v49, %v879_v12 }
  0xfd   : > { %v1055_v19 = vmul.f32 1.442695, %v1022_v16  ;;  %v1087_v20 = vmul.f32 1.442695, %v1038_v17  ;;  %v934_v21 = vadd.f32 %v2004_v49, %v895_v13  ;;  %v754_v22 = vpop.f32.mrf.mxu0  ;;  %v818_v23 = vpop.f32.mrf.mxu1 }
  0xfe   : > { %v985_v24 = vsub.f32 0.0, %v918_v18  ;;  %v880_v25 = vmul.f32 %v1999_v47, %v754_v22  ;;  %v896_v26 = vmul.f32 %v1999_v47, %v818_v23 }
  0xff   : > { %1684 = vpow2.f32 %v1055_v19  ;;  %v1001_v27 = vsub.f32 0.0, %v934_v21  ;;  %v756_v28 = vpop.f32.mrf.mxu0  ;;  %v820_v29 = vpop.f32.mrf.mxu1 }
 0x100   : > { %1686 = vpow2.f32 %v1087_v20  ;;  %v1023_v30 = vsel %vm1020_vm2, %v918_v18, %v985_v24  ;;  %v919_v31 = vadd.f32 %v2004_v49, %v880_v25  ;;  %v935_v32 = vadd.f32 %v2004_v49, %v896_v26 }
 0x101   : > { %v1057_v33 = vmul.f32 1.442695, %v1023_v30  ;;  %v1039_v34 = vsel %vm1020_vm2, %v934_v21, %v1001_v27  ;;  %v759_v35 = vpop.f32.mrf.mxu0  ;;  %v823_v36 = vpop.f32.mrf.mxu1 }
 0x102   : > { %v1089_v37 = vmul.f32 1.442695, %v1039_v34  ;;  %v986_v38 = vsub.f32 0.0, %v919_v31  ;;  %v1002_v39 = vsub.f32 0.0, %v935_v32  ;;  %v881_v40 = vmul.f32 %v1999_v47, %v759_v35 }
 0x103   : > { %1688 = vpow2.f32 %v1057_v33  ;;  %v897_v41 = vmul.f32 %v1999_v47, %v823_v36  ;;  %v761_v42 = vpop.f32.mrf.mxu0  ;;  %v825_v43 = vpop.f32.mrf.mxu1 }
 0x104   : > { %1690 = vpow2.f32 %v1089_v37  ;;  %v1024_v44 = vsel %vm1020_vm2, %v919_v31, %v986_v38  ;;  %v1040_v45 = vsel %vm1020_vm2, %v935_v32, %v1002_v39  ;;  %v920_v46 = vadd.f32 %v2004_v49, %v881_v40 }
 0x105   : > { %v1059_v48 = vmul.f32 1.442695, %v1024_v44  ;;  %v1091_v51 = vmul.f32 1.442695, %v1040_v45  ;;  %v936_v52 = vadd.f32 %v2004_v49, %v897_v41  ;;  %v762_v53 = vpop.f32.mrf.mxu0  ;;  %v826_v54 = vpop.f32.mrf.mxu1 }
 0x106   : > { %v987_v55 = vsub.f32 0.0, %v920_v46  ;;  %v882_v56 = vmul.f32 %v1999_v47, %v762_v53  ;;  %v898_v57 = vmul.f32 %v1999_v47, %v826_v54 }
 0x107   : > { %1692 = vpow2.f32 %v1059_v48  ;;  %v1003_v58 = vsub.f32 0.0, %v936_v52  ;;  %v764_v59 = vpop.f32.mrf.mxu0  ;;  %v828_v60 = vpop.f32.mrf.mxu1 }
 0x108   : > { %v2047_v61 = vpop.eup %1680  ;;  %1694 = vpow2.f32 %v1091_v51  ;;  %v1025_v62 = vsel %vm1020_vm2, %v920_v46, %v987_v55  ;;  %v921_v63 = vadd.f32 %v2004_v49, %v882_v56  ;;  %v937_v0 = vadd.f32 %v2004_v49, %v898_v57 }
 0x109   : > { %v2053_v1 = vpop.eup %1682  ;;  %v1117_v2 = vadd.f32 1.0, %v2047_v61  ;;  %v1061_v3 = vmul.f32 1.442695, %v1025_v62  ;;  %v1041_v4 = vsel %vm1020_vm2, %v936_v52, %v1003_v58  ;;  %v767_v5 = vpop.f32.mrf.mxu0 }
 0x10a   : > { %v831_v6 = vpop.f32.mrf.mxu1  ;;  %v1133_v7 = vadd.f32 1.0, %v2053_v1  ;;  %v1093_v8 = vmul.f32 1.442695, %v1041_v4  ;;  %v988_v9 = vsub.f32 0.0, %v921_v63  ;;  %v1004_v10 = vsub.f32 0.0, %v937_v0 }
 0x10b   : > { %1696 = vrcp.f32 %v1117_v2  ;;  %v883_v11 = vmul.f32 %v1999_v47, %v767_v5  ;;  %v899_v12 = vmul.f32 %v1999_v47, %v831_v6  ;;  %v769_v13 = vpop.f32.mrf.mxu0 }
 0x10c   : > { %v833_v14 = vpop.f32.mrf.mxu1  ;;  %v2061_v15 = vpop.eup %1684  ;;  %1698 = vrcp.f32 %v1133_v7  ;;  %v1026_v16 = vsel %vm1020_vm2, %v921_v63, %v988_v9  ;;  %v1042_v17 = vsel %vm1020_vm2, %v937_v0, %v1004_v10  ;;  %v949_v0 = vld [vmem:[%s2093_s17] sm:$0xff] }
 0x10d   : > { %v2067_v18 = vpop.eup %1686  ;;  %v1118_v19 = vadd.f32 1.0, %v2061_v15  ;;  %1700 = vpow2.f32 %v1061_v3  ;;  %v1063_v20 = vmul.f32 1.442695, %v1026_v16  ;;  %v1095_v21 = vmul.f32 1.442695, %v1042_v17  ;;  %v770_v22 = vpop.f32.mrf.mxu0 }
 0x10e   : > { %v834_v23 = vpop.f32.mrf.mxu1  ;;  %v1134_v24 = vadd.f32 1.0, %v2067_v18  ;;  %1702 = vpow2.f32 %v1093_v8  ;;  %v922_v25 = vadd.f32 %v2004_v49, %v883_v11  ;;  %v938_v26 = vadd.f32 %v2004_v49, %v899_v12  ;;  %v965_v8 = vld [vmem:[%s2093_s17 + $0x80] sm:$0xff] }
 0x10f   : > { %1704 = vrcp.f32 %v1118_v19  ;;  %v884_v27 = vmul.f32 %v1999_v47, %v770_v22  ;;  %v900_v28 = vmul.f32 %v1999_v47, %v834_v23  ;;  %v772_v29 = vpop.f32.mrf.mxu0  ;;  %v2114_v12 = vld [vmem:[%s2451_s6] ss:$0 sm:$0xff] }
 0x110   : > { %v836_v30 = vpop.f32.mrf.mxu1  ;;  %v2075_v31 = vpop.eup %1688  ;;  %1706 = vrcp.f32 %v1134_v24  ;;  %v989_v32 = vsub.f32 0.0, %v922_v25  ;;  %v1005_v33 = vsub.f32 0.0, %v938_v26 }
 0x111   : > { %v2077_v34 = vpop.eup %1690  ;;  %v1119_v35 = vadd.f32 1.0, %v2075_v31  ;;  %1708 = vpow2.f32 %v1063_v20  ;;  %v923_v36 = vadd.f32 %v2004_v49, %v884_v27  ;;  %v939_v37 = vadd.f32 %v2004_v49, %v900_v28  ;;  %v775_v38 = vpop.f32.mrf.mxu0 }
 0x112   : > { %v839_v39 = vpop.f32.mrf.mxu1  ;;  %v1135_v40 = vadd.f32 1.0, %v2077_v34  ;;  %1710 = vpow2.f32 %v1095_v21  ;;  %v1027_v41 = vsel %vm1020_vm2, %v922_v25, %v989_v32  ;;  %v1043_v42 = vsel %vm1020_vm2, %v938_v26, %v1005_v33  ;;  %v950_v25 = vld [vmem:[%s2093_s17 + $0x8] sm:$0xff] }
 0x113   : > { %1712 = vrcp.f32 %v1119_v35  ;;  %v1065_v43 = vmul.f32 1.442695, %v1027_v41  ;;  %v1097_v44 = vmul.f32 1.442695, %v1043_v42  ;;  %v990_v45 = vsub.f32 0.0, %v923_v36  ;;  %v777_v46 = vpop.f32.mrf.mxu0  ;;  %v966_v33 = vld [vmem:[%s2093_s17 + $0x88] sm:$0xff] }
 0x114   : > { %v841_v48 = vpop.f32.mrf.mxu1  ;;  %v2087_v51 = vpop.eup %1692  ;;  %1714 = vrcp.f32 %v1135_v40  ;;  %v1006_v52 = vsub.f32 0.0, %v939_v37  ;;  %v885_v53 = vmul.f32 %v1999_v47, %v775_v38  ;;  %v901_v54 = vmul.f32 %v1999_v47, %v839_v39 }
 0x115   : > { %v2097_v55 = vpop.eup %1694  ;;  %v1120_v56 = vadd.f32 1.0, %v2087_v51  ;;  %1716 = vpow2.f32 %v1065_v43  ;;  %v1028_v57 = vsel %vm1020_vm2, %v923_v36, %v990_v45  ;;  %v778_v58 = vpop.f32.mrf.mxu0 }
 0x116   : > { %v842_v59 = vpop.f32.mrf.mxu1  ;;  %v1136_v60 = vadd.f32 1.0, %v2097_v55  ;;  %1718 = vpow2.f32 %v1097_v44  ;;  %v1067_v62 = vmul.f32 1.442695, %v1028_v57  ;;  %v1044_v63 = vsel %vm1020_vm2, %v939_v37, %v1006_v52 }
 0x117   : > { %1720 = vrcp.f32 %v1120_v56  ;;  %v1099_v2 = vmul.f32 1.442695, %v1044_v63  ;;  %v924_v3 = vadd.f32 %v2004_v49, %v885_v53  ;;  %v940_v4 = vadd.f32 %v2004_v49, %v901_v54  ;;  %v780_v5 = vpop.f32.mrf.mxu0  ;;  %v951_v53 = vld [vmem:[%s2093_s17 + $0x10] sm:$0xff] }
 0x118   : > { %v844_v6 = vpop.f32.mrf.mxu1  ;;  %v1697_v7 = vpop.eup %1696  ;;  %1722 = vrcp.f32 %v1136_v60  ;;  %v886_v9 = vmul.f32 %v1999_v47, %v778_v58  ;;  %v902_v10 = vmul.f32 %v1999_v47, %v842_v59  ;;  %v967_v60 = vld [vmem:[%s2093_s17 + $0x90] sm:$0xff] }
 0x119   : > { %v1699_v11 = vpop.eup %1698  ;;  %v1213_v13 = vsel %vm1020_vm2, %v2047_v61, %v1697_v7  ;;  %1724 = vpow2.f32 %v1067_v62  ;;  %v991_v14 = vsub.f32 0.0, %v924_v3  ;;  %v1007_v16 = vsub.f32 0.0, %v940_v4  ;;  %v783_v17 = vpop.f32.mrf.mxu0 }
 0x11a   : > { %v2119_v19 = vpop.f32.mrf.mxu1  ;;  %v2121_v20 = vpop.eup %1700  ;;  %v1245_v21 = vadd.f32 %v1213_v13, %v949_v0  ;;  %v1229_v22 = vsel %vm1020_vm2, %v2053_v1, %v1699_v11  ;;  %1726 = vpow2.f32 %v1099_v2  ;;  %v925_v23 = vadd.f32 %v2004_v49, %v886_v9  ;;  %v952_v13 = vld [vmem:[%s2093_s17 + $0x18] sm:$0xff] }
 0x11b   : > { %v2127_v24 = vpop.eup %1702  ;;  %v1261_v61 = vadd.f32 %v1229_v22, %v965_v8  ;;  %v1121_v26 = vadd.f32 1.0, %v2121_v20  ;;  %v1029_v27 = vsel %vm1020_vm2, %v924_v3, %v991_v14  ;;  %v1045_v1 = vsel %vm1020_vm2, %v940_v4, %v1007_v16  ;;  %v785_v28 = vpop.f32.mrf.mxu0 }
 0x11c   : > { %v849_v29 = vpop.f32.mrf.mxu1  ;;  %v1705_v30 = vpop.eup %1704  ;;  %v1283_v32 = vmul.f32 %v2114_v12, %v1245_v21  ;;  %v1137_v35 = vadd.f32 1.0, %v2127_v24  ;;  %v1069_v36 = vmul.f32 1.442695, %v1029_v27  ;;  %v1101_v37 = vmul.f32 1.442695, %v1045_v1 }
 0x11d   : > { %v1707_v38 = vpop.eup %1706  ;;  %v1299_v39 = vmul.f32 %v2114_v12, %v1261_v61  ;;  %v1214_v40 = vsel %vm1020_vm2, %v2061_v15, %v1705_v30  ;;  %1728 = vrcp.f32 %v1121_v26  ;;  %v992_v41 = vsub.f32 0.0, %v925_v23  ;;  %v2148_v42 = vpop.f32.mrf.mxu0  ;;  %v968_v61 = vld [vmem:[%s2093_s17 + $0x98] sm:$0xff] }
 0x11e   : > { %v2150_v43 = vpop.f32.mrf.mxu1  ;;  %v2152_v44 = vpop.eup %1708  ;;  %1315 = vst [vmem:[%s2133_s22] sm:$0xff] %v1283_v32  ;;  %v1246_v45 = vadd.f32 %v1214_v40, %v950_v25  ;;  %v1230_v46 = vsel %vm1020_vm2, %v2067_v18, %v1707_v38  ;;  %1730 = vrcp.f32 %v1137_v35  ;;  %v941_v48 = vadd.f32 %v2004_v49, %v902_v10 }
 0x11f   : > { %v2159_v52 = vpop.eup %1710  ;;  %1331 = vst [vmem:[%s2133_s22 + $0x80] sm:$0xff] %v1299_v39  ;;  %v1262_v15 = vadd.f32 %v1230_v46, %v966_v33  ;;  %v1122_v54 = vadd.f32 1.0, %v2152_v44  ;;  %1732 = vpow2.f32 %v1069_v36  ;;  %v1030_v56 = vsel %vm1020_vm2, %v925_v23, %v992_v41  ;;  %v788_v57 = vpop.f32.mrf.mxu0 }
 0x120   : > { %v852_v58 = vpop.f32.mrf.mxu1  ;;  %v1713_v59 = vpop.eup %1712  ;;  %v1284_v18 = vmul.f32 %v2114_v12, %v1246_v45  ;;  %v1138_v62 = vadd.f32 1.0, %v2159_v52  ;;  %1734 = vpow2.f32 %v1101_v37  ;;  %v1071_v63 = vmul.f32 1.442695, %v1030_v56 }
 0x121   : > { %v1715_v0 = vpop.eup %1714  ;;  %v1300_v2 = vmul.f32 %v2114_v12, %v1262_v15  ;;  %v1215_v3 = vsel %vm1020_vm2, %v2075_v31, %v1713_v59  ;;  %1736 = vrcp.f32 %v1122_v54  ;;  %v1008_v4 = vsub.f32 0.0, %v941_v48  ;;  %v791_v5 = vpop.f32.mrf.mxu0 }
 0x122   : > { %v2173_v6 = vpop.f32.mrf.mxu1  ;;  %v2175_v7 = vpop.eup %1716  ;;  %1316 = vst [vmem:[%s2133_s22 + $0x8] sm:$0xff] %v1284_v18  ;;  %v1247_v8 = vadd.f32 %v1215_v3, %v951_v53  ;;  %v1231_v9 = vsel %vm1020_vm2, %v2077_v34, %v1715_v0  ;;  %1738 = vrcp.f32 %v1138_v62  ;;  %v887_v10 = vmul.f32 %v1999_v47, %v783_v17  ;;  %v953_v53 = vld [vmem:[%s2093_s17 + $0x20] sm:$0xff] }
 0x123   : > { %v2182_v11 = vpop.eup %1718  ;;  %1332 = vst [vmem:[%s2133_s22 + $0x88] sm:$0xff] %v1300_v2  ;;  %v1263_v31 = vadd.f32 %v1231_v9, %v967_v60  ;;  %v1123_v14 = vadd.f32 1.0, %v2175_v7  ;;  %1740 = vpow2.f32 %v1071_v63  ;;  %v1046_v16 = vsel %vm1020_vm2, %v941_v48, %v1008_v4  ;;  %v793_v21 = vpop.f32.mrf.mxu0  ;;  %v969_v18 = vld [vmem:[%s2093_s17 + $0xa0] sm:$0xff] }
 0x124   : > { %v857_v22 = vpop.f32.mrf.mxu1  ;;  %v1721_v23 = vpop.eup %1720  ;;  %v1285_v34 = vmul.f32 %v2114_v12, %v1247_v8  ;;  %v1139_v17 = vadd.f32 1.0, %v2182_v11  ;;  %v1103_v25 = vmul.f32 1.442695, %v1046_v16  ;;  %v926_v26 = vadd.f32 %v2004_v49, %v887_v10 }
 0x125   : > { %v1723_v27 = vpop.eup %1722  ;;  %v1301_v1 = vmul.f32 %v2114_v12, %v1263_v31  ;;  %v1216_v28 = vsel %vm1020_vm2, %v2087_v51, %v1721_v23  ;;  %1742 = vrcp.f32 %v1123_v14  ;;  %v903_v29 = vmul.f32 %v1999_v47, %v2119_v19  ;;  %v2199_v30 = vpop.f32.mrf.mxu0  ;;  %v954_v14 = vld [vmem:[%s2093_s17 + $0x28] sm:$0xff] }
 0x126   : > { %v2201_v32 = vpop.f32.mrf.mxu1  ;;  %v2203_v33 = vpop.eup %1724  ;;  %1317 = vst [vmem:[%s2133_s22 + $0x10] sm:$0xff] %v1285_v34  ;;  %v1248_v35 = vadd.f32 %v1216_v28, %v952_v13  ;;  %v1232_v36 = vsel %vm1020_vm2, %v2097_v55, %v1723_v27  ;;  %1744 = vrcp.f32 %v1139_v17  ;;  %v993_v37 = vsub.f32 0.0, %v926_v26 }
 0x127   : > { %v2209_v51 = vpop.eup %1726  ;;  %1333 = vst [vmem:[%s2133_s22 + $0x90] sm:$0xff] %v1301_v1  ;;  %v1264_v38 = vadd.f32 %v1232_v36, %v968_v61  ;;  %v1124_v19 = vadd.f32 1.0, %v2203_v33  ;;  %1746 = vpow2.f32 %v1103_v25  ;;  %v942_v39 = vadd.f32 %v2004_v49, %v903_v29  ;;  %v796_v40 = vpop.f32.mrf.mxu0  ;;  %v970_v61 = vld [vmem:[%s2093_s17 + $0xa8] sm:$0xff] }
 0x128   : > { %v860_v41 = vpop.f32.mrf.mxu1  ;;  %v1286_v45 = vmul.f32 %v2114_v12, %v1248_v35  ;;  %v1140_v55 = vadd.f32 1.0, %v2209_v51  ;;  %v1031_v46 = vsel %vm1020_vm2, %v926_v26, %v993_v37  ;;  %v888_v48 = vmul.f32 %v1999_v47, %v2148_v42  ;;  %v955_v40 = vld [vmem:[%s2093_s17 + $0x30] sm:$0xff] }
 0x129   : > { %v1302_v15 = vmul.f32 %v2114_v12, %v1264_v38  ;;  %1748 = vrcp.f32 %v1124_v19  ;;  %v1073_v54 = vmul.f32 1.442695, %v1031_v46  ;;  %v1009_v56 = vsub.f32 0.0, %v942_v39  ;;  %v2222_v57 = vpop.f32.mrf.mxu0  ;;  %v971_v46 = vld [vmem:[%s2093_s17 + $0xb0] sm:$0xff] }
 0x12a   : > { %v2224_v58 = vpop.f32.mrf.mxu1  ;;  %v1729_v59 = vpop.eup %1728  ;;  %1318 = vst [vmem:[%s2133_s22 + $0x18] sm:$0xff] %v1286_v45  ;;  %1750 = vrcp.f32 %v1140_v55  ;;  %v927_v60 = vadd.f32 %v2004_v49, %v888_v48  ;;  %v904_v42 = vmul.f32 %v1999_v47, %v2150_v43  ;;  %v889_v62 = vmul.f32 %v1999_v47, %v791_v5 }
 0x12b   : > { %v1731_v63 = vpop.eup %1730  ;;  %1334 = vst [vmem:[%s2133_s22 + $0x98] sm:$0xff] %v1302_v15  ;;  %v1217_v0 = vsel %vm1020_vm2, %v2121_v20, %v1729_v59  ;;  %1752 = vpow2.f32 %v1073_v54  ;;  %v1047_v2 = vsel %vm1020_vm2, %v942_v39, %v1009_v56  ;;  %v905_v3 = vmul.f32 %v1999_v47, %v2173_v6  ;;  %v801_v4 = vpop.f32.mrf.mxu0 }
 0x12c   : > { %v865_v8 = vpop.f32.mrf.mxu1  ;;  %v2240_v43 = vpop.eup %1732  ;;  %v1249_v5 = vadd.f32 %v1217_v0, %v953_v53  ;;  %v1233_v9 = vsel %vm1020_vm2, %v2127_v24, %v1731_v63  ;;  %v1105_v10 = vmul.f32 1.442695, %v1047_v2  ;;  %v994_v31 = vsub.f32 0.0, %v927_v60  ;;  %v956_v0 = vld [vmem:[%s2093_s17 + $0x38] sm:$0xff] }
 0x12d   : > { %v2245_v20 = vpop.eup %1734  ;;  %v1265_v13 = vadd.f32 %v1233_v9, %v969_v18  ;;  %v1125_v16 = vadd.f32 1.0, %v2240_v43  ;;  %v943_v6 = vadd.f32 %v2004_v49, %v904_v42  ;;  %v928_v21 = vadd.f32 %v2004_v49, %v889_v62  ;;  %v2251_v22 = vpop.f32.mrf.mxu0  ;;  %v972_v8 = vld [vmem:[%s2093_s17 + $0xb8] sm:$0xff] }
 0x12e   : > { %v2253_v23 = vpop.f32.mrf.mxu1  ;;  %v1737_v34 = vpop.eup %1736  ;;  %v1287_v24 = vmul.f32 %v2114_v12, %v1249_v5  ;;  %v1141_v17 = vadd.f32 1.0, %v2245_v20  ;;  %1754 = vpow2.f32 %v1105_v10  ;;  %v1032_v25 = vsel %vm1020_vm2, %v927_v60, %v994_v31 }
 0x12f   : > { %v1739_v26 = vpop.eup %1738  ;;  %v1303_v27 = vmul.f32 %v2114_v12, %v1265_v13  ;;  %v1218_v1 = vsel %vm1020_vm2, %v2152_v44, %v1737_v34  ;;  %1756 = vrcp.f32 %v1125_v16  ;;  %v1075_v28 = vmul.f32 1.442695, %v1032_v25  ;;  %v804_v29 = vpop.f32.mrf.mxu0 }
 0x130   : > { %v868_v35 = vpop.f32.mrf.mxu1  ;;  %v2264_v36 = vpop.eup %1740  ;;  %1319 = vst [vmem:[%s2133_s22 + $0x20] sm:$0xff] %v1287_v24  ;;  %v1250_v37 = vadd.f32 %v1218_v1, %v954_v14  ;;  %v1234_v38 = vsel %vm1020_vm2, %v2159_v52, %v1739_v26  ;;  %1758 = vrcp.f32 %v1141_v17  ;;  %v1010_v19 = vsub.f32 0.0, %v943_v6  ;;  %v957_v1 = vld [vmem:[%s2093_s17 + $0x40] sm:$0xff] }
 0x131   : > { %1335 = vst [vmem:[%s2133_s22 + $0xa0] sm:$0xff] %v1303_v27  ;;  %v1266_v39 = vadd.f32 %v1234_v38, %v970_v61  ;;  %v1126_v44 = vadd.f32 1.0, %v2264_v36  ;;  %1760 = vpow2.f32 %v1075_v28  ;;  %v995_v41 = vsub.f32 0.0, %v928_v21 }
 0x132   : > { %v1743_v45 = vpop.eup %1742  ;;  %v1288_v55 = vmul.f32 %v2114_v12, %v1250_v37  ;;  %v1048_v48 = vsel %vm1020_vm2, %v943_v6, %v1010_v19  ;;  %v944_v52 = vadd.f32 %v2004_v49, %v905_v3  ;;  %v890_v15 = vmul.f32 %v1999_v47, %v2199_v30  ;;  %v973_v37 = vld [vmem:[%s2093_s17 + $0xc0] sm:$0xff] }
 0x133   : > { %v1745_v53 = vpop.eup %1744  ;;  %v1304_v54 = vmul.f32 %v2114_v12, %v1266_v39  ;;  %v1219_v56 = vsel %vm1020_vm2, %v2175_v7, %v1743_v45  ;;  %1762 = vrcp.f32 %v1126_v44  ;;  %v1107_v59 = vmul.f32 1.442695, %v1048_v48 }
 0x134   : > { %v2284_v18 = vpop.eup %1746  ;;  %1320 = vst [vmem:[%s2133_s22 + $0x28] sm:$0xff] %v1288_v55  ;;  %v1251_v60 = vadd.f32 %v1219_v56, %v955_v40  ;;  %v1235_v42 = vsel %vm1020_vm2, %v2182_v11, %v1745_v53  ;;  %v1033_v30 = vsel %vm1020_vm2, %v928_v21, %v995_v41  ;;  %v1011_v62 = vsub.f32 0.0, %v944_v52 }
 0x135   : > { %1336 = vst [vmem:[%s2133_s22 + $0xa8] sm:$0xff] %v1304_v54  ;;  %v1267_v63 = vadd.f32 %v1235_v42, %v971_v46  ;;  %v1142_v7 = vadd.f32 1.0, %v2284_v18  ;;  %1764 = vpow2.f32 %v1107_v59  ;;  %v1077_v2 = vmul.f32 1.442695, %v1033_v30 }
 0x136   : > { %v1749_v3 = vpop.eup %1748  ;;  %v1289_v4 = vmul.f32 %v2114_v12, %v1251_v60  ;;  %v1049_v11 = vsel %vm1020_vm2, %v944_v52, %v1011_v62  ;;  %v929_v5 = vadd.f32 %v2004_v49, %v890_v15  ;;  %v906_v9 = vmul.f32 %v1999_v47, %v2201_v32  ;;  %v958_v52 = vld [vmem:[%s2093_s17 + $0x48] sm:$0xff] }
 0x137   : > { %v1751_v10 = vpop.eup %1750  ;;  %v1305_v31 = vmul.f32 %v2114_v12, %v1267_v63  ;;  %v1220_v13 = vsel %vm1020_vm2, %v2203_v33, %v1749_v3  ;;  %1766 = vrcp.f32 %v1142_v7  ;;  %v1109_v14 = vmul.f32 1.442695, %v1049_v11 }
 0x138   : > { %v2306_v16 = vpop.eup %1752  ;;  %1321 = vst [vmem:[%s2133_s22 + $0x30] sm:$0xff] %v1289_v4  ;;  %v1252_v6 = vadd.f32 %v1220_v13, %v956_v0  ;;  %v1236_v21 = vsel %vm1020_vm2, %v2209_v51, %v1751_v10  ;;  %1768 = vpow2.f32 %v1077_v2  ;;  %v996_v32 = vsub.f32 0.0, %v929_v5 }
 0x139   : > { %1337 = vst [vmem:[%s2133_s22 + $0xb0] sm:$0xff] %v1305_v31  ;;  %v1268_v34 = vadd.f32 %v1236_v21, %v972_v8  ;;  %v1127_v24 = vadd.f32 1.0, %v2306_v16  ;;  %1770 = vpow2.f32 %v1109_v14  ;;  %v945_v33 = vadd.f32 %v2004_v49, %v906_v9  ;;  %v959_v21 = vld [vmem:[%s2093_s17 + $0x50] sm:$0xff] }
 0x13a   : > { %v1290_v61 = vmul.f32 %v2114_v12, %v1252_v6  ;;  %v1034_v17 = vsel %vm1020_vm2, %v929_v5, %v996_v32  ;;  %v891_v25 = vmul.f32 %v1999_v47, %v2222_v57  ;;  %v907_v51 = vmul.f32 %v1999_v47, %v2224_v58 }
 0x13b   : > { %v2322_v26 = vpop.eup %1754  ;;  %v1306_v27 = vmul.f32 %v2114_v12, %v1268_v34  ;;  %1772 = vrcp.f32 %v1127_v24  ;;  %v1079_v28 = vmul.f32 1.442695, %v1034_v17  ;;  %v1012_v29 = vsub.f32 0.0, %v945_v33  ;;  %v975_v17 = vld [vmem:[%s2093_s17 + $0xd0] sm:$0xff] }
 0x13c   : > { %v1757_v35 = vpop.eup %1756  ;;  %1322 = vst [vmem:[%s2133_s22 + $0x38] sm:$0xff] %v1290_v61  ;;  %v1143_v38 = vadd.f32 1.0, %v2322_v26  ;;  %v930_v57 = vadd.f32 %v2004_v49, %v891_v25  ;;  %v946_v19 = vadd.f32 %v2004_v49, %v907_v51  ;;  %v892_v58 = vmul.f32 %v1999_v47, %v2251_v22 }
 0x13d   : > { %v1759_v39 = vpop.eup %1758  ;;  %1338 = vst [vmem:[%s2133_s22 + $0xb8] sm:$0xff] %v1306_v27  ;;  %v1221_v40 = vsel %vm1020_vm2, %v2240_v43, %v1757_v35  ;;  %1774 = vpow2.f32 %v1079_v28  ;;  %v1050_v44 = vsel %vm1020_vm2, %v945_v33, %v1012_v29  ;;  %v908_v41 = vmul.f32 %v1999_v47, %v2253_v23 }
 0x13e   : > { %v2341_v45 = vpop.eup %1760  ;;  %v1253_v55 = vadd.f32 %v1221_v40, %v957_v1  ;;  %v1237_v22 = vsel %vm1020_vm2, %v2245_v20, %v1759_v39  ;;  %1776 = vrcp.f32 %v1143_v38  ;;  %v1111_v46 = vmul.f32 1.442695, %v1050_v44 }
 0x13f   : > { %v1269_v48 = vadd.f32 %v1237_v22, %v973_v37  ;;  %v1128_v43 = vadd.f32 1.0, %v2341_v45  ;;  %v997_v15 = vsub.f32 0.0, %v930_v57  ;;  %v1013_v53 = vsub.f32 0.0, %v946_v19 }
 0x140   : > { %v1763_v54 = vpop.eup %1762  ;;  %v1291_v47 = vmul.f32 %v2114_v12, %v1253_v55  ;;  %1778 = vpow2.f32 %v1111_v46  ;;  %v931_v23 = vadd.f32 %v2004_v49, %v892_v58  ;;  %v947_v56 = vadd.f32 %v2004_v49, %v908_v41  ;;  %v974_v49 = vld [vmem:[%s2093_s17 + $0xc8] sm:$0xff] }
 0x141   : > { %v1307_v20 = vmul.f32 %v2114_v12, %v1269_v48  ;;  %v1222_v59 = vsel %vm1020_vm2, %v2264_v36, %v1763_v54  ;;  %1780 = vrcp.f32 %v1128_v43  ;;  %v1035_v60 = vsel %vm1020_vm2, %v930_v57, %v997_v15  ;;  %v961_v48 = vld [vmem:[%s2093_s17 + $0x60] sm:$0xff] }
 0x142   : > { %v1765_v42 = vpop.eup %1764  ;;  %1323 = vst [vmem:[%s2133_s22 + $0x40] sm:$0xff] %v1291_v47  ;;  %v1254_v30 = vadd.f32 %v1222_v59, %v958_v52  ;;  %v1081_v62 = vmul.f32 1.442695, %v1035_v60  ;;  %v1051_v63 = vsel %vm1020_vm2, %v946_v19, %v1013_v53  ;;  %v998_v0 = vsub.f32 0.0, %v931_v23  ;;  %v977_v43 = vld [vmem:[%s2093_s17 + $0xe0] sm:$0xff] }
 0x143   : > { %1339 = vst [vmem:[%s2133_s22 + $0xc0] sm:$0xff] %v1307_v20  ;;  %v1144_v7 = vadd.f32 1.0, %v1765_v42  ;;  %v1113_v2 = vmul.f32 1.442695, %v1051_v63  ;;  %v1014_v3 = vsub.f32 0.0, %v947_v56 }
 0x144   : > { %v1767_v36 = vpop.eup %1766  ;;  %v1292_v4 = vmul.f32 %v2114_v12, %v1254_v30  ;;  %1782 = vpow2.f32 %v1081_v62  ;;  %v1036_v8 = vsel %vm1020_vm2, %v931_v23, %v998_v0  ;;  %v962_v30 = vld [vmem:[%s2093_s17 + $0x68] sm:$0xff] }
 0x145   : > { %v1769_v11 = vpop.eup %1768  ;;  %v1238_v5 = vsel %vm1020_vm2, %v2284_v18, %v1767_v36  ;;  %1784 = vrcp.f32 %v1144_v7  ;;  %v1083_v9 = vmul.f32 1.442695, %v1036_v8  ;;  %v1052_v10 = vsel %vm1020_vm2, %v947_v56, %v1014_v3  ;;  %v978_v7 = vld [vmem:[%s2093_s17 + $0xe8] sm:$0xff]  ;;  %v963_v8 = vld [vmem:[%s2093_s17 + $0x70] sm:$0xff] }
 0x146   : > { %v1771_v31 = vpop.eup %1770  ;;  %1324 = vst [vmem:[%s2133_s22 + $0x48] sm:$0xff] %v1292_v4  ;;  %v1270_v13 = vadd.f32 %v1238_v5, %v974_v49  ;;  %v1129_v14 = vadd.f32 1.0, %v1769_v11  ;;  %1786 = vpow2.f32 %v1113_v2  ;;  %v1115_v6 = vmul.f32 1.442695, %v1052_v10  ;;  %v979_v10 = vld [vmem:[%s2093_s17 + $0xf0] sm:$0xff] }
 0x147   : > { %v1145_v32 = vadd.f32 1.0, %v1771_v31  ;;  %1788 = vpow2.f32 %v1083_v9 }
 0x148   : > { %v1773_v34 = vpop.eup %1772  ;;  %v1308_v18 = vmul.f32 %v2114_v12, %v1270_v13  ;;  %1790 = vrcp.f32 %v1129_v14  ;;  %v964_v14 = vld [vmem:[%s2093_s17 + $0x78] sm:$0xff] }
 0x149   : > { %v1223_v24 = vsel %vm1020_vm2, %v2306_v16, %v1773_v34  ;;  %1792 = vrcp.f32 %v1145_v32  ;;  %v960_v16 = vld [vmem:[%s2093_s17 + $0x58] sm:$0xff] }
 0x14a   : > { %v1775_v33 = vpop.eup %1774  ;;  %1340 = vst [vmem:[%s2133_s22 + $0xc8] sm:$0xff] %v1308_v18  ;;  %v1255_v61 = vadd.f32 %v1223_v24, %v959_v21  ;;  %1794 = vpow2.f32 %v1115_v6 }
 0x14b   : > { %v1777_v25 = vpop.eup %1776  ;;  %v1130_v51 = vadd.f32 1.0, %v1775_v33 }
 0x14c   : > { %v1293_v27 = vmul.f32 %v2114_v12, %v1255_v61  ;;  %v1239_v1 = vsel %vm1020_vm2, %v2322_v26, %v1777_v25  ;;  %v976_v26 = vld [vmem:[%s2093_s17 + $0xd8] sm:$0xff] }
 0x14d   : > { %v1779_v28 = vpop.eup %1778  ;;  %v1271_v29 = vadd.f32 %v1239_v1, %v975_v17  ;;  %1796 = vrcp.f32 %v1130_v51 }
 0x14e   : > { %v1781_v35 = vpop.eup %1780  ;;  %1325 = vst [vmem:[%s2133_s22 + $0x50] sm:$0xff] %v1293_v27  ;;  %v1146_v37 = vadd.f32 1.0, %v1779_v28 }
 0x14f   : > { %v1309_v38 = vmul.f32 %v2114_v12, %v1271_v29  ;;  %v1224_v57 = vsel %vm1020_vm2, %v2341_v45, %v1781_v35 }
 0x150   : > { %v1256_v19 = vadd.f32 %v1224_v57, %v960_v16  ;;  %1798 = vrcp.f32 %v1146_v37 }
 0x151   : > { %v1783_v58 = vpop.eup %1782  ;;  %1341 = vst [vmem:[%s2133_s22 + $0xd0] sm:$0xff] %v1309_v38 }
 0x152   : > { %v1785_v39 = vpop.eup %1784  ;;  %v1294_v40 = vmul.f32 %v2114_v12, %v1256_v19  ;;  %v1131_v44 = vadd.f32 1.0, %v1783_v58 }
 0x153   : > { %v1787_v41 = vpop.eup %1786  ;;  %v1240_v55 = vsel %vm1020_vm2, %v1765_v42, %v1785_v39 }
 0x154   : > { %v1789_v22 = vpop.eup %1788  ;;  %1326 = vst [vmem:[%s2133_s22 + $0x58] sm:$0xff] %v1294_v40  ;;  %v1272_v46 = vadd.f32 %v1240_v55, %v976_v26  ;;  %1800 = vrcp.f32 %v1131_v44  ;;  %v1147_v45 = vadd.f32 1.0, %v1787_v41 }
 0x155   : > { %v1791_v52 = vpop.eup %1790  ;;  %v1132_v15 = vadd.f32 1.0, %v1789_v22 }
 0x156   : > { %v1793_v53 = vpop.eup %1792  ;;  %v1310_v54 = vmul.f32 %v2114_v12, %v1272_v46  ;;  %v1225_v47 = vsel %vm1020_vm2, %v1769_v11, %v1791_v52  ;;  %1802 = vrcp.f32 %v1147_v45 }
 0x157   : > { %v1795_v23 = vpop.eup %1794  ;;  %v1257_v56 = vadd.f32 %v1225_v47, %v961_v48  ;;  %v1241_v20 = vsel %vm1020_vm2, %v1771_v31, %v1793_v53  ;;  %1804 = vrcp.f32 %v1132_v15 }
 0x158   : > { %1342 = vst [vmem:[%s2133_s22 + $0xd8] sm:$0xff] %v1310_v54  ;;  %v1273_v59 = vadd.f32 %v1241_v20, %v977_v43  ;;  %v1148_v60 = vadd.f32 1.0, %v1795_v23 }
 0x159   : > { %v1295_v42 = vmul.f32 %v2114_v12, %v1257_v56 }
 0x15a   : > { %v1797_v62 = vpop.eup %1796  ;;  %v1311_v63 = vmul.f32 %v2114_v12, %v1273_v59  ;;  %1806 = vrcp.f32 %v1148_v60 }
 0x15b   : > { %1327 = vst [vmem:[%s2133_s22 + $0x60] sm:$0xff] %v1295_v42  ;;  %v1226_v0 = vsel %vm1020_vm2, %v1775_v33, %v1797_v62  ;;  %v980_v33 = vld [vmem:[%s2093_s17 + $0xf8] sm:$0xff] }
 0x15c   : > { %1343 = vst [vmem:[%s2133_s22 + $0xe0] sm:$0xff] %v1311_v63  ;;  %v1258_v49 = vadd.f32 %v1226_v0, %v962_v30 }
 0x15d   : > { %v1799_v2 = vpop.eup %1798 }
 0x15e   : > { %v1296_v3 = vmul.f32 %v2114_v12, %v1258_v49  ;;  %v1242_v36 = vsel %vm1020_vm2, %v1779_v28, %v1799_v2 }
 0x15f   : > { %v1274_v4 = vadd.f32 %v1242_v36, %v978_v7 }
 0x160   : > { %1328 = vst [vmem:[%s2133_s22 + $0x68] sm:$0xff] %v1296_v3 }
 0x161   : > { %v1801_v11 = vpop.eup %1800  ;;  %v1312_v5 = vmul.f32 %v2114_v12, %v1274_v4 }
 0x162   : > { %v1227_v9 = vsel %vm1020_vm2, %v1783_v58, %v1801_v11 }
 0x163   : > { %v1803_v31 = vpop.eup %1802  ;;  %1344 = vst [vmem:[%s2133_s22 + $0xe8] sm:$0xff] %v1312_v5  ;;  %v1259_v13 = vadd.f32 %v1227_v9, %v963_v8 }
 0x164   : > { %v1805_v6 = vpop.eup %1804  ;;  %v1243_v21 = vsel %vm1020_vm2, %v1787_v41, %v1803_v31 }
 0x165   : > { %v1297_v32 = vmul.f32 %v2114_v12, %v1259_v13  ;;  %v1275_v34 = vadd.f32 %v1243_v21, %v979_v10  ;;  %v1228_v18 = vsel %vm1020_vm2, %v1789_v22, %v1805_v6 }
 0x166   : > { %v1260_v24 = vadd.f32 %v1228_v18, %v964_v14 }
 0x167   : > { %v1807_v61 = vpop.eup %1806  ;;  %1329 = vst [vmem:[%s2133_s22 + $0x70] sm:$0xff] %v1297_v32  ;;  %v1313_v17 = vmul.f32 %v2114_v12, %v1275_v34 }
 0x168   : > { %v1298_v25 = vmul.f32 %v2114_v12, %v1260_v24  ;;  %v1244_v51 = vsel %vm1020_vm2, %v1795_v23, %v1807_v61 }
 0x169   : > { %1345 = vst [vmem:[%s2133_s22 + $0xf0] sm:$0xff] %v1313_v17  ;;  %v1276_v27 = vadd.f32 %v1244_v51, %v980_v33 }
 0x16a   : > { %1330 = vst [vmem:[%s2133_s22 + $0x78] sm:$0xff] %v1298_v25 }
 0x16b   : > { %v1314_v1 = vmul.f32 %v2114_v12, %v1276_v27 }
 0x16d   : > { %1346 = vst [vmem:[%s2133_s22 + $0xf8] sm:$0xff] %v1314_v1 }
 0x16e PF: > { %s17_s26 = sadd.s32 1, %s1830_s26   ;;  %s2453_s24 = smov %s1826_s25 }
 0x16f   : > { %p14_p5 = scmp.ge.s32.totalorder %s17_s26, 4   ;;  %s2454_s25 = smov %s2456_s27 }
 0x171   :  { %16 = sbr.rel (!%p14_p5) target bundleno = 2 (0x2), region = 96 }

</bundles_post_ra>
